<compile_context>
chip_gen: v5e
topology: v5e:2x2
jax: 0.10.0
libtpu: 0.0.40
codegen_flags: <defaults>
</compile_context>

<pallas_src>
import math

import jax
import jax.numpy as jnp
from jax import lax
from jax.experimental import pallas as pl
from jax.experimental.pallas import tpu as pltpu

F32 = jnp.float32
BF16 = jnp.bfloat16

# ----------------------- configuration (small, deterministic) -----------------------
T = 16          # number of frames
M = 8           # number of action tokens
HID = 32        # args.hid_dim
A_DIM = 32      # args.a_dim   (== hid_dim so the block is self-consistent)
F_DIM = 32      # args.f_dim
HEAD_DIM = 32   # X2Y_map head_dim (= hid_dim)
NHEAD = 4       # args.a_num_heads
FF_DIM = 64     # args.a_ffdim
A_LAYERS = 1    # args.a_layers
F_LAYERS = 2    # args.f_layers (dilated residual TCN layers)
NCLASS = 4      # num action classes
LN_EPS = 1e-5
PAD_ROWS = 8    # sublane-aligned time padding for the in-kernel dilated-conv shifts


# =============================== in-kernel helpers ===================================

def _mm(a, w):
    """MXU matmul: bf16 operands, f32 accumulation."""
    return jnp.dot(a.astype(BF16), w.astype(BF16), preferred_element_type=F32)


def _mm_qkt(q, k):
    """q @ k.T on the MXU: bf16 operands, f32 accumulation."""
    return lax.dot_general(q.astype(BF16), k.astype(BF16),
                           (((1,), (1,)), ((), ())), preferred_element_type=F32)


def _softmax_rows(x):
    m = jnp.max(x, axis=-1, keepdims=True)
    e = jnp.exp(x - m)
    return e * pl.reciprocal(jnp.sum(e, axis=-1, keepdims=True), approx=True)


def _layernorm(v, g, b):
    mu = jnp.mean(v, axis=-1, keepdims=True)
    var = jnp.mean((v - mu) ** 2, axis=-1, keepdims=True)
    return (v - mu) * lax.rsqrt(var + LN_EPS) * g + b


def _x2y(y, x, ypos, xpos, wq, bq, wk, bk, wv, bv, wo, bo, scale):
    """Single-head cross-attention (X2Y_map): Y queries attend to X keys/values.
    Output projection is fused: concat([y, ctx]) @ [woy; woc]."""
    q = _mm(y + ypos, wq) + bq
    k = _mm(x + xpos, wk) + bk
    v = _mm(x, wv) + bv
    logit = _mm_qkt(q, k) * scale
    attn = _softmax_rows(logit)
    ctx = _mm(attn, v)
    out = _mm(jnp.concatenate([y, ctx], axis=-1), wo) + bo
    return out, attn, logit


def _sa_layer(x, pos, wqk, bqk, wv, bv, wo, bo,
              ln1g, ln1b, w1, b1, w2, b2, ln2g, ln2b):
    """Post-norm transformer self-attention layer (DETR-style pos on q/k) + FFN.
    Fused [q|k] projection, per-head lane slices, one fused output projection."""
    d = x.shape[-1]
    hd = d // NHEAD
    scale = 1.0 / math.sqrt(hd)

    xp = x + pos
    qk = _mm(xp, wqk) + bqk            # (N, 2d)
    v = _mm(x, wv) + bv                # (N, d)
    q = qk[:, :d]
    k = qk[:, d:]

    ctx_heads = []
    for h in range(NHEAD):             # static unroll; projections already fused
        sl = slice(h * hd, (h + 1) * hd)
        lg = _mm_qkt(q[:, sl], k[:, sl]) * scale
        a = _softmax_rows(lg)
        ctx_heads.append(_mm(a, v[:, sl]))
    ctx = jnp.concatenate(ctx_heads, axis=-1)       # (N, d)
    attn_out = _mm(ctx, wo) + bo

    x1 = _layernorm(x + attn_out, ln1g, ln1b)
    hdn = jnp.maximum(_mm(x1, w1) + b1, 0.0)
    return _layernorm(x1 + _mm(hdn, w2) + b2, ln2g, ln2b)


def _process_feature(feat, nclass):
    """feature -> (concat(feature[:, :-n], softmax(clogit)), clogit), all in-kernel.
    Softmax of the trailing class lanes is done lane-dense with a mask (no narrow reduce)."""
    dim = feat.shape[-1]
    lane = lax.broadcasted_iota(jnp.int32, feat.shape, 1)
    is_cls = lane >= (dim - nclass)
    masked = jnp.where(is_cls, feat, -1e30)
    mx = jnp.max(masked, axis=-1, keepdims=True)
    e = jnp.exp(masked - mx)
    prob = e * pl.reciprocal(jnp.sum(e, axis=-1, keepdims=True), approx=True)
    new_feat = jnp.where(is_cls, prob, feat)
    clogit = feat[:, dim - nclass:]
    return new_feat, clogit


# =============================== fused kernel ========================================

def _update_block_kernel(
    # activations
    ff_ref, af_ref, fp_ref, ap_ref,
    # f2a cross attention
    f2a_wq, f2a_bq, f2a_wk, f2a_bk, f2a_wv, f2a_bv, f2a_wo, f2a_bo,
    # action branch: SA decoder (layer-stacked params) + output projection
    sa_wqk, sa_bqk, sa_wv, sa_bv, sa_wo, sa_bo,
    sa_ln1g, sa_ln1b, sa_w1, sa_b1, sa_w2, sa_b2, sa_ln2g, sa_ln2b,
    ab_wout, ab_bout,
    # a2f cross attention
    a2f_wq, a2f_bq, a2f_wk, a2f_bk, a2f_wv, a2f_bv, a2f_wo, a2f_bo,
    # frame branch: MSTCN2 (layer-stacked dilated residual params)
    fb_win, fb_bin, fb_wc, fb_bc, fb_w1, fb_b1, fb_wout, fb_bout,
    # outputs
    out_ff, out_af, out_fcl, out_acl,
    out_f2a_attn, out_f2a_logit, out_a2f_attn, out_a2f_logit,
    # scratch
    pad_ref,
):
    ff = ff_ref[...]
    af = af_ref[...]
    fp = fp_ref[...]
    ap = ap_ref[...]
    x2y_scale = 1.0 / math.sqrt(HEAD_DIM)

    # ---- f2a: action tokens (Y) attend to frames (X) --------------------------------
    af1, f2a_attn, f2a_logit = _x2y(
        af, ff, ap, fp,
        f2a_wq[...], f2a_bq[...], f2a_wk[...], f2a_bk[...],
        f2a_wv[...], f2a_bv[...], f2a_wo[...], f2a_bo[...], x2y_scale)
    out_f2a_attn[...] = f2a_attn
    out_f2a_logit[...] = f2a_logit

    # ---- action branch: self-attention decoder ---------------------------------------
    h = af1
    for l in range(A_LAYERS):
        h = _sa_layer(h, ap,
                      sa_wqk[l], sa_bqk[l], sa_wv[l], sa_bv[l],
                      sa_wo[l], sa_bo[l],
                      sa_ln1g[l], sa_ln1b[l], sa_w1[l], sa_b1[l],
                      sa_w2[l], sa_b2[l], sa_ln2g[l], sa_ln2b[l])
    af_dec = _mm(h, ab_wout[...]) + ab_bout[...]
    af_final, action_clogit = _process_feature(af_dec, NCLASS + 1)
    out_af[...] = af_final
    out_acl[...] = action_clogit

    # ---- a2f: frames (Y) attend to updated action tokens (X) -------------------------
    ff1, a2f_attn, a2f_logit = _x2y(
        ff, af_final, fp, ap,
        a2f_wq[...], a2f_bq[...], a2f_wk[...], a2f_bk[...],
        a2f_wv[...], a2f_bv[...], a2f_wo[...], a2f_bo[...], x2y_scale)
    out_a2f_attn[...] = a2f_attn
    out_a2f_logit[...] = a2f_logit

    # ---- frame branch: MSTCN2 (dilated residual TCN) ----------------------------------
    g = _mm(ff1, fb_win[...]) + fb_bin[...]
    # zero-padded time buffer; borders stay zero across layers ("same" padding)
    pad_ref[...] = jnp.zeros(pad_ref.shape, F32)
    for l in range(F_LAYERS):
        dil = 2 ** l
        pad_ref[PAD_ROWS:PAD_ROWS + T, :] = g                 # aligned center write
        x_prev = pad_ref[PAD_ROWS - dil:PAD_ROWS - dil + T, :]  # x[t - dil]
        x_next = pad_ref[PAD_ROWS + dil:PAD_ROWS + dil + T, :]  # x[t + dil]
        slab = jnp.concatenate([x_prev, g, x_next], axis=-1)    # (T, 3*C)
        conv = jnp.maximum(_mm(slab, fb_wc[l]) + fb_bc[l], 0.0)  # single (T,96)x(96,C)
        g = g + _mm(conv, fb_w1[l]) + fb_b1[l]
    ff_dec = _mm(g, fb_wout[...]) + fb_bout[...]
    ff_final, frame_clogit = _process_feature(ff_dec, NCLASS)
    out_ff[...] = ff_final
    out_fcl[...] = frame_clogit


# =============================== wrapper ==============================================

def update_block_forward(params, frame_feature, action_feature, frame_pos, action_pos):
    """Mirrors UpdateBlock.forward.  Inputs are (seq, batch=1, channel)."""
    ff = frame_feature[:, 0, :]
    af = action_feature[:, 0, :]
    fp = frame_pos[:, 0, :]
    ap = action_pos[:, 0, :]

    f2a, a2f = params["f2a"], params["a2f"]
    ab, fb = params["abranch"], params["fbranch"]

    inputs = [
        ff, af, fp, ap,
        f2a["wq"], f2a["bq"], f2a["wk"], f2a["bk"],
        f2a["wv"], f2a["bv"], f2a["wo"], f2a["bo"],
        ab["wqk"], ab["bqk"], ab["wv"], ab["bv"], ab["wo"], ab["bo"],
        ab["ln1_g"], ab["ln1_b"], ab["w1"], ab["b1"], ab["w2"], ab["b2"],
        ab["ln2_g"], ab["ln2_b"],
        ab["wout"], ab["bout"],
        a2f["wq"], a2f["bq"], a2f["wk"], a2f["bk"],
        a2f["wv"], a2f["bv"], a2f["wo"], a2f["bo"],
        fb["win"], fb["bin"], fb["wc"], fb["bc"], fb["w1"], fb["b1"],
        fb["wout"], fb["bout"],
    ]

    out_shapes = (
        jax.ShapeDtypeStruct((T, HID), F32),         # frame feature
        jax.ShapeDtypeStruct((M, HID), F32),         # action feature
        jax.ShapeDtypeStruct((T, NCLASS), F32),      # frame clogit
        jax.ShapeDtypeStruct((M, NCLASS + 1), F32),  # action clogit
        jax.ShapeDtypeStruct((M, T), F32),           # f2a attn
        jax.ShapeDtypeStruct((M, T), F32),           # f2a attn logit
        jax.ShapeDtypeStruct((T, M), F32),           # a2f attn
        jax.ShapeDtypeStruct((T, M), F32),           # a2f attn logit
    )

    vmem_spec = pl.BlockSpec(memory_space=pltpu.MemorySpace.VMEM)
    outs = pl.pallas_call(
        _update_block_kernel,
        out_shape=out_shapes,
        in_specs=[vmem_spec] * len(inputs),
        out_specs=tuple(vmem_spec for _ in out_shapes),
        scratch_shapes=[pltpu.VMEM((T + 2 * PAD_ROWS, F_DIM), F32)],
        compiler_params=pltpu.CompilerParams(vmem_limit_bytes=8 * 1024 * 1024),
    )(*inputs)

    (ff_new, af_new, frame_clogit, action_clogit,
     f2a_attn, f2a_logit, a2f_attn, a2f_logit) = outs

    return {
        "frame_feature": ff_new[:, None, :],
        "action_feature": af_new[:, None, :],
        "frame_clogit": frame_clogit[:, None, :],
        "action_clogit": action_clogit[:, None, :],
        "f2a_attn": f2a_attn,
        "a2f_attn": a2f_attn,
        "f2a_attn_logit": f2a_logit[None, :, :],
        "a2f_attn_logit": a2f_logit[None, :, :],
    }


# =============================== parameter init =======================================

def _w(key, shape, fan_in):
    # Matmul weights stored in bf16 (MXU-native); biases / LN params stay f32.
    return (jax.random.normal(key, shape, F32) / math.sqrt(fan_in)).astype(BF16)


def init_x2y_params(key, x_dim, y_dim, y_outdim, head_dim):
    ks = jax.random.split(key, 5)
    woy = jax.random.normal(ks[3], (y_dim, y_outdim), F32) / math.sqrt(y_dim + head_dim)
    woc = jax.random.normal(ks[4], (head_dim, y_outdim), F32) / math.sqrt(y_dim + head_dim)
    return {
        "wq": _w(ks[0], (y_dim, head_dim), y_dim), "bq": jnp.zeros((1, head_dim), F32),
        "wk": _w(ks[1], (x_dim, head_dim), x_dim), "bk": jnp.zeros((1, head_dim), F32),
        "wv": _w(ks[2], (x_dim, head_dim), x_dim), "bv": jnp.zeros((1, head_dim), F32),
        # fused output projection for concat([y, ctx]): rows = y weights then ctx weights
        "wo": jnp.concatenate([woy, woc], axis=0).astype(BF16),
        "bo": jnp.zeros((1, y_outdim), F32),
    }


def init_abranch_params(key, d, ff_dim, out_dim, num_layers):
    keys = jax.random.split(key, num_layers + 1)

    def one_layer(k):
        ks = jax.random.split(k, 5)
        return {
            "wqk": _w(ks[0], (d, 2 * d), d), "bqk": jnp.zeros((1, 2 * d), F32),
            "wv": _w(ks[1], (d, d), d), "bv": jnp.zeros((1, d), F32),
            "wo": _w(ks[2], (d, d), d), "bo": jnp.zeros((1, d), F32),
            "ln1_g": jnp.ones((1, d), F32), "ln1_b": jnp.zeros((1, d), F32),
            "w1": _w(ks[3], (d, ff_dim), d), "b1": jnp.zeros((1, ff_dim), F32),
            "w2": _w(ks[4], (ff_dim, d), ff_dim), "b2": jnp.zeros((1, d), F32),
            "ln2_g": jnp.ones((1, d), F32), "ln2_b": jnp.zeros((1, d), F32),
        }

    layers = [one_layer(keys[i]) for i in range(num_layers)]
    params = {k: jnp.stack([lyr[k] for lyr in layers], axis=0) for k in layers[0]}
    params["wout"] = _w(keys[-1], (d, out_dim), d)
    params["bout"] = jnp.zeros((1, out_dim), F32)
    return params


def init_fbranch_params(key, in_dim, num_f_maps, out_dim, num_layers):
    keys = jax.random.split(key, num_layers + 2)
    wcs, bcs, w1s, b1s = [], [], [], []
    for i in range(num_layers):
        k0, k1 = jax.random.split(keys[1 + i])
        # dilated conv taps stacked row-wise: [tap(-d); tap(0); tap(+d)] -> (3*C, C)
        wcs.append(_w(k0, (3 * num_f_maps, num_f_maps), 3 * num_f_maps))
        bcs.append(jnp.zeros((1, num_f_maps), F32))
        w1s.append(_w(k1, (num_f_maps, num_f_maps), num_f_maps))
        b1s.append(jnp.zeros((1, num_f_maps), F32))
    return {
        "win": _w(keys[0], (in_dim, num_f_maps), in_dim),
        "bin": jnp.zeros((1, num_f_maps), F32),
        "wc": jnp.stack(wcs, axis=0), "bc": jnp.stack(bcs, axis=0),
        "w1": jnp.stack(w1s, axis=0), "b1": jnp.stack(b1s, axis=0),
        "wout": _w(keys[-1], (num_f_maps, out_dim), num_f_maps),
        "bout": jnp.zeros((1, out_dim), F32),
    }


def init_params(key):
    k_f2a, k_a2f, k_ab, k_fb = jax.random.split(key, 4)
    return {
        "f2a": init_x2y_params(k_f2a, x_dim=HID, y_dim=HID, y_outdim=A_DIM, head_dim=HEAD_DIM),
        "a2f": init_x2y_params(k_a2f, x_dim=HID, y_dim=HID, y_outdim=F_DIM, head_dim=HEAD_DIM),
        "abranch": init_abranch_params(k_ab, d=A_DIM, ff_dim=FF_DIM,
                                       out_dim=HID, num_layers=A_LAYERS),
        "fbranch": init_fbranch_params(k_fb, in_dim=F_DIM, num_f_maps=F_DIM,
                                       out_dim=HID, num_layers=F_LAYERS),
    }


# =============================== main =================================================

if __name__ == "__main__":
    key = jax.random.PRNGKey(0)
    k_param, k_ff, k_af, k_fp, k_ap = jax.random.split(key, 5)

    params = init_params(k_param)

    frame_feature = jax.random.normal(k_ff, (T, 1, HID), F32)
    action_feature = jax.random.normal(k_af, (M, 1, HID), F32)
    frame_pos = jax.random.normal(k_fp, (T, 1, HID), F32)
    action_pos = jax.random.normal(k_ap, (M, 1, HID), F32)

    fwd = jax.jit(update_block_forward)
    out = fwd(params, frame_feature, action_feature, frame_pos, action_pos)
    jax.block_until_ready(out)

    assert out["frame_feature"].shape == (T, 1, HID)
    assert out["action_feature"].shape == (M, 1, HID)
    assert out["frame_clogit"].shape == (T, 1, NCLASS)
    assert out["action_clogit"].shape == (M, 1, NCLASS + 1)
    assert out["f2a_attn"].shape == (M, T)
    assert out["a2f_attn"].shape == (T, M)
    assert out["f2a_attn_logit"].shape == (1, M, T)
    assert out["a2f_attn_logit"].shape == (1, T, M)
    for name, val in out.items():
        assert bool(jnp.all(jnp.isfinite(val))), f"non-finite output: {name}"
    print("KERNEL_OK")
</pallas_src>

<mosaic_0001>
module attributes {stable_mosaic.version = 11 : i64} {
  func.func @_update_block_kernel(%arg0: memref<16x32xf32, #tpu.memory_space<vmem>>, %arg1: memref<8x32xf32, #tpu.memory_space<vmem>>, %arg2: memref<16x32xf32, #tpu.memory_space<vmem>>, %arg3: memref<8x32xf32, #tpu.memory_space<vmem>>, %arg4: memref<32x32xbf16, #tpu.memory_space<vmem>>, %arg5: memref<1x32xf32, #tpu.memory_space<vmem>>, %arg6: memref<32x32xbf16, #tpu.memory_space<vmem>>, %arg7: memref<1x32xf32, #tpu.memory_space<vmem>>, %arg8: memref<32x32xbf16, #tpu.memory_space<vmem>>, %arg9: memref<1x32xf32, #tpu.memory_space<vmem>>, %arg10: memref<64x32xbf16, #tpu.memory_space<vmem>>, %arg11: memref<1x32xf32, #tpu.memory_space<vmem>>, %arg12: memref<1x32x64xbf16, #tpu.memory_space<vmem>>, %arg13: memref<1x1x64xf32, #tpu.memory_space<vmem>>, %arg14: memref<1x32x32xbf16, #tpu.memory_space<vmem>>, %arg15: memref<1x1x32xf32, #tpu.memory_space<vmem>>, %arg16: memref<1x32x32xbf16, #tpu.memory_space<vmem>>, %arg17: memref<1x1x32xf32, #tpu.memory_space<vmem>>, %arg18: memref<1x1x32xf32, #tpu.memory_space<vmem>>, %arg19: memref<1x1x32xf32, #tpu.memory_space<vmem>>, %arg20: memref<1x32x64xbf16, #tpu.memory_space<vmem>>, %arg21: memref<1x1x64xf32, #tpu.memory_space<vmem>>, %arg22: memref<1x64x32xbf16, #tpu.memory_space<vmem>>, %arg23: memref<1x1x32xf32, #tpu.memory_space<vmem>>, %arg24: memref<1x1x32xf32, #tpu.memory_space<vmem>>, %arg25: memref<1x1x32xf32, #tpu.memory_space<vmem>>, %arg26: memref<32x32xbf16, #tpu.memory_space<vmem>>, %arg27: memref<1x32xf32, #tpu.memory_space<vmem>>, %arg28: memref<32x32xbf16, #tpu.memory_space<vmem>>, %arg29: memref<1x32xf32, #tpu.memory_space<vmem>>, %arg30: memref<32x32xbf16, #tpu.memory_space<vmem>>, %arg31: memref<1x32xf32, #tpu.memory_space<vmem>>, %arg32: memref<32x32xbf16, #tpu.memory_space<vmem>>, %arg33: memref<1x32xf32, #tpu.memory_space<vmem>>, %arg34: memref<64x32xbf16, #tpu.memory_space<vmem>>, %arg35: memref<1x32xf32, #tpu.memory_space<vmem>>, %arg36: memref<32x32xbf16, #tpu.memory_space<vmem>>, %arg37: memref<1x32xf32, #tpu.memory_space<vmem>>, %arg38: memref<2x96x32xbf16, #tpu.memory_space<vmem>>, %arg39: memref<2x1x32xf32, #tpu.memory_space<vmem>>, %arg40: memref<2x32x32xbf16, #tpu.memory_space<vmem>>, %arg41: memref<2x1x32xf32, #tpu.memory_space<vmem>>, %arg42: memref<32x32xbf16, #tpu.memory_space<vmem>>, %arg43: memref<1x32xf32, #tpu.memory_space<vmem>>, %arg44: memref<16x32xf32, #tpu.memory_space<vmem>>, %arg45: memref<8x32xf32, #tpu.memory_space<vmem>>, %arg46: memref<16x4xf32, #tpu.memory_space<vmem>>, %arg47: memref<8x5xf32, #tpu.memory_space<vmem>>, %arg48: memref<8x16xf32, #tpu.memory_space<vmem>>, %arg49: memref<8x16xf32, #tpu.memory_space<vmem>>, %arg50: memref<16x8xf32, #tpu.memory_space<vmem>>, %arg51: memref<16x8xf32, #tpu.memory_space<vmem>>, %arg52: memref<32x32xf32, #tpu.memory_space<vmem>>) attributes {dimension_semantics = [], scalar_prefetch = 0 : i64, scratch_operands = 1 : i64, tpu.core_type = #tpu.core_type<tc>} {
    %c0 = arith.constant 0 : index
    %c0_0 = arith.constant 0 : index
    %0 = vector.load %arg0[%c0, %c0_0] : memref<16x32xf32, #tpu.memory_space<vmem>>, vector<16x32xf32>
    %c0_1 = arith.constant 0 : index
    %c0_2 = arith.constant 0 : index
    %1 = vector.load %arg1[%c0_1, %c0_2] : memref<8x32xf32, #tpu.memory_space<vmem>>, vector<8x32xf32>
    %c0_3 = arith.constant 0 : index
    %c0_4 = arith.constant 0 : index
    %2 = vector.load %arg2[%c0_3, %c0_4] : memref<16x32xf32, #tpu.memory_space<vmem>>, vector<16x32xf32>
    %c0_5 = arith.constant 0 : index
    %c0_6 = arith.constant 0 : index
    %3 = vector.load %arg3[%c0_5, %c0_6] : memref<8x32xf32, #tpu.memory_space<vmem>>, vector<8x32xf32>
    %c0_7 = arith.constant 0 : index
    %c0_8 = arith.constant 0 : index
    %4 = vector.load %arg4[%c0_7, %c0_8] : memref<32x32xbf16, #tpu.memory_space<vmem>>, vector<32x32xbf16>
    %c0_9 = arith.constant 0 : index
    %c0_10 = arith.constant 0 : index
    %5 = vector.load %arg5[%c0_9, %c0_10] : memref<1x32xf32, #tpu.memory_space<vmem>>, vector<1x32xf32>
    %c0_11 = arith.constant 0 : index
    %c0_12 = arith.constant 0 : index
    %6 = vector.load %arg6[%c0_11, %c0_12] : memref<32x32xbf16, #tpu.memory_space<vmem>>, vector<32x32xbf16>
    %c0_13 = arith.constant 0 : index
    %c0_14 = arith.constant 0 : index
    %7 = vector.load %arg7[%c0_13, %c0_14] : memref<1x32xf32, #tpu.memory_space<vmem>>, vector<1x32xf32>
    %c0_15 = arith.constant 0 : index
    %c0_16 = arith.constant 0 : index
    %8 = vector.load %arg8[%c0_15, %c0_16] : memref<32x32xbf16, #tpu.memory_space<vmem>>, vector<32x32xbf16>
    %c0_17 = arith.constant 0 : index
    %c0_18 = arith.constant 0 : index
    %9 = vector.load %arg9[%c0_17, %c0_18] : memref<1x32xf32, #tpu.memory_space<vmem>>, vector<1x32xf32>
    %c0_19 = arith.constant 0 : index
    %c0_20 = arith.constant 0 : index
    %10 = vector.load %arg10[%c0_19, %c0_20] : memref<64x32xbf16, #tpu.memory_space<vmem>>, vector<64x32xbf16>
    %c0_21 = arith.constant 0 : index
    %c0_22 = arith.constant 0 : index
    %11 = vector.load %arg11[%c0_21, %c0_22] : memref<1x32xf32, #tpu.memory_space<vmem>>, vector<1x32xf32>
    %12 = arith.addf %1, %3 : vector<8x32xf32>
    %13 = arith.truncf %12 : vector<8x32xf32> to vector<8x32xbf16>
    %cst = arith.constant dense<0.000000e+00> : vector<8x32xf32>
    %14 = tpu.matmul %13, %4, %cst {dimension_numbers = #tpu.dot_dimension_numbers<[1], [0], [0], [1], [0, 0, 1, 1], [], []>} : vector<8x32xbf16>, vector<32x32xbf16>, vector<8x32xf32> -> vector<8x32xf32>
    %15 = vector.broadcast %5 : vector<1x32xf32> to vector<8x32xf32>
    %16 = arith.addf %14, %15 : vector<8x32xf32>
    %17 = arith.addf %0, %2 : vector<16x32xf32>
    %18 = arith.truncf %17 : vector<16x32xf32> to vector<16x32xbf16>
    %cst_23 = arith.constant dense<0.000000e+00> : vector<16x32xf32>
    %19 = tpu.matmul %18, %6, %cst_23 {dimension_numbers = #tpu.dot_dimension_numbers<[1], [0], [0], [1], [0, 0, 1, 1], [], []>} : vector<16x32xbf16>, vector<32x32xbf16>, vector<16x32xf32> -> vector<16x32xf32>
    %20 = vector.broadcast %7 : vector<1x32xf32> to vector<16x32xf32>
    %21 = arith.addf %19, %20 : vector<16x32xf32>
    %22 = arith.truncf %0 : vector<16x32xf32> to vector<16x32xbf16>
    %cst_24 = arith.constant dense<0.000000e+00> : vector<16x32xf32>
    %23 = tpu.matmul %22, %8, %cst_24 {dimension_numbers = #tpu.dot_dimension_numbers<[1], [0], [0], [1], [0, 0, 1, 1], [], []>} : vector<16x32xbf16>, vector<32x32xbf16>, vector<16x32xf32> -> vector<16x32xf32>
    %24 = vector.broadcast %9 : vector<1x32xf32> to vector<16x32xf32>
    %25 = arith.addf %23, %24 : vector<16x32xf32>
    %26 = arith.truncf %16 : vector<8x32xf32> to vector<8x32xbf16>
    %27 = arith.truncf %21 : vector<16x32xf32> to vector<16x32xbf16>
    %cst_25 = arith.constant dense<0.000000e+00> : vector<8x16xf32>
    %28 = tpu.matmul %26, %27, %cst_25 {dimension_numbers = #tpu.dot_dimension_numbers<[1], [1], [0], [0], [0, 0, 1, 0], [], []>} : vector<8x32xbf16>, vector<16x32xbf16>, vector<8x16xf32> -> vector<8x16xf32>
    %cst_26 = arith.constant 0.176776692 : f32
    %29 = vector.broadcast %cst_26 : f32 to vector<8x16xf32>
    %30 = arith.mulf %28, %29 : vector<8x16xf32>
    %cst_27 = arith.constant dense<0xFF800000> : vector<8xf32>
    %31 = vector.multi_reduction <maximumf>, %30, %cst_27 [1] : vector<8x16xf32> to vector<8xf32>
    %32 = vector.shape_cast %31 : vector<8xf32> to vector<8x1xf32>
    %33 = vector.broadcast %32 : vector<8x1xf32> to vector<8x16xf32>
    %34 = arith.subf %30, %33 : vector<8x16xf32>
    %35 = math.exp %34 : vector<8x16xf32>
    %cst_28 = arith.constant dense<0.000000e+00> : vector<8xf32>
    %36 = vector.multi_reduction <add>, %35, %cst_28 [1] : vector<8x16xf32> to vector<8xf32>
    %37 = vector.shape_cast %36 : vector<8xf32> to vector<8x1xf32>
    %38 = tpu.reciprocal %37 {approx = true} : vector<8x1xf32> -> vector<8x1xf32>
    %39 = vector.broadcast %38 : vector<8x1xf32> to vector<8x16xf32>
    %40 = arith.mulf %35, %39 : vector<8x16xf32>
    %41 = arith.truncf %40 : vector<8x16xf32> to vector<8x16xbf16>
    %42 = arith.truncf %25 : vector<16x32xf32> to vector<16x32xbf16>
    %cst_29 = arith.constant dense<0.000000e+00> : vector<8x32xf32>
    %43 = tpu.matmul %41, %42, %cst_29 {dimension_numbers = #tpu.dot_dimension_numbers<[1], [0], [0], [1], [0, 0, 1, 1], [], []>} : vector<8x16xbf16>, vector<16x32xbf16>, vector<8x32xf32> -> vector<8x32xf32>
    %44 = tpu.concatenate %1, %43 in 1 : vector<8x32xf32>, vector<8x32xf32> -> vector<8x64xf32>
    %45 = arith.truncf %44 : vector<8x64xf32> to vector<8x64xbf16>
    %cst_30 = arith.constant dense<0.000000e+00> : vector<8x32xf32>
    %46 = tpu.matmul %45, %10, %cst_30 {dimension_numbers = #tpu.dot_dimension_numbers<[1], [0], [0], [1], [0, 0, 1, 1], [], []>} : vector<8x64xbf16>, vector<64x32xbf16>, vector<8x32xf32> -> vector<8x32xf32>
    %47 = vector.broadcast %11 : vector<1x32xf32> to vector<8x32xf32>
    %48 = arith.addf %46, %47 : vector<8x32xf32>
    %c0_31 = arith.constant 0 : index
    %c0_32 = arith.constant 0 : index
    %49 = vector.load %arg48[%c0_31, %c0_32] : memref<8x16xf32, #tpu.memory_space<vmem>>, vector<8x16xf32>
    tpu.vector_store %arg48[%c0_31, %c0_32], %40 {strides = array<i32>} : memref<8x16xf32, #tpu.memory_space<vmem>>, vector<8x16xf32>,
    %c0_33 = arith.constant 0 : index
    %c0_34 = arith.constant 0 : index
    %50 = vector.load %arg49[%c0_33, %c0_34] : memref<8x16xf32, #tpu.memory_space<vmem>>, vector<8x16xf32>
    tpu.vector_store %arg49[%c0_33, %c0_34], %30 {strides = array<i32>} : memref<8x16xf32, #tpu.memory_space<vmem>>, vector<8x16xf32>,
    %c0_35 = arith.constant 0 : index
    %c0_36 = arith.constant 0 : index
    %c0_37 = arith.constant 0 : index
    %51 = vector.load %arg12[%c0_35, %c0_36, %c0_37] : memref<1x32x64xbf16, #tpu.memory_space<vmem>>, vector<1x32x64xbf16>
    %52 = vector.shape_cast %51 : vector<1x32x64xbf16> to vector<32x64xbf16>
    %c0_38 = arith.constant 0 : index
    %c0_39 = arith.constant 0 : index
    %c0_40 = arith.constant 0 : index
    %53 = vector.load %arg13[%c0_38, %c0_39, %c0_40] : memref<1x1x64xf32, #tpu.memory_space<vmem>>, vector<1x1x64xf32>
    %54 = vector.shape_cast %53 : vector<1x1x64xf32> to vector<1x64xf32>
    %c0_41 = arith.constant 0 : index
    %c0_42 = arith.constant 0 : index
    %c0_43 = arith.constant 0 : index
    %55 = vector.load %arg14[%c0_41, %c0_42, %c0_43] : memref<1x32x32xbf16, #tpu.memory_space<vmem>>, vector<1x32x32xbf16>
    %56 = vector.shape_cast %55 : vector<1x32x32xbf16> to vector<32x32xbf16>
    %c0_44 = arith.constant 0 : index
    %c0_45 = arith.constant 0 : index
    %c0_46 = arith.constant 0 : index
    %57 = vector.load %arg15[%c0_44, %c0_45, %c0_46] : memref<1x1x32xf32, #tpu.memory_space<vmem>>, vector<1x1x32xf32>
    %58 = vector.shape_cast %57 : vector<1x1x32xf32> to vector<1x32xf32>
    %c0_47 = arith.constant 0 : index
    %c0_48 = arith.constant 0 : index
    %c0_49 = arith.constant 0 : index
    %59 = vector.load %arg16[%c0_47, %c0_48, %c0_49] : memref<1x32x32xbf16, #tpu.memory_space<vmem>>, vector<1x32x32xbf16>
    %60 = vector.shape_cast %59 : vector<1x32x32xbf16> to vector<32x32xbf16>
    %c0_50 = arith.constant 0 : index
    %c0_51 = arith.constant 0 : index
    %c0_52 = arith.constant 0 : index
    %61 = vector.load %arg17[%c0_50, %c0_51, %c0_52] : memref<1x1x32xf32, #tpu.memory_space<vmem>>, vector<1x1x32xf32>
    %62 = vector.shape_cast %61 : vector<1x1x32xf32> to vector<1x32xf32>
    %c0_53 = arith.constant 0 : index
    %c0_54 = arith.constant 0 : index
    %c0_55 = arith.constant 0 : index
    %63 = vector.load %arg18[%c0_53, %c0_54, %c0_55] : memref<1x1x32xf32, #tpu.memory_space<vmem>>, vector<1x1x32xf32>
    %64 = vector.shape_cast %63 : vector<1x1x32xf32> to vector<1x32xf32>
    %c0_56 = arith.constant 0 : index
    %c0_57 = arith.constant 0 : index
    %c0_58 = arith.constant 0 : index
    %65 = vector.load %arg19[%c0_56, %c0_57, %c0_58] : memref<1x1x32xf32, #tpu.memory_space<vmem>>, vector<1x1x32xf32>
    %66 = vector.shape_cast %65 : vector<1x1x32xf32> to vector<1x32xf32>
    %c0_59 = arith.constant 0 : index
    %c0_60 = arith.constant 0 : index
    %c0_61 = arith.constant 0 : index
    %67 = vector.load %arg20[%c0_59, %c0_60, %c0_61] : memref<1x32x64xbf16, #tpu.memory_space<vmem>>, vector<1x32x64xbf16>
    %68 = vector.shape_cast %67 : vector<1x32x64xbf16> to vector<32x64xbf16>
    %c0_62 = arith.constant 0 : index
    %c0_63 = arith.constant 0 : index
    %c0_64 = arith.constant 0 : index
    %69 = vector.load %arg21[%c0_62, %c0_63, %c0_64] : memref<1x1x64xf32, #tpu.memory_space<vmem>>, vector<1x1x64xf32>
    %70 = vector.shape_cast %69 : vector<1x1x64xf32> to vector<1x64xf32>
    %c0_65 = arith.constant 0 : index
    %c0_66 = arith.constant 0 : index
    %c0_67 = arith.constant 0 : index
    %71 = vector.load %arg22[%c0_65, %c0_66, %c0_67] : memref<1x64x32xbf16, #tpu.memory_space<vmem>>, vector<1x64x32xbf16>
    %72 = vector.shape_cast %71 : vector<1x64x32xbf16> to vector<64x32xbf16>
    %c0_68 = arith.constant 0 : index
    %c0_69 = arith.constant 0 : index
    %c0_70 = arith.constant 0 : index
    %73 = vector.load %arg23[%c0_68, %c0_69, %c0_70] : memref<1x1x32xf32, #tpu.memory_space<vmem>>, vector<1x1x32xf32>
    %74 = vector.shape_cast %73 : vector<1x1x32xf32> to vector<1x32xf32>
    %c0_71 = arith.constant 0 : index
    %c0_72 = arith.constant 0 : index
    %c0_73 = arith.constant 0 : index
    %75 = vector.load %arg24[%c0_71, %c0_72, %c0_73] : memref<1x1x32xf32, #tpu.memory_space<vmem>>, vector<1x1x32xf32>
    %76 = vector.shape_cast %75 : vector<1x1x32xf32> to vector<1x32xf32>
    %c0_74 = arith.constant 0 : index
    %c0_75 = arith.constant 0 : index
    %c0_76 = arith.constant 0 : index
    %77 = vector.load %arg25[%c0_74, %c0_75, %c0_76] : memref<1x1x32xf32, #tpu.memory_space<vmem>>, vector<1x1x32xf32>
    %78 = vector.shape_cast %77 : vector<1x1x32xf32> to vector<1x32xf32>
    %79 = arith.addf %48, %3 : vector<8x32xf32>
    %80 = arith.truncf %79 : vector<8x32xf32> to vector<8x32xbf16>
    %cst_77 = arith.constant dense<0.000000e+00> : vector<8x64xf32>
    %81 = tpu.matmul %80, %52, %cst_77 {dimension_numbers = #tpu.dot_dimension_numbers<[1], [0], [0], [1], [0, 0, 1, 1], [], []>} : vector<8x32xbf16>, vector<32x64xbf16>, vector<8x64xf32> -> vector<8x64xf32>
    %82 = vector.broadcast %54 : vector<1x64xf32> to vector<8x64xf32>
    %83 = arith.addf %81, %82 : vector<8x64xf32>
    %84 = arith.truncf %48 : vector<8x32xf32> to vector<8x32xbf16>
    %cst_78 = arith.constant dense<0.000000e+00> : vector<8x32xf32>
    %85 = tpu.matmul %84, %56, %cst_78 {dimension_numbers = #tpu.dot_dimension_numbers<[1], [0], [0], [1], [0, 0, 1, 1], [], []>} : vector<8x32xbf16>, vector<32x32xbf16>, vector<8x32xf32> -> vector<8x32xf32>
    %86 = vector.broadcast %58 : vector<1x32xf32> to vector<8x32xf32>
    %87 = arith.addf %85, %86 : vector<8x32xf32>
    %88 = vector.extract_strided_slice %83 {offsets = [0, 0], sizes = [8, 32], strides = [1, 1]} : vector<8x64xf32> to vector<8x32xf32>
    %89 = vector.extract_strided_slice %83 {offsets = [0, 32], sizes = [8, 32], strides = [1, 1]} : vector<8x64xf32> to vector<8x32xf32>
    %90 = vector.extract_strided_slice %88 {offsets = [0, 0], sizes = [8, 8], strides = [1, 1]} : vector<8x32xf32> to vector<8x8xf32>
    %91 = vector.extract_strided_slice %89 {offsets = [0, 0], sizes = [8, 8], strides = [1, 1]} : vector<8x32xf32> to vector<8x8xf32>
    %92 = arith.truncf %90 : vector<8x8xf32> to vector<8x8xbf16>
    %93 = arith.truncf %91 : vector<8x8xf32> to vector<8x8xbf16>
    %cst_79 = arith.constant dense<0.000000e+00> : vector<8x8xf32>
    %94 = tpu.matmul %92, %93, %cst_79 {dimension_numbers = #tpu.dot_dimension_numbers<[1], [1], [0], [0], [0, 0, 1, 0], [], []>} : vector<8x8xbf16>, vector<8x8xbf16>, vector<8x8xf32> -> vector<8x8xf32>
    %cst_80 = arith.constant 0.353553385 : f32
    %95 = vector.broadcast %cst_80 : f32 to vector<8x8xf32>
    %96 = arith.mulf %94, %95 : vector<8x8xf32>
    %cst_81 = arith.constant dense<0xFF800000> : vector<8xf32>
    %97 = vector.multi_reduction <maximumf>, %96, %cst_81 [1] : vector<8x8xf32> to vector<8xf32>
    %98 = vector.shape_cast %97 : vector<8xf32> to vector<8x1xf32>
    %99 = vector.broadcast %98 : vector<8x1xf32> to vector<8x8xf32>
    %100 = arith.subf %96, %99 : vector<8x8xf32>
    %101 = math.exp %100 : vector<8x8xf32>
    %cst_82 = arith.constant dense<0.000000e+00> : vector<8xf32>
    %102 = vector.multi_reduction <add>, %101, %cst_82 [1] : vector<8x8xf32> to vector<8xf32>
    %103 = vector.shape_cast %102 : vector<8xf32> to vector<8x1xf32>
    %104 = tpu.reciprocal %103 {approx = true} : vector<8x1xf32> -> vector<8x1xf32>
    %105 = vector.broadcast %104 : vector<8x1xf32> to vector<8x8xf32>
    %106 = arith.mulf %101, %105 : vector<8x8xf32>
    %107 = vector.extract_strided_slice %87 {offsets = [0, 0], sizes = [8, 8], strides = [1, 1]} : vector<8x32xf32> to vector<8x8xf32>
    %108 = arith.truncf %106 : vector<8x8xf32> to vector<8x8xbf16>
    %109 = arith.truncf %107 : vector<8x8xf32> to vector<8x8xbf16>
    %cst_83 = arith.constant dense<0.000000e+00> : vector<8x8xf32>
    %110 = tpu.matmul %108, %109, %cst_83 {dimension_numbers = #tpu.dot_dimension_numbers<[1], [0], [0], [1], [0, 0, 1, 1], [], []>} : vector<8x8xbf16>, vector<8x8xbf16>, vector<8x8xf32> -> vector<8x8xf32>
    %111 = vector.extract_strided_slice %88 {offsets = [0, 8], sizes = [8, 8], strides = [1, 1]} : vector<8x32xf32> to vector<8x8xf32>
    %112 = vector.extract_strided_slice %89 {offsets = [0, 8], sizes = [8, 8], strides = [1, 1]} : vector<8x32xf32> to vector<8x8xf32>
    %113 = arith.truncf %111 : vector<8x8xf32> to vector<8x8xbf16>
    %114 = arith.truncf %112 : vector<8x8xf32> to vector<8x8xbf16>
    %cst_84 = arith.constant dense<0.000000e+00> : vector<8x8xf32>
    %115 = tpu.matmul %113, %114, %cst_84 {dimension_numbers = #tpu.dot_dimension_numbers<[1], [1], [0], [0], [0, 0, 1, 0], [], []>} : vector<8x8xbf16>, vector<8x8xbf16>, vector<8x8xf32> -> vector<8x8xf32>
    %cst_85 = arith.constant 0.353553385 : f32
    %116 = vector.broadcast %cst_85 : f32 to vector<8x8xf32>
    %117 = arith.mulf %115, %116 : vector<8x8xf32>
    %cst_86 = arith.constant dense<0xFF800000> : vector<8xf32>
    %118 = vector.multi_reduction <maximumf>, %117, %cst_86 [1] : vector<8x8xf32> to vector<8xf32>
    %119 = vector.shape_cast %118 : vector<8xf32> to vector<8x1xf32>
    %120 = vector.broadcast %119 : vector<8x1xf32> to vector<8x8xf32>
    %121 = arith.subf %117, %120 : vector<8x8xf32>
    %122 = math.exp %121 : vector<8x8xf32>
    %cst_87 = arith.constant dense<0.000000e+00> : vector<8xf32>
    %123 = vector.multi_reduction <add>, %122, %cst_87 [1] : vector<8x8xf32> to vector<8xf32>
    %124 = vector.shape_cast %123 : vector<8xf32> to vector<8x1xf32>
    %125 = tpu.reciprocal %124 {approx = true} : vector<8x1xf32> -> vector<8x1xf32>
    %126 = vector.broadcast %125 : vector<8x1xf32> to vector<8x8xf32>
    %127 = arith.mulf %122, %126 : vector<8x8xf32>
    %128 = vector.extract_strided_slice %87 {offsets = [0, 8], sizes = [8, 8], strides = [1, 1]} : vector<8x32xf32> to vector<8x8xf32>
    %129 = arith.truncf %127 : vector<8x8xf32> to vector<8x8xbf16>
    %130 = arith.truncf %128 : vector<8x8xf32> to vector<8x8xbf16>
    %cst_88 = arith.constant dense<0.000000e+00> : vector<8x8xf32>
    %131 = tpu.matmul %129, %130, %cst_88 {dimension_numbers = #tpu.dot_dimension_numbers<[1], [0], [0], [1], [0, 0, 1, 1], [], []>} : vector<8x8xbf16>, vector<8x8xbf16>, vector<8x8xf32> -> vector<8x8xf32>
    %132 = vector.extract_strided_slice %88 {offsets = [0, 16], sizes = [8, 8], strides = [1, 1]} : vector<8x32xf32> to vector<8x8xf32>
    %133 = vector.extract_strided_slice %89 {offsets = [0, 16], sizes = [8, 8], strides = [1, 1]} : vector<8x32xf32> to vector<8x8xf32>
    %134 = arith.truncf %132 : vector<8x8xf32> to vector<8x8xbf16>
    %135 = arith.truncf %133 : vector<8x8xf32> to vector<8x8xbf16>
    %cst_89 = arith.constant dense<0.000000e+00> : vector<8x8xf32>
    %136 = tpu.matmul %134, %135, %cst_89 {dimension_numbers = #tpu.dot_dimension_numbers<[1], [1], [0], [0], [0, 0, 1, 0], [], []>} : vector<8x8xbf16>, vector<8x8xbf16>, vector<8x8xf32> -> vector<8x8xf32>
    %cst_90 = arith.constant 0.353553385 : f32
    %137 = vector.broadcast %cst_90 : f32 to vector<8x8xf32>
    %138 = arith.mulf %136, %137 : vector<8x8xf32>
    %cst_91 = arith.constant dense<0xFF800000> : vector<8xf32>
    %139 = vector.multi_reduction <maximumf>, %138, %cst_91 [1] : vector<8x8xf32> to vector<8xf32>
    %140 = vector.shape_cast %139 : vector<8xf32> to vector<8x1xf32>
    %141 = vector.broadcast %140 : vector<8x1xf32> to vector<8x8xf32>
    %142 = arith.subf %138, %141 : vector<8x8xf32>
    %143 = math.exp %142 : vector<8x8xf32>
    %cst_92 = arith.constant dense<0.000000e+00> : vector<8xf32>
    %144 = vector.multi_reduction <add>, %143, %cst_92 [1] : vector<8x8xf32> to vector<8xf32>
    %145 = vector.shape_cast %144 : vector<8xf32> to vector<8x1xf32>
    %146 = tpu.reciprocal %145 {approx = true} : vector<8x1xf32> -> vector<8x1xf32>
    %147 = vector.broadcast %146 : vector<8x1xf32> to vector<8x8xf32>
    %148 = arith.mulf %143, %147 : vector<8x8xf32>
    %149 = vector.extract_strided_slice %87 {offsets = [0, 16], sizes = [8, 8], strides = [1, 1]} : vector<8x32xf32> to vector<8x8xf32>
    %150 = arith.truncf %148 : vector<8x8xf32> to vector<8x8xbf16>
    %151 = arith.truncf %149 : vector<8x8xf32> to vector<8x8xbf16>
    %cst_93 = arith.constant dense<0.000000e+00> : vector<8x8xf32>
    %152 = tpu.matmul %150, %151, %cst_93 {dimension_numbers = #tpu.dot_dimension_numbers<[1], [0], [0], [1], [0, 0, 1, 1], [], []>} : vector<8x8xbf16>, vector<8x8xbf16>, vector<8x8xf32> -> vector<8x8xf32>
    %153 = vector.extract_strided_slice %88 {offsets = [0, 24], sizes = [8, 8], strides = [1, 1]} : vector<8x32xf32> to vector<8x8xf32>
    %154 = vector.extract_strided_slice %89 {offsets = [0, 24], sizes = [8, 8], strides = [1, 1]} : vector<8x32xf32> to vector<8x8xf32>
    %155 = arith.truncf %153 : vector<8x8xf32> to vector<8x8xbf16>
    %156 = arith.truncf %154 : vector<8x8xf32> to vector<8x8xbf16>
    %cst_94 = arith.constant dense<0.000000e+00> : vector<8x8xf32>
    %157 = tpu.matmul %155, %156, %cst_94 {dimension_numbers = #tpu.dot_dimension_numbers<[1], [1], [0], [0], [0, 0, 1, 0], [], []>} : vector<8x8xbf16>, vector<8x8xbf16>, vector<8x8xf32> -> vector<8x8xf32>
    %cst_95 = arith.constant 0.353553385 : f32
    %158 = vector.broadcast %cst_95 : f32 to vector<8x8xf32>
    %159 = arith.mulf %157, %158 : vector<8x8xf32>
    %cst_96 = arith.constant dense<0xFF800000> : vector<8xf32>
    %160 = vector.multi_reduction <maximumf>, %159, %cst_96 [1] : vector<8x8xf32> to vector<8xf32>
    %161 = vector.shape_cast %160 : vector<8xf32> to vector<8x1xf32>
    %162 = vector.broadcast %161 : vector<8x1xf32> to vector<8x8xf32>
    %163 = arith.subf %159, %162 : vector<8x8xf32>
    %164 = math.exp %163 : vector<8x8xf32>
    %cst_97 = arith.constant dense<0.000000e+00> : vector<8xf32>
    %165 = vector.multi_reduction <add>, %164, %cst_97 [1] : vector<8x8xf32> to vector<8xf32>
    %166 = vector.shape_cast %165 : vector<8xf32> to vector<8x1xf32>
    %167 = tpu.reciprocal %166 {approx = true} : vector<8x1xf32> -> vector<8x1xf32>
    %168 = vector.broadcast %167 : vector<8x1xf32> to vector<8x8xf32>
    %169 = arith.mulf %164, %168 : vector<8x8xf32>
    %170 = vector.extract_strided_slice %87 {offsets = [0, 24], sizes = [8, 8], strides = [1, 1]} : vector<8x32xf32> to vector<8x8xf32>
    %171 = arith.truncf %169 : vector<8x8xf32> to vector<8x8xbf16>
    %172 = arith.truncf %170 : vector<8x8xf32> to vector<8x8xbf16>
    %cst_98 = arith.constant dense<0.000000e+00> : vector<8x8xf32>
    %173 = tpu.matmul %171, %172, %cst_98 {dimension_numbers = #tpu.dot_dimension_numbers<[1], [0], [0], [1], [0, 0, 1, 1], [], []>} : vector<8x8xbf16>, vector<8x8xbf16>, vector<8x8xf32> -> vector<8x8xf32>
    %174 = tpu.concatenate %110, %131, %152, %173 in 1 : vector<8x8xf32>, vector<8x8xf32>, vector<8x8xf32>, vector<8x8xf32> -> vector<8x32xf32>
    %175 = arith.truncf %174 : vector<8x32xf32> to vector<8x32xbf16>
    %cst_99 = arith.constant dense<0.000000e+00> : vector<8x32xf32>
    %176 = tpu.matmul %175, %60, %cst_99 {dimension_numbers = #tpu.dot_dimension_numbers<[1], [0], [0], [1], [0, 0, 1, 1], [], []>} : vector<8x32xbf16>, vector<32x32xbf16>, vector<8x32xf32> -> vector<8x32xf32>
    %177 = vector.broadcast %62 : vector<1x32xf32> to vector<8x32xf32>
    %178 = arith.addf %176, %177 : vector<8x32xf32>
    %179 = arith.addf %48, %178 : vector<8x32xf32>
    %cst_100 = arith.constant dense<0.000000e+00> : vector<8xf32>
    %180 = vector.multi_reduction <add>, %179, %cst_100 [1] : vector<8x32xf32> to vector<8xf32>
    %181 = vector.shape_cast %180 : vector<8xf32> to vector<8x1xf32>
    %cst_101 = arith.constant 3.200000e+01 : f32
    %182 = vector.broadcast %cst_101 : f32 to vector<8x1xf32>
    %183 = arith.divf %181, %182 : vector<8x1xf32>
    %184 = vector.broadcast %183 : vector<8x1xf32> to vector<8x32xf32>
    %185 = arith.subf %179, %184 : vector<8x32xf32>
    %186 = arith.mulf %185, %185 : vector<8x32xf32>
    %cst_102 = arith.constant dense<0.000000e+00> : vector<8xf32>
    %187 = vector.multi_reduction <add>, %186, %cst_102 [1] : vector<8x32xf32> to vector<8xf32>
    %188 = vector.shape_cast %187 : vector<8xf32> to vector<8x1xf32>
    %cst_103 = arith.constant 3.200000e+01 : f32
    %189 = vector.broadcast %cst_103 : f32 to vector<8x1xf32>
    %190 = arith.divf %188, %189 : vector<8x1xf32>
    %191 = vector.broadcast %183 : vector<8x1xf32> to vector<8x32xf32>
    %192 = arith.subf %179, %191 : vector<8x32xf32>
    %cst_104 = arith.constant 9.99999974E-6 : f32
    %193 = vector.broadcast %cst_104 : f32 to vector<8x1xf32>
    %194 = arith.addf %190, %193 : vector<8x1xf32>
    %195 = math.rsqrt %194 : vector<8x1xf32>
    %196 = vector.broadcast %195 : vector<8x1xf32> to vector<8x32xf32>
    %197 = arith.mulf %192, %196 : vector<8x32xf32>
    %198 = vector.broadcast %64 : vector<1x32xf32> to vector<8x32xf32>
    %199 = arith.mulf %197, %198 : vector<8x32xf32>
    %200 = vector.broadcast %66 : vector<1x32xf32> to vector<8x32xf32>
    %201 = arith.addf %199, %200 : vector<8x32xf32>
    %202 = arith.truncf %201 : vector<8x32xf32> to vector<8x32xbf16>
    %cst_105 = arith.constant dense<0.000000e+00> : vector<8x64xf32>
    %203 = tpu.matmul %202, %68, %cst_105 {dimension_numbers = #tpu.dot_dimension_numbers<[1], [0], [0], [1], [0, 0, 1, 1], [], []>} : vector<8x32xbf16>, vector<32x64xbf16>, vector<8x64xf32> -> vector<8x64xf32>
    %204 = vector.broadcast %70 : vector<1x64xf32> to vector<8x64xf32>
    %205 = arith.addf %203, %204 : vector<8x64xf32>
    %cst_106 = arith.constant 0.000000e+00 : f32
    %206 = vector.broadcast %cst_106 : f32 to vector<8x64xf32>
    %207 = arith.maximumf %205, %206 : vector<8x64xf32>
    %208 = arith.truncf %207 : vector<8x64xf32> to vector<8x64xbf16>
    %cst_107 = arith.constant dense<0.000000e+00> : vector<8x32xf32>
    %209 = tpu.matmul %208, %72, %cst_107 {dimension_numbers = #tpu.dot_dimension_numbers<[1], [0], [0], [1], [0, 0, 1, 1], [], []>} : vector<8x64xbf16>, vector<64x32xbf16>, vector<8x32xf32> -> vector<8x32xf32>
    %210 = arith.addf %201, %209 : vector<8x32xf32>
    %211 = vector.broadcast %74 : vector<1x32xf32> to vector<8x32xf32>
    %212 = arith.addf %210, %211 : vector<8x32xf32>
    %cst_108 = arith.constant dense<0.000000e+00> : vector<8xf32>
    %213 = vector.multi_reduction <add>, %212, %cst_108 [1] : vector<8x32xf32> to vector<8xf32>
    %214 = vector.shape_cast %213 : vector<8xf32> to vector<8x1xf32>
    %cst_109 = arith.constant 3.200000e+01 : f32
    %215 = vector.broadcast %cst_109 : f32 to vector<8x1xf32>
    %216 = arith.divf %214, %215 : vector<8x1xf32>
    %217 = vector.broadcast %216 : vector<8x1xf32> to vector<8x32xf32>
    %218 = arith.subf %212, %217 : vector<8x32xf32>
    %219 = arith.mulf %218, %218 : vector<8x32xf32>
    %cst_110 = arith.constant dense<0.000000e+00> : vector<8xf32>
    %220 = vector.multi_reduction <add>, %219, %cst_110 [1] : vector<8x32xf32> to vector<8xf32>
    %221 = vector.shape_cast %220 : vector<8xf32> to vector<8x1xf32>
    %cst_111 = arith.constant 3.200000e+01 : f32
    %222 = vector.broadcast %cst_111 : f32 to vector<8x1xf32>
    %223 = arith.divf %221, %222 : vector<8x1xf32>
    %224 = vector.broadcast %216 : vector<8x1xf32> to vector<8x32xf32>
    %225 = arith.subf %212, %224 : vector<8x32xf32>
    %cst_112 = arith.constant 9.99999974E-6 : f32
    %226 = vector.broadcast %cst_112 : f32 to vector<8x1xf32>
    %227 = arith.addf %223, %226 : vector<8x1xf32>
    %228 = math.rsqrt %227 : vector<8x1xf32>
    %229 = vector.broadcast %228 : vector<8x1xf32> to vector<8x32xf32>
    %230 = arith.mulf %225, %229 : vector<8x32xf32>
    %231 = vector.broadcast %76 : vector<1x32xf32> to vector<8x32xf32>
    %232 = arith.mulf %230, %231 : vector<8x32xf32>
    %233 = vector.broadcast %78 : vector<1x32xf32> to vector<8x32xf32>
    %234 = arith.addf %232, %233 : vector<8x32xf32>
    %c0_113 = arith.constant 0 : index
    %c0_114 = arith.constant 0 : index
    %235 = vector.load %arg26[%c0_113, %c0_114] : memref<32x32xbf16, #tpu.memory_space<vmem>>, vector<32x32xbf16>
    %236 = arith.truncf %234 : vector<8x32xf32> to vector<8x32xbf16>
    %cst_115 = arith.constant dense<0.000000e+00> : vector<8x32xf32>
    %237 = tpu.matmul %236, %235, %cst_115 {dimension_numbers = #tpu.dot_dimension_numbers<[1], [0], [0], [1], [0, 0, 1, 1], [], []>} : vector<8x32xbf16>, vector<32x32xbf16>, vector<8x32xf32> -> vector<8x32xf32>
    %c0_116 = arith.constant 0 : index
    %c0_117 = arith.constant 0 : index
    %238 = vector.load %arg27[%c0_116, %c0_117] : memref<1x32xf32, #tpu.memory_space<vmem>>, vector<1x32xf32>
    %239 = vector.broadcast %238 : vector<1x32xf32> to vector<8x32xf32>
    %240 = arith.addf %237, %239 : vector<8x32xf32>
    %241 = tpu.iota {dimensions = array<i32: 1>} : vector<8x32xi32>
    %c27_i32 = arith.constant 27 : i32
    %242 = vector.broadcast %c27_i32 : i32 to vector<8x32xi32>
    %243 = arith.cmpi sge, %241, %242 : vector<8x32xi32>
    %cst_118 = arith.constant -1.000000e+30 : f32
    %244 = vector.broadcast %cst_118 : f32 to vector<8x32xf32>
    %245 = arith.select %243, %240, %244 : vector<8x32xi1>, vector<8x32xf32>
    %cst_119 = arith.constant dense<0xFF800000> : vector<8xf32>
    %246 = vector.multi_reduction <maximumf>, %245, %cst_119 [1] : vector<8x32xf32> to vector<8xf32>
    %247 = vector.shape_cast %246 : vector<8xf32> to vector<8x1xf32>
    %248 = vector.broadcast %247 : vector<8x1xf32> to vector<8x32xf32>
    %249 = arith.subf %245, %248 : vector<8x32xf32>
    %250 = math.exp %249 : vector<8x32xf32>
    %cst_120 = arith.constant dense<0.000000e+00> : vector<8xf32>
    %251 = vector.multi_reduction <add>, %250, %cst_120 [1] : vector<8x32xf32> to vector<8xf32>
    %252 = vector.shape_cast %251 : vector<8xf32> to vector<8x1xf32>
    %253 = tpu.reciprocal %252 {approx = true} : vector<8x1xf32> -> vector<8x1xf32>
    %254 = vector.broadcast %253 : vector<8x1xf32> to vector<8x32xf32>
    %255 = arith.mulf %250, %254 : vector<8x32xf32>
    %256 = arith.select %243, %255, %240 : vector<8x32xi1>, vector<8x32xf32>
    %257 = vector.extract_strided_slice %240 {offsets = [0, 27], sizes = [8, 5], strides = [1, 1]} : vector<8x32xf32> to vector<8x5xf32>
    %c0_121 = arith.constant 0 : index
    %c0_122 = arith.constant 0 : index
    %258 = vector.load %arg45[%c0_121, %c0_122] : memref<8x32xf32, #tpu.memory_space<vmem>>, vector<8x32xf32>
    tpu.vector_store %arg45[%c0_121, %c0_122], %256 {strides = array<i32>} : memref<8x32xf32, #tpu.memory_space<vmem>>, vector<8x32xf32>,
    %c0_123 = arith.constant 0 : index
    %c0_124 = arith.constant 0 : index
    %259 = vector.load %arg47[%c0_123, %c0_124] : memref<8x5xf32, #tpu.memory_space<vmem>>, vector<8x5xf32>
    tpu.vector_store %arg47[%c0_123, %c0_124], %257 {strides = array<i32>} : memref<8x5xf32, #tpu.memory_space<vmem>>, vector<8x5xf32>,
    %c0_125 = arith.constant 0 : index
    %c0_126 = arith.constant 0 : index
    %260 = vector.load %arg28[%c0_125, %c0_126] : memref<32x32xbf16, #tpu.memory_space<vmem>>, vector<32x32xbf16>
    %c0_127 = arith.constant 0 : index
    %c0_128 = arith.constant 0 : index
    %261 = vector.load %arg29[%c0_127, %c0_128] : memref<1x32xf32, #tpu.memory_space<vmem>>, vector<1x32xf32>
    %c0_129 = arith.constant 0 : index
    %c0_130 = arith.constant 0 : index
    %262 = vector.load %arg30[%c0_129, %c0_130] : memref<32x32xbf16, #tpu.memory_space<vmem>>, vector<32x32xbf16>
    %c0_131 = arith.constant 0 : index
    %c0_132 = arith.constant 0 : index
    %263 = vector.load %arg31[%c0_131, %c0_132] : memref<1x32xf32, #tpu.memory_space<vmem>>, vector<1x32xf32>
    %c0_133 = arith.constant 0 : index
    %c0_134 = arith.constant 0 : index
    %264 = vector.load %arg32[%c0_133, %c0_134] : memref<32x32xbf16, #tpu.memory_space<vmem>>, vector<32x32xbf16>
    %c0_135 = arith.constant 0 : index
    %c0_136 = arith.constant 0 : index
    %265 = vector.load %arg33[%c0_135, %c0_136] : memref<1x32xf32, #tpu.memory_space<vmem>>, vector<1x32xf32>
    %c0_137 = arith.constant 0 : index
    %c0_138 = arith.constant 0 : index
    %266 = vector.load %arg34[%c0_137, %c0_138] : memref<64x32xbf16, #tpu.memory_space<vmem>>, vector<64x32xbf16>
    %c0_139 = arith.constant 0 : index
    %c0_140 = arith.constant 0 : index
    %267 = vector.load %arg35[%c0_139, %c0_140] : memref<1x32xf32, #tpu.memory_space<vmem>>, vector<1x32xf32>
    %268 = arith.addf %0, %2 : vector<16x32xf32>
    %269 = arith.truncf %268 : vector<16x32xf32> to vector<16x32xbf16>
    %cst_141 = arith.constant dense<0.000000e+00> : vector<16x32xf32>
    %270 = tpu.matmul %269, %260, %cst_141 {dimension_numbers = #tpu.dot_dimension_numbers<[1], [0], [0], [1], [0, 0, 1, 1], [], []>} : vector<16x32xbf16>, vector<32x32xbf16>, vector<16x32xf32> -> vector<16x32xf32>
    %271 = vector.broadcast %261 : vector<1x32xf32> to vector<16x32xf32>
    %272 = arith.addf %270, %271 : vector<16x32xf32>
    %273 = arith.addf %256, %3 : vector<8x32xf32>
    %274 = arith.truncf %273 : vector<8x32xf32> to vector<8x32xbf16>
    %cst_142 = arith.constant dense<0.000000e+00> : vector<8x32xf32>
    %275 = tpu.matmul %274, %262, %cst_142 {dimension_numbers = #tpu.dot_dimension_numbers<[1], [0], [0], [1], [0, 0, 1, 1], [], []>} : vector<8x32xbf16>, vector<32x32xbf16>, vector<8x32xf32> -> vector<8x32xf32>
    %276 = vector.broadcast %263 : vector<1x32xf32> to vector<8x32xf32>
    %277 = arith.addf %275, %276 : vector<8x32xf32>
    %278 = arith.truncf %256 : vector<8x32xf32> to vector<8x32xbf16>
    %cst_143 = arith.constant dense<0.000000e+00> : vector<8x32xf32>
    %279 = tpu.matmul %278, %264, %cst_143 {dimension_numbers = #tpu.dot_dimension_numbers<[1], [0], [0], [1], [0, 0, 1, 1], [], []>} : vector<8x32xbf16>, vector<32x32xbf16>, vector<8x32xf32> -> vector<8x32xf32>
    %280 = vector.broadcast %265 : vector<1x32xf32> to vector<8x32xf32>
    %281 = arith.addf %279, %280 : vector<8x32xf32>
    %282 = arith.truncf %272 : vector<16x32xf32> to vector<16x32xbf16>
    %283 = arith.truncf %277 : vector<8x32xf32> to vector<8x32xbf16>
    %cst_144 = arith.constant dense<0.000000e+00> : vector<16x8xf32>
    %284 = tpu.matmul %282, %283, %cst_144 {dimension_numbers = #tpu.dot_dimension_numbers<[1], [1], [0], [0], [0, 0, 1, 0], [], []>} : vector<16x32xbf16>, vector<8x32xbf16>, vector<16x8xf32> -> vector<16x8xf32>
    %cst_145 = arith.constant 0.176776692 : f32
    %285 = vector.broadcast %cst_145 : f32 to vector<16x8xf32>
    %286 = arith.mulf %284, %285 : vector<16x8xf32>
    %cst_146 = arith.constant dense<0xFF800000> : vector<16xf32>
    %287 = vector.multi_reduction <maximumf>, %286, %cst_146 [1] : vector<16x8xf32> to vector<16xf32>
    %288 = vector.shape_cast %287 : vector<16xf32> to vector<16x1xf32>
    %289 = vector.broadcast %288 : vector<16x1xf32> to vector<16x8xf32>
    %290 = arith.subf %286, %289 : vector<16x8xf32>
    %291 = math.exp %290 : vector<16x8xf32>
    %cst_147 = arith.constant dense<0.000000e+00> : vector<16xf32>
    %292 = vector.multi_reduction <add>, %291, %cst_147 [1] : vector<16x8xf32> to vector<16xf32>
    %293 = vector.shape_cast %292 : vector<16xf32> to vector<16x1xf32>
    %294 = tpu.reciprocal %293 {approx = true} : vector<16x1xf32> -> vector<16x1xf32>
    %295 = vector.broadcast %294 : vector<16x1xf32> to vector<16x8xf32>
    %296 = arith.mulf %291, %295 : vector<16x8xf32>
    %297 = arith.truncf %296 : vector<16x8xf32> to vector<16x8xbf16>
    %298 = arith.truncf %281 : vector<8x32xf32> to vector<8x32xbf16>
    %cst_148 = arith.constant dense<0.000000e+00> : vector<16x32xf32>
    %299 = tpu.matmul %297, %298, %cst_148 {dimension_numbers = #tpu.dot_dimension_numbers<[1], [0], [0], [1], [0, 0, 1, 1], [], []>} : vector<16x8xbf16>, vector<8x32xbf16>, vector<16x32xf32> -> vector<16x32xf32>
    %300 = tpu.concatenate %0, %299 in 1 : vector<16x32xf32>, vector<16x32xf32> -> vector<16x64xf32>
    %301 = arith.truncf %300 : vector<16x64xf32> to vector<16x64xbf16>
    %cst_149 = arith.constant dense<0.000000e+00> : vector<16x32xf32>
    %302 = tpu.matmul %301, %266, %cst_149 {dimension_numbers = #tpu.dot_dimension_numbers<[1], [0], [0], [1], [0, 0, 1, 1], [], []>} : vector<16x64xbf16>, vector<64x32xbf16>, vector<16x32xf32> -> vector<16x32xf32>
    %303 = vector.broadcast %267 : vector<1x32xf32> to vector<16x32xf32>
    %304 = arith.addf %302, %303 : vector<16x32xf32>
    %c0_150 = arith.constant 0 : index
    %c0_151 = arith.constant 0 : index
    %305 = vector.load %arg50[%c0_150, %c0_151] : memref<16x8xf32, #tpu.memory_space<vmem>>, vector<16x8xf32>
    tpu.vector_store %arg50[%c0_150, %c0_151], %296 {strides = array<i32>} : memref<16x8xf32, #tpu.memory_space<vmem>>, vector<16x8xf32>,
    %c0_152 = arith.constant 0 : index
    %c0_153 = arith.constant 0 : index
    %306 = vector.load %arg51[%c0_152, %c0_153] : memref<16x8xf32, #tpu.memory_space<vmem>>, vector<16x8xf32>
    tpu.vector_store %arg51[%c0_152, %c0_153], %286 {strides = array<i32>} : memref<16x8xf32, #tpu.memory_space<vmem>>, vector<16x8xf32>,
    %c0_154 = arith.constant 0 : index
    %c0_155 = arith.constant 0 : index
    %307 = vector.load %arg36[%c0_154, %c0_155] : memref<32x32xbf16, #tpu.memory_space<vmem>>, vector<32x32xbf16>
    %308 = arith.truncf %304 : vector<16x32xf32> to vector<16x32xbf16>
    %cst_156 = arith.constant dense<0.000000e+00> : vector<16x32xf32>
    %309 = tpu.matmul %308, %307, %cst_156 {dimension_numbers = #tpu.dot_dimension_numbers<[1], [0], [0], [1], [0, 0, 1, 1], [], []>} : vector<16x32xbf16>, vector<32x32xbf16>, vector<16x32xf32> -> vector<16x32xf32>
    %c0_157 = arith.constant 0 : index
    %c0_158 = arith.constant 0 : index
    %310 = vector.load %arg37[%c0_157, %c0_158] : memref<1x32xf32, #tpu.memory_space<vmem>>, vector<1x32xf32>
    %311 = vector.broadcast %310 : vector<1x32xf32> to vector<16x32xf32>
    %312 = arith.addf %309, %311 : vector<16x32xf32>
    %cst_159 = arith.constant 0.000000e+00 : f32
    %313 = vector.broadcast %cst_159 : f32 to vector<32x32xf32>
    %c0_160 = arith.constant 0 : index
    %c0_161 = arith.constant 0 : index
    %314 = vector.load %arg52[%c0_160, %c0_161] : memref<32x32xf32, #tpu.memory_space<vmem>>, vector<32x32xf32>
    tpu.vector_store %arg52[%c0_160, %c0_161], %313 {strides = array<i32>} : memref<32x32xf32, #tpu.memory_space<vmem>>, vector<32x32xf32>,
    %c8 = arith.constant 8 : index
    %c0_162 = arith.constant 0 : index
    %315 = vector.load %arg52[%c8, %c0_162] : memref<32x32xf32, #tpu.memory_space<vmem>>, vector<16x32xf32>
    tpu.vector_store %arg52[%c8, %c0_162], %312 {strides = array<i32>} : memref<32x32xf32, #tpu.memory_space<vmem>>, vector<16x32xf32>,
    %c7 = arith.constant 7 : index
    %c0_163 = arith.constant 0 : index
    %316 = vector.load %arg52[%c7, %c0_163] : memref<32x32xf32, #tpu.memory_space<vmem>>, vector<16x32xf32>
    %c9 = arith.constant 9 : index
    %c0_164 = arith.constant 0 : index
    %317 = vector.load %arg52[%c9, %c0_164] : memref<32x32xf32, #tpu.memory_space<vmem>>, vector<16x32xf32>
    %318 = tpu.concatenate %316, %312, %317 in 1 : vector<16x32xf32>, vector<16x32xf32>, vector<16x32xf32> -> vector<16x96xf32>
    %c0_165 = arith.constant 0 : index
    %c0_166 = arith.constant 0 : index
    %c0_167 = arith.constant 0 : index
    %319 = vector.load %arg38[%c0_165, %c0_166, %c0_167] : memref<2x96x32xbf16, #tpu.memory_space<vmem>>, vector<1x96x32xbf16>
    %320 = vector.shape_cast %319 : vector<1x96x32xbf16> to vector<96x32xbf16>
    %321 = arith.truncf %318 : vector<16x96xf32> to vector<16x96xbf16>
    %cst_168 = arith.constant dense<0.000000e+00> : vector<16x32xf32>
    %322 = tpu.matmul %321, %320, %cst_168 {dimension_numbers = #tpu.dot_dimension_numbers<[1], [0], [0], [1], [0, 0, 1, 1], [], []>} : vector<16x96xbf16>, vector<96x32xbf16>, vector<16x32xf32> -> vector<16x32xf32>
    %c0_169 = arith.constant 0 : index
    %c0_170 = arith.constant 0 : index
    %c0_171 = arith.constant 0 : index
    %323 = vector.load %arg39[%c0_169, %c0_170, %c0_171] : memref<2x1x32xf32, #tpu.memory_space<vmem>>, vector<1x1x32xf32>
    %324 = vector.shape_cast %323 : vector<1x1x32xf32> to vector<1x32xf32>
    %325 = vector.broadcast %324 : vector<1x32xf32> to vector<16x32xf32>
    %326 = arith.addf %322, %325 : vector<16x32xf32>
    %cst_172 = arith.constant 0.000000e+00 : f32
    %327 = vector.broadcast %cst_172 : f32 to vector<16x32xf32>
    %328 = arith.maximumf %326, %327 : vector<16x32xf32>
    %c0_173 = arith.constant 0 : index
    %c0_174 = arith.constant 0 : index
    %c0_175 = arith.constant 0 : index
    %329 = vector.load %arg40[%c0_173, %c0_174, %c0_175] : memref<2x32x32xbf16, #tpu.memory_space<vmem>>, vector<1x32x32xbf16>
    %330 = vector.shape_cast %329 : vector<1x32x32xbf16> to vector<32x32xbf16>
    %331 = arith.truncf %328 : vector<16x32xf32> to vector<16x32xbf16>
    %cst_176 = arith.constant dense<0.000000e+00> : vector<16x32xf32>
    %332 = tpu.matmul %331, %330, %cst_176 {dimension_numbers = #tpu.dot_dimension_numbers<[1], [0], [0], [1], [0, 0, 1, 1], [], []>} : vector<16x32xbf16>, vector<32x32xbf16>, vector<16x32xf32> -> vector<16x32xf32>
    %333 = arith.addf %312, %332 : vector<16x32xf32>
    %c0_177 = arith.constant 0 : index
    %c0_178 = arith.constant 0 : index
    %c0_179 = arith.constant 0 : index
    %334 = vector.load %arg41[%c0_177, %c0_178, %c0_179] : memref<2x1x32xf32, #tpu.memory_space<vmem>>, vector<1x1x32xf32>
    %335 = vector.shape_cast %334 : vector<1x1x32xf32> to vector<1x32xf32>
    %336 = vector.broadcast %335 : vector<1x32xf32> to vector<16x32xf32>
    %337 = arith.addf %333, %336 : vector<16x32xf32>
    %c8_180 = arith.constant 8 : index
    %c0_181 = arith.constant 0 : index
    %338 = vector.load %arg52[%c8_180, %c0_181] : memref<32x32xf32, #tpu.memory_space<vmem>>, vector<16x32xf32>
    tpu.vector_store %arg52[%c8_180, %c0_181], %337 {strides = array<i32>} : memref<32x32xf32, #tpu.memory_space<vmem>>, vector<16x32xf32>,
    %c6 = arith.constant 6 : index
    %c0_182 = arith.constant 0 : index
    %339 = vector.load %arg52[%c6, %c0_182] : memref<32x32xf32, #tpu.memory_space<vmem>>, vector<16x32xf32>
    %c10 = arith.constant 10 : index
    %c0_183 = arith.constant 0 : index
    %340 = vector.load %arg52[%c10, %c0_183] : memref<32x32xf32, #tpu.memory_space<vmem>>, vector<16x32xf32>
    %341 = tpu.concatenate %339, %337, %340 in 1 : vector<16x32xf32>, vector<16x32xf32>, vector<16x32xf32> -> vector<16x96xf32>
    %c1 = arith.constant 1 : index
    %c0_184 = arith.constant 0 : index
    %c0_185 = arith.constant 0 : index
    %342 = vector.load %arg38[%c1, %c0_184, %c0_185] : memref<2x96x32xbf16, #tpu.memory_space<vmem>>, vector<1x96x32xbf16>
    %343 = vector.shape_cast %342 : vector<1x96x32xbf16> to vector<96x32xbf16>
    %344 = arith.truncf %341 : vector<16x96xf32> to vector<16x96xbf16>
    %cst_186 = arith.constant dense<0.000000e+00> : vector<16x32xf32>
    %345 = tpu.matmul %344, %343, %cst_186 {dimension_numbers = #tpu.dot_dimension_numbers<[1], [0], [0], [1], [0, 0, 1, 1], [], []>} : vector<16x96xbf16>, vector<96x32xbf16>, vector<16x32xf32> -> vector<16x32xf32>
    %c1_187 = arith.constant 1 : index
    %c0_188 = arith.constant 0 : index
    %c0_189 = arith.constant 0 : index
    %346 = vector.load %arg39[%c1_187, %c0_188, %c0_189] : memref<2x1x32xf32, #tpu.memory_space<vmem>>, vector<1x1x32xf32>
    %347 = vector.shape_cast %346 : vector<1x1x32xf32> to vector<1x32xf32>
    %348 = vector.broadcast %347 : vector<1x32xf32> to vector<16x32xf32>
    %349 = arith.addf %345, %348 : vector<16x32xf32>
    %cst_190 = arith.constant 0.000000e+00 : f32
    %350 = vector.broadcast %cst_190 : f32 to vector<16x32xf32>
    %351 = arith.maximumf %349, %350 : vector<16x32xf32>
    %c1_191 = arith.constant 1 : index
    %c0_192 = arith.constant 0 : index
    %c0_193 = arith.constant 0 : index
    %352 = vector.load %arg40[%c1_191, %c0_192, %c0_193] : memref<2x32x32xbf16, #tpu.memory_space<vmem>>, vector<1x32x32xbf16>
    %353 = vector.shape_cast %352 : vector<1x32x32xbf16> to vector<32x32xbf16>
    %354 = arith.truncf %351 : vector<16x32xf32> to vector<16x32xbf16>
    %cst_194 = arith.constant dense<0.000000e+00> : vector<16x32xf32>
    %355 = tpu.matmul %354, %353, %cst_194 {dimension_numbers = #tpu.dot_dimension_numbers<[1], [0], [0], [1], [0, 0, 1, 1], [], []>} : vector<16x32xbf16>, vector<32x32xbf16>, vector<16x32xf32> -> vector<16x32xf32>
    %356 = arith.addf %337, %355 : vector<16x32xf32>
    %c1_195 = arith.constant 1 : index
    %c0_196 = arith.constant 0 : index
    %c0_197 = arith.constant 0 : index
    %357 = vector.load %arg41[%c1_195, %c0_196, %c0_197] : memref<2x1x32xf32, #tpu.memory_space<vmem>>, vector<1x1x32xf32>
    %358 = vector.shape_cast %357 : vector<1x1x32xf32> to vector<1x32xf32>
    %359 = vector.broadcast %358 : vector<1x32xf32> to vector<16x32xf32>
    %360 = arith.addf %356, %359 : vector<16x32xf32>
    %c0_198 = arith.constant 0 : index
    %c0_199 = arith.constant 0 : index
    %361 = vector.load %arg42[%c0_198, %c0_199] : memref<32x32xbf16, #tpu.memory_space<vmem>>, vector<32x32xbf16>
    %362 = arith.truncf %360 : vector<16x32xf32> to vector<16x32xbf16>
    %cst_200 = arith.constant dense<0.000000e+00> : vector<16x32xf32>
    %363 = tpu.matmul %362, %361, %cst_200 {dimension_numbers = #tpu.dot_dimension_numbers<[1], [0], [0], [1], [0, 0, 1, 1], [], []>} : vector<16x32xbf16>, vector<32x32xbf16>, vector<16x32xf32> -> vector<16x32xf32>
    %c0_201 = arith.constant 0 : index
    %c0_202 = arith.constant 0 : index
    %364 = vector.load %arg43[%c0_201, %c0_202] : memref<1x32xf32, #tpu.memory_space<vmem>>, vector<1x32xf32>
    %365 = vector.broadcast %364 : vector<1x32xf32> to vector<16x32xf32>
    %366 = arith.addf %363, %365 : vector<16x32xf32>
    %367 = tpu.iota {dimensions = array<i32: 1>} : vector<16x32xi32>
    %c28_i32 = arith.constant 28 : i32
    %368 = vector.broadcast %c28_i32 : i32 to vector<16x32xi32>
    %369 = arith.cmpi sge, %367, %368 : vector<16x32xi32>
    %cst_203 = arith.constant -1.000000e+30 : f32
    %370 = vector.broadcast %cst_203 : f32 to vector<16x32xf32>
    %371 = arith.select %369, %366, %370 : vector<16x32xi1>, vector<16x32xf32>
    %cst_204 = arith.constant dense<0xFF800000> : vector<16xf32>
    %372 = vector.multi_reduction <maximumf>, %371, %cst_204 [1] : vector<16x32xf32> to vector<16xf32>
    %373 = vector.shape_cast %372 : vector<16xf32> to vector<16x1xf32>
    %374 = vector.broadcast %373 : vector<16x1xf32> to vector<16x32xf32>
    %375 = arith.subf %371, %374 : vector<16x32xf32>
    %376 = math.exp %375 : vector<16x32xf32>
    %cst_205 = arith.constant dense<0.000000e+00> : vector<16xf32>
    %377 = vector.multi_reduction <add>, %376, %cst_205 [1] : vector<16x32xf32> to vector<16xf32>
    %378 = vector.shape_cast %377 : vector<16xf32> to vector<16x1xf32>
    %379 = tpu.reciprocal %378 {approx = true} : vector<16x1xf32> -> vector<16x1xf32>
    %380 = vector.broadcast %379 : vector<16x1xf32> to vector<16x32xf32>
    %381 = arith.mulf %376, %380 : vector<16x32xf32>
    %382 = arith.select %369, %381, %366 : vector<16x32xi1>, vector<16x32xf32>
    %383 = vector.extract_strided_slice %366 {offsets = [0, 28], sizes = [16, 4], strides = [1, 1]} : vector<16x32xf32> to vector<16x4xf32>
    %c0_206 = arith.constant 0 : index
    %c0_207 = arith.constant 0 : index
    %384 = vector.load %arg44[%c0_206, %c0_207] : memref<16x32xf32, #tpu.memory_space<vmem>>, vector<16x32xf32>
    tpu.vector_store %arg44[%c0_206, %c0_207], %382 {strides = array<i32>} : memref<16x32xf32, #tpu.memory_space<vmem>>, vector<16x32xf32>,
    %c0_208 = arith.constant 0 : index
    %c0_209 = arith.constant 0 : index
    %385 = vector.load %arg46[%c0_208, %c0_209] : memref<16x4xf32, #tpu.memory_space<vmem>>, vector<16x4xf32>
    tpu.vector_store %arg46[%c0_208, %c0_209], %383 {strides = array<i32>} : memref<16x4xf32, #tpu.memory_space<vmem>>, vector<16x4xf32>,
    return
  }
}

</mosaic_0001>

<bundles_post_ra>
// kernel: update_block_forward.1
= control target key start
LH: loop header
LB: loop body
LE: loop exit
PB: predicated region body
PF: predicated region fallthrough
CT: control target
= control target key end

     0   :  { %s3362_s6 = smov 1   ;;  %s3363_s10 = smov 2   ;;  %s4079_s0 = inlined_call_operand.smem [shape: u32[52], index: -1, kind: input, shape index: {}] }
   0x1   :  { %s3468_s5 = sld [smem:[%s4079_s0]]   ;;  %s3364_s14 = smov 3  }
   0x2   :  { %s3473_s9 = sld [smem:[%s4079_s0 + %s3362_s6]]   ;;  %s3365_s18 = smov 4  }
   0x3   :  { %s3478_s13 = sld [smem:[%s4079_s0 + %s3363_s10]]   ;;  %s3366_s22 = smov 5  }
   0x4   :  { %s3483_s17 = sld [smem:[%s4079_s0 + %s3364_s14]]   ;;  %s3367_s26 = smov 6  }
   0x5   :  { %s3488_s21 = sld [smem:[%s4079_s0 + %s3365_s18]]   ;;  %s3368_s30 = smov 7  }
   0x6   :  { %s3493_s25 = sld [smem:[%s4079_s0 + %s3366_s22]]   ;;  %s3369_s4 = smov 8  }
   0x7   :  { %4112 = sst [smem:[#allocation63_spill]] %s3468_s5  ;;  %s3370_s10 = smov 9  }
   0x8   :  { %4113 = sst [smem:[#allocation64_spill]] %s3473_s9  ;;  %s3371_s15 = smov 10  }
   0x9   :  { %4114 = sst [smem:[#allocation65_spill]] %s3478_s13  ;;  %s3372_s20 = smov 11  }
   0xa   :  { %s3498_s29 = sld [smem:[%s4079_s0 + %s3367_s26]]   ;;  %s3373_s26 = smov 12  }
   0xb   :  { %4115 = sst [smem:[#allocation66_spill]] %s3488_s21  ;;  %s3374_s1 = smov 13  }
   0xc   :  { %s3503_s3 = sld [smem:[%s4079_s0 + %s3368_s30]]   ;;  %s3375_s7 = smov 14  }
   0xd   :  { %s3508_s8 = sld [smem:[%s4079_s0 + %s3369_s4]]   ;;  %s3377_s22 = smov 16  }
   0xe   :  { %s3513_s14 = sld [smem:[%s4079_s0 + %s3370_s10]]   ;;  %s3378_s28 = smov 17  }
   0xf   :  { %s3518_s19 = sld [smem:[%s4079_s0 + %s3371_s15]]   ;;  %s3376_s15 = smov 15  }
  0x10   :  { %4116 = sst [smem:[#allocation67_spill]] %s3498_s29 }
  0x11   :  { %s3523_s24 = sld [smem:[%s4079_s0 + %s3372_s20]]  }
  0x12   :  { %s3528_s30 = sld [smem:[%s4079_s0 + %s3373_s26]]  }
  0x13   :  { %4117 = sst [smem:[#allocation68_spill]] %s3508_s8 }
  0x14   :  { %s3533_s6 = sld [smem:[%s4079_s0 + %s3374_s1]]  }
  0x15   :  { %4118 = sst [smem:[#allocation69_spill]] %s3518_s19 }
  0x16   :  { %s3538_s12 = sld [smem:[%s4079_s0 + %s3375_s7]]   ;;  %s3379_s7 = smov 18  }
  0x17   :  { %s3543_s20 = sld [smem:[%s4079_s0 + %s3376_s15]]   ;;  %s3380_s15 = smov 19  }
  0x18   :  { %4119 = sst [smem:[#allocation70_spill]] %s3528_s30 }
  0x19   :  { %s3548_s27 = sld [smem:[%s4079_s0 + %s3377_s22]]   ;;  %s3381_s22 = smov 20  }
  0x1a   :  { %s3553_s4 = sld [smem:[%s4079_s0 + %s3378_s28]]   ;;  %s3382_s28 = smov 21  }
  0x1b   :  { %s3558_s30 = sld [smem:[%s4079_s0 + %s3379_s7]]   ;;  %s3383_s7 = smov 22  }
  0x1c   :  { %4120 = sst [smem:[#allocation71_spill]] %s3538_s12 }
  0x1d   :  { %4121 = sst [smem:[#allocation72_spill]] %s3543_s20 }
  0x1e   :  { %s3563_s12 = sld [smem:[%s4079_s0 + %s3380_s15]]   ;;  %s3384_s15 = smov 23  }
  0x1f   :  { %4122 = sst [smem:[#allocation73_spill]] %s3548_s27 }
  0x20   :  { %s3568_s27 = sld [smem:[%s4079_s0 + %s3381_s22]]   ;;  %s3385_s22 = smov 24  }
  0x21   :  { %4123 = sst [smem:[#allocation74_spill]] %s3558_s30 }
  0x22   :  { %s3573_s19 = sld [smem:[%s4079_s0 + %s3382_s28]]   ;;  %s3386_s28 = smov 25  }
  0x23   :  { %s3578_s8 = sld [smem:[%s4079_s0 + %s3383_s7]]   ;;  %s3387_s7 = smov 26  }
  0x24   :  { %s3583_s9 = sld [smem:[%s4079_s0 + %s3384_s15]]   ;;  %s3388_s15 = smov 27  }
  0x25   :  { %s3593_s21 = sld [smem:[%s4079_s0 + %s3386_s28]]   ;;  %s3390_s28 = smov 29  }
  0x26   :  { %4124 = sst [smem:[#allocation75_spill]] %s3568_s27 }
  0x27   :  { %s3588_s27 = sld [smem:[%s4079_s0 + %s3385_s22]]   ;;  %s3389_s22 = smov 28  }
  0x28   :  { %4125 = sst [smem:[#allocation76_spill]] %s3573_s19 }
  0x29   :  { %4126 = sst [smem:[#allocation77_spill]] %s3578_s8 }
  0x2a   :  { %s3598_s8 = sld [smem:[%s4079_s0 + %s3387_s7]]   ;;  %s3391_s7 = smov 30  }
  0x2b   :  { %s3603_s13 = sld [smem:[%s4079_s0 + %s3388_s15]]   ;;  %s3392_s15 = smov 31  }
  0x2c   :  { %s3608_s5 = sld [smem:[%s4079_s0 + %s3389_s22]]   ;;  %s3393_s22 = smov 32  }
  0x2d   :  { %4127 = sst [smem:[#allocation78_spill]] %s3588_s27 }
  0x2e   :  { %s3613_s29 = sld [smem:[%s4079_s0 + %s3390_s28]]   ;;  %s3394_s28 = smov 33  }
  0x2f   :  { %s3633_s27 = sld [smem:[%s4079_s0 + %s3394_s28]]   ;;  %s3398_s28 = smov 37  }
  0x30   :  { %4128 = sst [smem:[#allocation79_spill]] %s3598_s8 }
  0x31   :  { %4129 = sst [smem:[#allocation80_spill]] %s3603_s13 }
  0x32   :  { %4130 = sst [smem:[#allocation81_spill]] %s3608_s5 }
  0x33   :  { %s3618_s8 = sld [smem:[%s4079_s0 + %s3391_s7]]   ;;  %s3395_s7 = smov 34  }
  0x34   :  { %s3623_s13 = sld [smem:[%s4079_s0 + %s3392_s15]]   ;;  %s3396_s15 = smov 35  }
  0x35   :  { %s3628_s5 = sld [smem:[%s4079_s0 + %s3393_s22]]   ;;  %s3397_s22 = smov 36  }
  0x36   :  { %s3643_s19 = sld [smem:[%s4079_s0 + %s3396_s15]]   ;;  %s3400_s15 = smov 39  }
  0x37   :  { %s3653_s30 = sld [smem:[%s4079_s0 + %s3398_s28]]   ;;  %s3402_s28 = smov 41  }
  0x38   :  { %s3673_s20 = sld [smem:[%s4079_s0 + %s3402_s28]]   ;;  %s3406_s28 = smov 45  }
  0x39   :  { %4131 = sst [smem:[#allocation82_spill]] %s3618_s8 }
  0x3a   :  { %s3638_s8 = sld [smem:[%s4079_s0 + %s3395_s7]]   ;;  %s3399_s7 = smov 38  }
  0x3b   :  { %4132 = sst [smem:[#allocation83_spill]] %s3628_s5 }
  0x3c   :  { %4134 = sst [smem:[#allocation85_spill]] %s3643_s19 }
  0x3d   :  { %s3648_s5 = sld [smem:[%s4079_s0 + %s3397_s22]]   ;;  %s3401_s22 = smov 40  }
  0x3e   :  { %s3663_s19 = sld [smem:[%s4079_s0 + %s3400_s15]]   ;;  %s3404_s15 = smov 43  }
  0x3f   :  { %4139 = sst [smem:[#allocation90_spill]] %s3673_s20 }
  0x40   :  { %4133 = sst [smem:[#allocation84_spill]] %s3638_s8 }
  0x41   :  { %s3658_s8 = sld [smem:[%s4079_s0 + %s3399_s7]]   ;;  %s3403_s7 = smov 42  }
  0x42   :  { %s3693_s20 = sld [smem:[%s4079_s0 + %s3406_s28]]   ;;  %s3410_s28 = smov 49  }
  0x43   :  { %4135 = sst [smem:[#allocation86_spill]] %s3648_s5 }
  0x44   :  { %4137 = sst [smem:[#allocation88_spill]] %s3663_s19 }
  0x45   :  { %s3668_s5 = sld [smem:[%s4079_s0 + %s3401_s22]]   ;;  %s3405_s22 = smov 44  }
  0x46   :  { %s3683_s19 = sld [smem:[%s4079_s0 + %s3404_s15]]   ;;  %s3408_s15 = smov 47  }
  0x47   :  { %4136 = sst [smem:[#allocation87_spill]] %s3658_s8 }
  0x48   :  { %s3678_s8 = sld [smem:[%s4079_s0 + %s3403_s7]]   ;;  %s3407_s7 = smov 46  }
  0x49   :  { %4143 = sst [smem:[#allocation94_spill]] %s3693_s20 }
  0x4a   :  { %s3713_s20 = sld [smem:[%s4079_s0 + %s3410_s28]]  }
  0x4b   :  { %4138 = sst [smem:[#allocation89_spill]] %s3668_s5 }
  0x4c   :  { %4141 = sst [smem:[#allocation92_spill]] %s3683_s19 }
  0x4d   :  { %s3688_s5 = sld [smem:[%s4079_s0 + %s3405_s22]]   ;;  %s3409_s22 = smov 48  }
  0x4e   :  { %4140 = sst [smem:[#allocation91_spill]] %s3678_s8 }
  0x4f   :  { %s3698_s8 = sld [smem:[%s4079_s0 + %s3407_s7]]   ;;  %s3411_s7 = smov 50  }
  0x50   :  { %s3703_s19 = sld [smem:[%s4079_s0 + %s3408_s15]]   ;;  %s3412_s15 = smov 51  }
  0x53   :  { %4142 = sst [smem:[#allocation93_spill]] %s3688_s5 }
  0x54   :  { %s3708_s5 = sld [smem:[%s4079_s0 + %s3409_s22]]  }
  0x55   :  { %4144 = sst [smem:[#allocation95_spill]] %s3698_s8 }
  0x56   :  { %4145 = sst [smem:[#allocation96_spill]] %s3703_s19 }
  0x57   :  { %s3718_s8 = sld [smem:[%s4079_s0 + %s3411_s7]]  }
  0x58   :  { %s3723_s19 = sld [smem:[%s4079_s0 + %s3412_s15]]  }
  0x59   :  { %109 = vsyncpa [#allocation4], 0 }
  0x5a   :  { %110 = vsyncpa [#allocation7], 0 }
  0x5b   :  { %111 = vsyncpa [#allocation10], 0 }
  0x5c   :  { %112 = vsyncpa [#allocation13], 0 }
  0x5d   :  { %113 = vsyncpa [#allocation16], 0 }
  0x5e   :  { %114 = vsyncpa [#allocation19], 0 }
  0x5f   :  { %115 = vsyncpa [#allocation22], 0 }
  0x60   :  { %116 = vsyncpa [#allocation25], 0 }
  0x61   :  { %117 = vsyncpa [#allocation28], 0 }
  0x62   :  { %118 = vsyncpa [#allocation31], 0 }
  0x63   :  { %119 = vsyncpa [#allocation34], 0 }
  0x64   :  { %120 = vsyncpa [#allocation37], 0 }
  0x65   :  { %121 = vsyncpa [#allocation40], 0 }
  0x66   :  { %122 = vsyncpa [#allocation5], 0 }
  0x67   :  { %123 = vsyncpa [#allocation43], 0  ;;  %s149_s22 = sshll.u32 %s3493_s25, 4  ;;  %s150_s22 = int_to_ptr.hbm [resolvable:$true] %s149_s22 }
  0x68   :  { %124 = vsyncpa [#allocation46], 0  ;;  %s3413_s0 = smov [#allocation6]   ;;  %s175_s26 = sshll.u32 %s3513_s14, 4  ;;  %s176_s26 = int_to_ptr.hbm [resolvable:$true] %s175_s26 }
  0x69   :  { %s151_s23 = sshll.u32 %s3413_s0, 4  ;;  %s2658_s28 = sshra.s32 %s150_s22, 4  ;;  %s152_s23 = int_to_ptr.vmem [resolvable:$true] %s151_s23  ;;  %s2659_s28 = int_to_ptr.hbm [resolvable:$true] %s2658_s28 }
  0x6a   :  { %s2660_s1 = scalar_lea.hbm %s2659_s28, 1  ;;  %s2662_s2 = scalar_lea.hbm %s3493_s25, 1 }
  0x6b   :  { %p2661_p0 = scmp.ne.s32.totalorder %s2659_s28, %s2660_s1  ;;  %p2663_p1 = scmp.lt.s32.totalorder %s2659_s28, %s3493_s25 }
  0x6c   :  { %p2664_p2 = scmp.lt.s32.totalorder %s2662_s2, %s2660_s1 }
  0x6e   :  { %p2665_p3 = por %p2664_p2, %p2663_p1 }
  0x70   :  { %p2666_p4 = pnand %p2665_p3, %p2661_p0 }
  0x72   :  { %2669 = shalt.err (!%p2666_p4)
}
  0x73   :  { %154 = dma.hbm_to_vmem [thread:$0]  %s150_s22, 16, %s152_s23, [#allocation7]  }
  0x74   :  { %s3414_s7 = smov [#allocation9]   ;;  %s201_s11 = sshll.u32 %s3533_s6, 4  ;;  %s202_s11 = int_to_ptr.hbm [resolvable:$true] %s201_s11 }
  0x75   :  { %s177_s10 = sshll.u32 %s3414_s7, 4  ;;  %s2682_s15 = sshra.s32 %s176_s26, 4  ;;  %s178_s10 = int_to_ptr.vmem [resolvable:$true] %s177_s10  ;;  %s2683_s15 = int_to_ptr.hbm [resolvable:$true] %s2682_s15 }
  0x76   :  { %s2684_s16 = scalar_lea.hbm %s2683_s15, 1  ;;  %s2686_s18 = scalar_lea.hbm %s3513_s14, 1 }
  0x77   :  { %p2685_p5 = scmp.ne.s32.totalorder %s2683_s15, %s2684_s16  ;;  %p2687_p6 = scmp.lt.s32.totalorder %s2683_s15, %s3513_s14 }
  0x78   :  { %p2688_p7 = scmp.lt.s32.totalorder %s2686_s18, %s2684_s16 }
  0x7a   :  { %p2689_p8 = por %p2688_p7, %p2687_p6 }
  0x7c   :  { %p2690_p9 = pnand %p2689_p8, %p2685_p5 }
  0x7e   :  { %2693 = shalt.err (!%p2690_p9)
}
  0x7f   :  { %180 = dma.hbm_to_vmem [thread:$0]  %s176_s26, 16, %s178_s10, [#allocation10]  }
  0x80   :  { %s227_s25 = sshll.u32 %s3553_s4, 4  ;;  %s3415_s22 = smov [#allocation12]   ;;  %s228_s25 = int_to_ptr.hbm [resolvable:$true] %s227_s25 }
  0x81   :  { %s203_s0 = sshll.u32 %s3415_s22, 4  ;;  %s2706_s23 = sshra.s32 %s202_s11, 4  ;;  %s204_s0 = int_to_ptr.vmem [resolvable:$true] %s203_s0  ;;  %s2707_s23 = int_to_ptr.hbm [resolvable:$true] %s2706_s23 }
  0x82   :  { %s2708_s28 = scalar_lea.hbm %s2707_s23, 1  ;;  %s2710_s1 = scalar_lea.hbm %s3533_s6, 1 }
  0x83   :  { %p2709_p10 = scmp.ne.s32.totalorder %s2707_s23, %s2708_s28  ;;  %p2711_p11 = scmp.lt.s32.totalorder %s2707_s23, %s3533_s6 }
  0x84   :  { %p2712_p12 = scmp.lt.s32.totalorder %s2710_s1, %s2708_s28 }
  0x86   :  { %p2713_p13 = por %p2712_p12, %p2711_p11 }
  0x88   :  { %p2714_p0 = pnand %p2713_p13, %p2709_p10 }
  0x8a   :  { %2717 = shalt.err (!%p2714_p0)
}
  0x8b   :  { %206 = dma.hbm_to_vmem [thread:$0]  %s202_s11, 16, %s204_s0, [#allocation13]  }
  0x8c   :  { %s3416_s14 = smov [#allocation15]   ;;  %s249_s2 = sshll.u32 %s3563_s12, 4  ;;  %s250_s2 = int_to_ptr.hbm [resolvable:$true] %s249_s2 }
  0x8d   :  { %s229_s26 = sshll.u32 %s3416_s14, 4  ;;  %s2730_s7 = sshra.s32 %s228_s25, 4  ;;  %s230_s26 = int_to_ptr.vmem [resolvable:$true] %s229_s26  ;;  %s2731_s7 = int_to_ptr.hbm [resolvable:$true] %s2730_s7 }
  0x8e   :  { %s2732_s10 = scalar_lea.hbm %s2731_s7, 1  ;;  %s2734_s15 = scalar_lea.hbm %s3553_s4, 1 }
  0x8f   :  { %p2733_p1 = scmp.ne.s32.totalorder %s2731_s7, %s2732_s10  ;;  %p2735_p2 = scmp.lt.s32.totalorder %s2731_s7, %s3553_s4 }
  0x90   :  { %p2736_p3 = scmp.lt.s32.totalorder %s2734_s15, %s2732_s10 }
  0x92   :  { %p2737_p4 = por %p2736_p3, %p2735_p2 }
  0x94   :  { %p2738_p5 = pnand %p2737_p4, %p2733_p1 }
  0x96   :  { %2741 = shalt.err (!%p2738_p5)
}
  0x97   :  { %232 = dma.hbm_to_vmem [thread:$0]  %s228_s25, 16, %s230_s26, [#allocation16]  }
  0x98   :  { %s275_s6 = sshll.u32 %s3583_s9, 4  ;;  %s3417_s11 = smov [#allocation18]   ;;  %s276_s6 = int_to_ptr.hbm [resolvable:$true] %s275_s6 }
  0x99   :  { %s251_s16 = sshll.u32 %s3417_s11, 4  ;;  %s2754_s18 = sshra.s32 %s250_s2, 4  ;;  %s252_s16 = int_to_ptr.vmem [resolvable:$true] %s251_s16  ;;  %s2755_s18 = int_to_ptr.hbm [resolvable:$true] %s2754_s18 }
  0x9a   :  { %s2756_s22 = scalar_lea.hbm %s2755_s18, 1  ;;  %s2758_s0 = scalar_lea.hbm %s3563_s12, 1 }
  0x9b   :  { %p2757_p6 = scmp.ne.s32.totalorder %s2755_s18, %s2756_s22  ;;  %p2759_p7 = scmp.lt.s32.totalorder %s2755_s18, %s3563_s12 }
  0x9c   :  { %p2760_p8 = scmp.lt.s32.totalorder %s2758_s0, %s2756_s22 }
  0x9e   :  { %p2761_p9 = por %p2760_p8, %p2759_p7 }
  0xa0   :  { %p2762_p10 = pnand %p2761_p9, %p2757_p6 }
  0xa2   :  { %2765 = shalt.err (!%p2762_p10)
}
  0xa3   :  { %254 = dma.hbm_to_vmem [thread:$0]  %s250_s2, 16, %s252_s16, [#allocation19]  }
  0xa4   :  { %s3418_s4 = smov [#allocation21]   ;;  %s297_s23 = sshll.u32 %s3593_s21, 4  ;;  %s298_s23 = int_to_ptr.hbm [resolvable:$true] %s297_s23 }
  0xa5   :  { %s277_s25 = sshll.u32 %s3418_s4, 4  ;;  %s2778_s28 = sshra.s32 %s276_s6, 4  ;;  %s278_s25 = int_to_ptr.vmem [resolvable:$true] %s277_s25  ;;  %s2779_s28 = int_to_ptr.hbm [resolvable:$true] %s2778_s28 }
  0xa6   :  { %s2780_s1 = scalar_lea.hbm %s2779_s28, 1  ;;  %s2782_s14 = scalar_lea.hbm %s3583_s9, 1 }
  0xa7   :  { %p2781_p11 = scmp.ne.s32.totalorder %s2779_s28, %s2780_s1  ;;  %p2783_p12 = scmp.lt.s32.totalorder %s2779_s28, %s3583_s9 }
  0xa8   :  { %p2784_p13 = scmp.lt.s32.totalorder %s2782_s14, %s2780_s1 }
  0xaa   :  { %p2785_p0 = por %p2784_p13, %p2783_p12 }
  0xac   :  { %p2786_p1 = pnand %p2785_p0, %p2781_p11 }
  0xae   :  { %2789 = shalt.err (!%p2786_p1)
}
  0xaf   :  { %280 = dma.hbm_to_vmem [thread:$0]  %s276_s6, 16, %s278_s25, [#allocation22]  }
  0xb0   :  { %s323_s12 = sshll.u32 %s3613_s29, 4  ;;  %s3419_s26 = smov [#allocation24]   ;;  %s324_s12 = int_to_ptr.hbm [resolvable:$true] %s323_s12 }
  0xb1   :  { %s299_s2 = sshll.u32 %s3419_s26, 4  ;;  %s2802_s7 = sshra.s32 %s298_s23, 4  ;;  %s300_s2 = int_to_ptr.vmem [resolvable:$true] %s299_s2  ;;  %s2803_s7 = int_to_ptr.hbm [resolvable:$true] %s2802_s7 }
  0xb2   :  { %s2804_s10 = scalar_lea.hbm %s2803_s7, 1  ;;  %s2806_s15 = scalar_lea.hbm %s3593_s21, 1 }
  0xb3   :  { %p2805_p2 = scmp.ne.s32.totalorder %s2803_s7, %s2804_s10  ;;  %p2807_p3 = scmp.lt.s32.totalorder %s2803_s7, %s3593_s21 }
  0xb4   :  { %p2808_p4 = scmp.lt.s32.totalorder %s2806_s15, %s2804_s10 }
  0xb6   :  { %p2809_p5 = por %p2808_p4, %p2807_p3 }
  0xb8   :  { %p2810_p6 = pnand %p2809_p5, %p2805_p2 }
  0xba   :  { %2813 = shalt.err (!%p2810_p6)
}
  0xbb   :  { %302 = dma.hbm_to_vmem [thread:$0]  %s298_s23, 16, %s300_s2, [#allocation25]  }
  0xbc   :  { %s3420_s9 = smov [#allocation27]   ;;  %s347_s11 = sshll.u32 %s3623_s13, 4  ;;  %s348_s11 = int_to_ptr.hbm [resolvable:$true] %s347_s11 }
  0xbd   :  { %s325_s6 = sshll.u32 %s3420_s9, 4  ;;  %s2826_s16 = sshra.s32 %s324_s12, 4  ;;  %s326_s6 = int_to_ptr.vmem [resolvable:$true] %s325_s6  ;;  %s2827_s16 = int_to_ptr.hbm [resolvable:$true] %s2826_s16 }
  0xbe   :  { %s2828_s18 = scalar_lea.hbm %s2827_s16, 1  ;;  %s2830_s22 = scalar_lea.hbm %s3613_s29, 1 }
  0xbf   :  { %p2829_p7 = scmp.ne.s32.totalorder %s2827_s16, %s2828_s18  ;;  %p2831_p8 = scmp.lt.s32.totalorder %s2827_s16, %s3613_s29 }
  0xc0   :  { %p2832_p9 = scmp.lt.s32.totalorder %s2830_s22, %s2828_s18 }
  0xc2   :  { %p2833_p10 = por %p2832_p9, %p2831_p8 }
  0xc4   :  { %p2834_p11 = pnand %p2833_p10, %p2829_p7 }
  0xc6   :  { %2837 = shalt.err (!%p2834_p11)
}
  0xc7   :  { %328 = dma.hbm_to_vmem [thread:$0]  %s324_s12, 16, %s326_s6, [#allocation28]  }
  0xc8   :  { %s371_s21 = sshll.u32 %s3633_s27, 4  ;;  %s3421_s0 = smov [#allocation30]   ;;  %s372_s21 = int_to_ptr.hbm [resolvable:$true] %s371_s21 }
  0xc9   :  { %s349_s4 = sshll.u32 %s3421_s0, 4  ;;  %s2850_s25 = sshra.s32 %s348_s11, 4  ;;  %s350_s4 = int_to_ptr.vmem [resolvable:$true] %s349_s4  ;;  %s2851_s25 = int_to_ptr.hbm [resolvable:$true] %s2850_s25 }
  0xca   :  { %s2852_s23 = scalar_lea.hbm %s2851_s25, 1  ;;  %s2854_s28 = scalar_lea.hbm %s3623_s13, 1 }
  0xcb   :  { %p2853_p12 = scmp.ne.s32.totalorder %s2851_s25, %s2852_s23  ;;  %p2855_p13 = scmp.lt.s32.totalorder %s2851_s25, %s3623_s13 }
  0xcc   :  { %p2856_p0 = scmp.lt.s32.totalorder %s2854_s28, %s2852_s23 }
  0xce   :  { %p2857_p1 = por %p2856_p0, %p2855_p13 }
  0xd0   :  { %p2858_p2 = pnand %p2857_p1, %p2853_p12 }
  0xd2   :  { %2861 = shalt.err (!%p2858_p2)
}
  0xd3   :  { %352 = dma.hbm_to_vmem [thread:$0]  %s348_s11, 16, %s350_s4, [#allocation31]  }
  0xd4   :  { %s3422_s29 = smov [#allocation33]   ;;  %s397_s14 = sshll.u32 %s3653_s30, 4  ;;  %s398_s14 = int_to_ptr.hbm [resolvable:$true] %s397_s14 }
  0xd5   :  { %s373_s1 = sshll.u32 %s3422_s29, 4  ;;  %s2874_s12 = sshra.s32 %s372_s21, 4  ;;  %s374_s1 = int_to_ptr.vmem [resolvable:$true] %s373_s1  ;;  %s2875_s12 = int_to_ptr.hbm [resolvable:$true] %s2874_s12 }
  0xd6   :  { %s2876_s26 = scalar_lea.hbm %s2875_s12, 1  ;;  %s2878_s2 = scalar_lea.hbm %s3633_s27, 1 }
  0xd7   :  { %p2877_p3 = scmp.ne.s32.totalorder %s2875_s12, %s2876_s26  ;;  %p2879_p4 = scmp.lt.s32.totalorder %s2875_s12, %s3633_s27 }
  0xd8   :  { %p2880_p5 = scmp.lt.s32.totalorder %s2878_s2, %s2876_s26 }
  0xda   :  { %p2881_p6 = por %p2880_p5, %p2879_p4 }
  0xdc   :  { %p2882_p7 = pnand %p2881_p6, %p2877_p3 }
  0xde   :  { %2885 = shalt.err (!%p2882_p7)
}
  0xdf   :  { %376 = dma.hbm_to_vmem [thread:$0]  %s372_s21, 16, %s374_s1, [#allocation34]  }
  0xe0   :  { %s136_s13 = sshll.u32 %s3483_s17, 4  ;;  %s3423_s7 = smov [#allocation36]   ;;  %s137_s13 = int_to_ptr.hbm [resolvable:$true] %s136_s13 }
  0xe1   :  { %s399_s10 = sshll.u32 %s3423_s7, 4  ;;  %s2898_s15 = sshra.s32 %s398_s14, 4  ;;  %s400_s10 = int_to_ptr.vmem [resolvable:$true] %s399_s10  ;;  %s2899_s15 = int_to_ptr.hbm [resolvable:$true] %s2898_s15 }
  0xe2   :  { %s2900_s9 = scalar_lea.hbm %s2899_s15, 1  ;;  %s2902_s6 = scalar_lea.hbm %s3653_s30, 1 }
  0xe3   :  { %p2901_p8 = scmp.ne.s32.totalorder %s2899_s15, %s2900_s9  ;;  %p2903_p9 = scmp.lt.s32.totalorder %s2899_s15, %s3653_s30 }
  0xe4   :  { %p2904_p10 = scmp.lt.s32.totalorder %s2902_s6, %s2900_s9 }
  0xe6   :  { %p2905_p11 = por %p2904_p10, %p2903_p9 }
  0xe8   :  { %p2906_p12 = pnand %p2905_p11, %p2901_p8 }
  0xea   :  { %2909 = shalt.err (!%p2906_p12)
}
  0xeb   :  { %402 = dma.hbm_to_vmem [thread:$0]  %s398_s14, 16, %s400_s10, [#allocation37]  }
  0xec   :  { %s3424_s27 = smov [#allocation3]   ;;  %s162_s16 = sshll.u32 %s3503_s3, 4  ;;  %s163_s16 = int_to_ptr.hbm [resolvable:$true] %s162_s16 }
  0xed   :  { %s138_s11 = sshll.u32 %s3424_s27, 4  ;;  %s2922_s18 = sshra.s32 %s137_s13, 4  ;;  %s139_s11 = int_to_ptr.vmem [resolvable:$true] %s138_s11  ;;  %s2923_s18 = int_to_ptr.hbm [resolvable:$true] %s2922_s18 }
  0xee   :  { %s2924_s22 = scalar_lea.hbm %s2923_s18, 8  ;;  %s2926_s21 = scalar_lea.hbm %s3483_s17, 8 }
  0xef   :  { %p2925_p13 = scmp.ne.s32.totalorder %s2923_s18, %s2924_s22  ;;  %p2927_p0 = scmp.lt.s32.totalorder %s2923_s18, %s3483_s17 }
  0xf0   :  { %p2928_p1 = scmp.lt.s32.totalorder %s2926_s21, %s2924_s22 }
  0xf2   :  { %p2929_p2 = por %p2928_p1, %p2927_p0 }
  0xf4   :  { %p2930_p3 = pnand %p2929_p2, %p2925_p13 }
  0xf6   :  { %2933 = shalt.err (!%p2930_p3)
}
  0xf7   :  { %141 = dma.hbm_to_vmem [thread:$0]  %s137_s13, 128, %s139_s11, [#allocation4]  }
  0xf8   :  { %s188_s30 = sshll.u32 %s3523_s24, 4  ;;  %s3425_s0 = smov [#allocation8]   ;;  %s189_s30 = int_to_ptr.hbm [resolvable:$true] %s188_s30 }
  0xf9   :  { %s164_s4 = sshll.u32 %s3425_s0, 4  ;;  %s2946_s25 = sshra.s32 %s163_s16, 4  ;;  %s165_s4 = int_to_ptr.vmem [resolvable:$true] %s164_s4  ;;  %s2947_s25 = int_to_ptr.hbm [resolvable:$true] %s2946_s25 }
  0xfa   :  { %s2948_s23 = scalar_lea.hbm %s2947_s25, 1  ;;  %s2950_s28 = scalar_lea.hbm %s3503_s3, 1 }
  0xfb   :  { %p2949_p4 = scmp.ne.s32.totalorder %s2947_s25, %s2948_s23  ;;  %p2951_p5 = scmp.lt.s32.totalorder %s2947_s25, %s3503_s3 }
  0xfc   :  { %p2952_p6 = scmp.lt.s32.totalorder %s2950_s28, %s2948_s23 }
  0xfe   :  { %p2953_p7 = por %p2952_p6, %p2951_p5 }
 0x100   :  { %p2954_p8 = pnand %p2953_p7, %p2949_p4 }
 0x102   :  { %2957 = shalt.err (!%p2954_p8)
}
 0x103   :  { %167 = dma.hbm_to_vmem [thread:$0]  %s163_s16, 16, %s165_s4, [#allocation7]  }
 0x104   :  { %s4146_s17 = sld [smem:[#allocation72_spill]]  ;;  %s3426_s29 = smov [#allocation11]  }
 0x105   :  { %s190_s1 = sshll.u32 %s3426_s29, 4  ;;  %s2970_s12 = sshra.s32 %s189_s30, 4  ;;  %s191_s1 = int_to_ptr.vmem [resolvable:$true] %s190_s1  ;;  %s2971_s12 = int_to_ptr.hbm [resolvable:$true] %s2970_s12 }
 0x106   :  { %s2972_s26 = scalar_lea.hbm %s2971_s12, 1  ;;  %s2974_s2 = scalar_lea.hbm %s3523_s24, 1 }
 0x107   :  { %p2973_p9 = scmp.ne.s32.totalorder %s2971_s12, %s2972_s26  ;;  %p2975_p10 = scmp.lt.s32.totalorder %s2971_s12, %s3523_s24 }
 0x108   :  { %p2976_p11 = scmp.lt.s32.totalorder %s2974_s2, %s2972_s26 }
 0x10a   :  { %s214_s14 = sshll.u32 %s4146_s17, 4  ;;  %p2977_p12 = por %p2976_p11, %p2975_p10  ;;  %s215_s14 = int_to_ptr.hbm [resolvable:$true] %s214_s14 }
 0x10c   :  { %p2978_p13 = pnand %p2977_p12, %p2973_p9 }
 0x10e   :  { %2981 = shalt.err (!%p2978_p13)
}
 0x10f   :  { %193 = dma.hbm_to_vmem [thread:$0]  %s189_s30, 16, %s191_s1, [#allocation10]  }
 0x110   :  { %s4147_s3 = sld [smem:[#allocation74_spill]]  ;;  %s3427_s7 = smov [#allocation14]  }
 0x111   :  { %s216_s10 = sshll.u32 %s3427_s7, 4  ;;  %s2994_s15 = sshra.s32 %s215_s14, 4  ;;  %s217_s10 = int_to_ptr.vmem [resolvable:$true] %s216_s10  ;;  %s2995_s15 = int_to_ptr.hbm [resolvable:$true] %s2994_s15 }
 0x112   :  { %s2996_s9 = scalar_lea.hbm %s2995_s15, 1  ;;  %s2998_s6 = scalar_lea.hbm %s4146_s17, 1 }
 0x113   :  { %p2997_p0 = scmp.ne.s32.totalorder %s2995_s15, %s2996_s9  ;;  %p2999_p1 = scmp.lt.s32.totalorder %s2995_s15, %s4146_s17 }
 0x114   :  { %p3000_p2 = scmp.lt.s32.totalorder %s2998_s6, %s2996_s9 }
 0x116   :  { %s238_s13 = sshll.u32 %s4147_s3, 4  ;;  %p3001_p3 = por %p3000_p2, %p2999_p1  ;;  %s239_s13 = int_to_ptr.hbm [resolvable:$true] %s238_s13 }
 0x118   :  { %p3002_p4 = pnand %p3001_p3, %p2997_p0 }
 0x11a   :  { %3005 = shalt.err (!%p3002_p4)
}
 0x11b   :  { %219 = dma.hbm_to_vmem [thread:$0]  %s215_s14, 16, %s217_s10, [#allocation13]  }
 0x11c   :  { %s4148_s24 = sld [smem:[#allocation76_spill]]  ;;  %s3428_s27 = smov [#allocation17]  }
 0x11d   :  { %s240_s11 = sshll.u32 %s3428_s27, 4  ;;  %s3018_s18 = sshra.s32 %s239_s13, 4  ;;  %s241_s11 = int_to_ptr.vmem [resolvable:$true] %s240_s11  ;;  %s3019_s18 = int_to_ptr.hbm [resolvable:$true] %s3018_s18 }
 0x11e   :  { %s3020_s22 = scalar_lea.hbm %s3019_s18, 1  ;;  %s3022_s21 = scalar_lea.hbm %s4147_s3, 1 }
 0x11f   :  { %p3021_p5 = scmp.ne.s32.totalorder %s3019_s18, %s3020_s22  ;;  %p3023_p6 = scmp.lt.s32.totalorder %s3019_s18, %s4147_s3 }
 0x120   :  { %p3024_p7 = scmp.lt.s32.totalorder %s3022_s21, %s3020_s22 }
 0x122   :  { %s262_s16 = sshll.u32 %s4148_s24, 4  ;;  %p3025_p8 = por %p3024_p7, %p3023_p6  ;;  %s263_s16 = int_to_ptr.hbm [resolvable:$true] %s262_s16 }
 0x124   :  { %p3026_p9 = pnand %p3025_p8, %p3021_p5 }
 0x126   :  { %3029 = shalt.err (!%p3026_p9)
}
 0x127   :  { %243 = dma.hbm_to_vmem [thread:$0]  %s239_s13, 16, %s241_s11, [#allocation16]  }
 0x128   :  { %s4149_s30 = sld [smem:[#allocation78_spill]]  ;;  %s3429_s4 = smov [#allocation20]  }
 0x129   :  { %s264_s25 = sshll.u32 %s3429_s4, 4  ;;  %s3042_s23 = sshra.s32 %s263_s16, 4  ;;  %s265_s25 = int_to_ptr.vmem [resolvable:$true] %s264_s25  ;;  %s3043_s23 = int_to_ptr.hbm [resolvable:$true] %s3042_s23 }
 0x12a   :  { %s3044_s28 = scalar_lea.hbm %s3043_s23, 1  ;;  %s3046_s17 = scalar_lea.hbm %s4148_s24, 1 }
 0x12b   :  { %p3045_p10 = scmp.ne.s32.totalorder %s3043_s23, %s3044_s28  ;;  %p3047_p11 = scmp.lt.s32.totalorder %s3043_s23, %s4148_s24 }
 0x12c   :  { %p3048_p12 = scmp.lt.s32.totalorder %s3046_s17, %s3044_s28 }
 0x12e   :  { %s286_s0 = sshll.u32 %s4149_s30, 4  ;;  %p3049_p13 = por %p3048_p12, %p3047_p11  ;;  %s287_s0 = int_to_ptr.hbm [resolvable:$true] %s286_s0 }
 0x130   :  { %p3050_p0 = pnand %p3049_p13, %p3045_p10 }
 0x132   :  { %3053 = shalt.err (!%p3050_p0)
}
 0x133   :  { %267 = dma.hbm_to_vmem [thread:$0]  %s263_s16, 16, %s265_s25, [#allocation19]  }
 0x134   :  { %s4150_s29 = sld [smem:[#allocation80_spill]]  ;;  %s3430_s1 = smov [#allocation23]  }
 0x135   :  { %s288_s14 = sshll.u32 %s3430_s1, 4  ;;  %s3066_s26 = sshra.s32 %s287_s0, 4  ;;  %s289_s14 = int_to_ptr.vmem [resolvable:$true] %s288_s14  ;;  %s3067_s26 = int_to_ptr.hbm [resolvable:$true] %s3066_s26 }
 0x136   :  { %s3068_s2 = scalar_lea.hbm %s3067_s26, 1  ;;  %s3070_s3 = scalar_lea.hbm %s4149_s30, 1 }
 0x137   :  { %p3069_p1 = scmp.ne.s32.totalorder %s3067_s26, %s3068_s2  ;;  %p3071_p2 = scmp.lt.s32.totalorder %s3067_s26, %s4149_s30 }
 0x138   :  { %p3072_p3 = scmp.lt.s32.totalorder %s3070_s3, %s3068_s2 }
 0x13a   :  { %s310_s12 = sshll.u32 %s4150_s29, 4  ;;  %p3073_p4 = por %p3072_p3, %p3071_p2  ;;  %s311_s12 = int_to_ptr.hbm [resolvable:$true] %s310_s12 }
 0x13c   :  { %p3074_p5 = pnand %p3073_p4, %p3069_p1 }
 0x13e   :  { %3077 = shalt.err (!%p3074_p5)
}
 0x13f   :  { %291 = dma.hbm_to_vmem [thread:$0]  %s287_s0, 16, %s289_s14, [#allocation22]  }
 0x140   :  { %s4151_s13 = sld [smem:[#allocation82_spill]]  ;;  %s3431_s10 = smov [#allocation26]  }
 0x141   :  { %s312_s15 = sshll.u32 %s3431_s10, 4  ;;  %s3090_s9 = sshra.s32 %s311_s12, 4  ;;  %s313_s15 = int_to_ptr.vmem [resolvable:$true] %s312_s15  ;;  %s3091_s9 = int_to_ptr.hbm [resolvable:$true] %s3090_s9 }
 0x142   :  { %s3092_s6 = scalar_lea.hbm %s3091_s9, 1  ;;  %s3094_s24 = scalar_lea.hbm %s4150_s29, 1 }
 0x143   :  { %p3093_p6 = scmp.ne.s32.totalorder %s3091_s9, %s3092_s6  ;;  %p3095_p7 = scmp.lt.s32.totalorder %s3091_s9, %s4150_s29 }
 0x144   :  { %p3096_p8 = scmp.lt.s32.totalorder %s3094_s24, %s3092_s6 }
 0x146   :  { %s333_s7 = sshll.u32 %s4151_s13, 4  ;;  %p3097_p9 = por %p3096_p8, %p3095_p7  ;;  %s3781_s7 = int_to_ptr.hbm [resolvable:$true] %s333_s7 }
 0x148   :  { %p3098_p10 = pnand %p3097_p9, %p3093_p6 }
 0x14a   :  { %3101 = shalt.err (!%p3098_p10)
}
 0x14b   :  { %315 = dma.hbm_to_vmem [thread:$0]  %s311_s12, 16, %s313_s15, [#allocation25]  }
 0x14c   :  { %s3432_s27 = smov [#allocation29]   ;;  %s3114_s16 = sshra.s32 %s3781_s7, 4  ;;  %s3115_s16 = int_to_ptr.hbm [resolvable:$true] %s3114_s16 }
 0x14d   :  { %s335_s11 = sshll.u32 %s3432_s27, 4  ;;  %s3116_s18 = scalar_lea.hbm %s3115_s16, 16  ;;  %s336_s11 = int_to_ptr.vmem [resolvable:$true] %s335_s11 }
 0x14e   :  { %p3117_p11 = scmp.ne.s32.totalorder %s3115_s16, %s3116_s18  ;;  %s3118_s22 = scalar_lea.hbm %s4151_s13, 16 }
 0x14f   :  { %p3119_p12 = scmp.lt.s32.totalorder %s3115_s16, %s4151_s13  ;;  %p3120_p13 = scmp.lt.s32.totalorder %s3118_s22, %s3116_s18 }
 0x151   :  { %p3121_p0 = por %p3120_p13, %p3119_p12 }
 0x153   :  { %p3122_p1 = pnand %p3121_p0, %p3117_p11 }
 0x155   :  { %3125 = shalt.err (!%p3122_p1)
}
 0x156   :  { %s3433_s21 = smov 64   ;;  %s4152_s30 = sld [smem:[#allocation83_spill]] }
 0x157   :  { %s4153_s0 = sld [smem:[#allocation85_spill]]  ;;  %s3434_s4 = smov 4  }
 0x158   :  { %341 = dma.hbm_to_vmem [thread:$0]  %s3781_s7, 256, %s336_s11, [#allocation28], %s3433_s21, %s3433_s21, %s3434_s4  }
 0x159   :  { %s3435_s23 = smov [#allocation32]  }
 0x15a   :  { %s359_s28 = sshll.u32 %s3435_s23, 4  ;;  %s360_s28 = int_to_ptr.vmem [resolvable:$true] %s359_s28 }
 0x15c   :  { %s357_s25 = sshll.u32 %s4152_s30, 4  ;;  %s3142_s14 = scalar_lea.hbm %s4152_s30, 16  ;;  %s358_s25 = int_to_ptr.hbm [resolvable:$true] %s357_s25 }
 0x15d   :  { %s384_s17 = sshll.u32 %s4153_s0, 4  ;;  %s3138_s29 = sshra.s32 %s358_s25, 4  ;;  %s3139_s29 = int_to_ptr.hbm [resolvable:$true] %s3138_s29  ;;  %s385_s17 = int_to_ptr.hbm [resolvable:$true] %s384_s17 }
 0x15e   :  { %s3140_s1 = scalar_lea.hbm %s3139_s29, 16  ;;  %p3143_p3 = scmp.lt.s32.totalorder %s3139_s29, %s4152_s30 }
 0x15f   :  { %p3141_p2 = scmp.ne.s32.totalorder %s3139_s29, %s3140_s1  ;;  %p3144_p4 = scmp.lt.s32.totalorder %s3142_s14, %s3140_s1 }
 0x161   :  { %p3145_p5 = por %p3144_p4, %p3143_p3 }
 0x163   :  { %p3146_p6 = pnand %p3145_p5, %p3141_p2 }
 0x165   :  { %3149 = shalt.err (!%p3146_p6)
}
 0x166   :  { %s4154_s12 = sld [smem:[#allocation90_spill]]  ;;  %s3436_s26 = smov [#allocation35]  }
 0x167   :  { %365 = dma.hbm_to_vmem [thread:$0]  %s358_s25, 256, %s360_s28, [#allocation31], %s3433_s21, %s3433_s21, %s3434_s4  }
 0x168   :  { %s386_s2 = sshll.u32 %s3436_s26, 4  ;;  %s3162_s13 = sshra.s32 %s385_s17, 4  ;;  %s387_s2 = int_to_ptr.vmem [resolvable:$true] %s386_s2  ;;  %s3163_s13 = int_to_ptr.hbm [resolvable:$true] %s3162_s13 }
 0x169   :  { %s3164_s7 = scalar_lea.hbm %s3163_s13, 1  ;;  %s3166_s10 = scalar_lea.hbm %s4153_s0, 1 }
 0x16a   :  { %p3165_p7 = scmp.ne.s32.totalorder %s3163_s13, %s3164_s7  ;;  %p3167_p8 = scmp.lt.s32.totalorder %s3163_s13, %s4153_s0 }
 0x16b   :  { %p3168_p9 = scmp.lt.s32.totalorder %s3166_s10, %s3164_s7 }
 0x16c   :  { %s413_s3 = sshll.u32 %s4154_s12, 4  ;;  %s3798_s3 = int_to_ptr.hbm [resolvable:$true] %s413_s3 }
 0x16d   :  { %p3169_p10 = por %p3168_p9, %p3167_p8 }
 0x16f   :  { %p3170_p11 = pnand %p3169_p10, %p3165_p7 }
 0x171   :  { %3173 = shalt.err (!%p3170_p11)
}
 0x172   :  { %389 = dma.hbm_to_vmem [thread:$0]  %s385_s17, 16, %s387_s2, [#allocation34]  }
 0x173   :  { %s4155_s15 = sld [smem:[#allocation92_spill]]  ;;  %s3437_s9 = smov [#allocation38]  }
 0x174   :  { %s415_s6 = sshll.u32 %s3437_s9, 4  ;;  %s3186_s27 = sshra.s32 %s3798_s3, 4  ;;  %s416_s6 = int_to_ptr.vmem [resolvable:$true] %s415_s6  ;;  %s3187_s27 = int_to_ptr.hbm [resolvable:$true] %s3186_s27 }
 0x175   :  { %s3188_s11 = scalar_lea.hbm %s3187_s27, 2  ;;  %s3190_s16 = scalar_lea.hbm %s4154_s12, 2 }
 0x176   :  { %p3189_p12 = scmp.ne.s32.totalorder %s3187_s27, %s3188_s11  ;;  %p3191_p13 = scmp.lt.s32.totalorder %s3187_s27, %s4154_s12 }
 0x177   :  { %p3192_p0 = scmp.lt.s32.totalorder %s3190_s16, %s3188_s11 }
 0x179   :  { %s429_s24 = sshll.u32 %s4155_s15, 4  ;;  %p3193_p1 = por %p3192_p0, %p3191_p13  ;;  %s430_s24 = int_to_ptr.hbm [resolvable:$true] %s429_s24 }
 0x17b   :  { %p3194_p2 = pnand %p3193_p1, %p3189_p12 }
 0x17d   :  { %3197 = shalt.err (!%p3194_p2)
}
 0x17e   :  { %s3438_s18 = smov 16   ;;  %s3439_s22 = smov 1  }
 0x17f   :  { %421 = dma.hbm_to_vmem [thread:$0]  %s3798_s3, 32, %s416_s6, [#allocation37], %s3438_s18, %s3438_s18, %s3439_s22  }
 0x180   :  { %s3440_s30 = smov [#allocation39]   ;;  %s3210_s4 = sshra.s32 %s430_s24, 4  ;;  %s3211_s4 = int_to_ptr.hbm [resolvable:$true] %s3210_s4 }
 0x181   :  { %s431_s0 = sshll.u32 %s3440_s30, 4  ;;  %s3212_s25 = scalar_lea.hbm %s3211_s4, 1  ;;  %s432_s0 = int_to_ptr.vmem [resolvable:$true] %s431_s0 }
 0x182   :  { %p3213_p3 = scmp.ne.s32.totalorder %s3211_s4, %s3212_s25  ;;  %s3214_s23 = scalar_lea.hbm %s4155_s15, 1 }
 0x183   :  { %p3215_p4 = scmp.lt.s32.totalorder %s3211_s4, %s4155_s15  ;;  %p3216_p5 = scmp.lt.s32.totalorder %s3214_s23, %s3212_s25 }
 0x185   :  { %p3217_p6 = por %p3216_p5, %p3215_p4 }
 0x187   :  { %p3218_p7 = pnand %p3217_p6, %p3213_p3 }
 0x189   :  { %3221 = shalt.err (!%p3218_p7)
}
 0x18a   :  { %434 = dma.hbm_to_vmem [thread:$0]  %s430_s24, 16, %s432_s0, [#allocation40]  }
 0x18b   :  { %3330 = dma.done.wait [#allocation4], 128  }
 0x18c   :  { %3331 = vsyncadd [#allocation4], 4294967168 }
 0x18d   :  { %3332 = dma.done.wait [#allocation7], 32  }
 0x18e   :  { %3333 = vsyncadd [#allocation7], 4294967264 }
 0x18f   :  { %3334 = dma.done.wait [#allocation10], 32  }
 0x190   :  { %3335 = vsyncadd [#allocation10], 4294967264 }
 0x191   :  { %3336 = dma.done.wait [#allocation13], 32  }
 0x192   :  { %3337 = vsyncadd [#allocation13], 4294967264 }
 0x193   :  { %3338 = dma.done.wait [#allocation16], 32  }
 0x194   :  { %3339 = vsyncadd [#allocation16], 4294967264 }
 0x195   :  { %3340 = dma.done.wait [#allocation19], 32  }
 0x196   :  { %3341 = vsyncadd [#allocation19], 4294967264 }
 0x197   :  { %3342 = dma.done.wait [#allocation22], 32  }
 0x198   :  { %3343 = vsyncadd [#allocation22], 4294967264 }
 0x199   :  { %3344 = dma.done.wait [#allocation25], 32  }
 0x19a   :  { %3345 = vsyncadd [#allocation25], 4294967264 }
 0x19b   :  { %3346 = dma.done.wait [#allocation28], 272  }
 0x19c   :  { %3347 = vsyncadd [#allocation28], 4294967024 }
 0x19d   :  { %3348 = dma.done.wait [#allocation31], 272  }
 0x19e   :  { %3349 = vsyncadd [#allocation31], 4294967024 }
 0x19f   :  { %3350 = dma.done.wait [#allocation34], 32  }
 0x1a0   :  { %3351 = vsyncadd [#allocation34], 4294967264 }
 0x1a1   :  { %3352 = dma.done.wait [#allocation37], 48  }
 0x1a2   :  { %3353 = vsyncadd [#allocation37], 4294967248 }
 0x1a3   :  { %3354 = dma.done.wait [#allocation40], 16  }
 0x1a4   :  { %3355 = vsyncadd [#allocation40], 4294967280  ;;  %s4156_s28 = sld [smem:[#allocation67_spill]]  ;;  %vm579_vm0 = vcmask 261120   ;;  %v3828_v11 = vld [vmem:[#allocation3] sm:$0xff]  ;;  %vm686_vm1 = vcmask 130048  }
 0x1a5   :  { %s4157_s17 = sld [smem:[#allocation63_spill]]  ;;  %v2588_v17 = vld [vmem:[#allocation8] ss:$0 sm:$0xff]  ;;  %v2589_v20 = vld [vmem:[#allocation6] ss:$0 sm:$0xff]  ;;  %s3441_s13 = smov 32  }
 0x1a6   :  { %s4158_s29 = sld [smem:[#allocation65_spill]]  ;;  %v2590_v40 = vld [vmem:[#allocation9] ss:$0 sm:$0xff]  ;;  %vm749_vm2 = vcmask 523264   ;;  %v2591_v62 = vld [vmem:[#allocation11] ss:$0 sm:$0xff] }
 0x1a7   :  { %s4159_s1 = sld [smem:[#allocation66_spill]]  ;;  %vm907_vm3 = vcmask 1043456   ;;  %s3442_s7 = smov 72   ;;  %vm870_vm4 = vcmask 64512   ;;  %vm1110_vm5 = vcmask 195584   ;;  %vm1717_vm14 = vcmask 785408  }
 0x1a8   :  { %s4160_s14 = sld [smem:[#allocation64_spill]]  ;;  %s3443_s10 = smov 120   ;;  %vm1349_vm15 = vcmask 39936  }
 0x1a9   :  { %s4161_s12 = sld [smem:[#allocation68_spill]]  ;;  %s3444_s15 = smov 88  }
 0x1aa   :  { %v2414_v0 = vld [vmem:[%s4156_s28 + $0x8] sm:$0xff]  ;;  %v2413_v5 = vld [vmem:[%s4156_s28] sm:$0xff]  ;;  %s4162_s26 = sld [smem:[#allocation69_spill]]  ;;  %s3445_s9 = smov 96  }
 0x1ab   :  { %v3813_v1 = vld [vmem:[%s4157_s17] sm:$0xff]  ;;  %v3816_v2 = vld [vmem:[%s4157_s17 + $0x8] sm:$0xff]  ;;  %623 = vmatpush.bf16.msra.mxu1 %v2414_v0  ;;  %s4163_s2 = sld [smem:[#allocation71_spill]]  ;;  %s3446_s6 = smov 104  }
 0x1ac   :  { %v535_v3 = vld [vmem:[%s4158_s29] sm:$0xff]  ;;  %v536_v4 = vld [vmem:[%s4158_s29 + $0x8] sm:$0xff]  ;;  %v631_v29 = vpack.c.bf16 %v3816_v2, %v3813_v1  ;;  %s4164_s3 = sld [smem:[#allocation70_spill]]  ;;  %s3447_s24 = smov 80  }
 0x1ad   :  { %v596_v6 = vadd.f32 %v535_v3, %v3813_v1  ;;  %v597_v7 = vadd.f32 %v536_v4, %v3816_v2  ;;  %v2412_v8 = vld [vmem:[%s4159_s1 + $0x8] sm:$0xff]  ;;  %v2411_v10 = vld [vmem:[%s4159_s1] sm:$0xff]  ;;  %s3448_s27 = smov 112   ;;  %s4165_s11 = sld [smem:[#allocation73_spill]] }
 0x1ae   :  { %v3825_v9 = vld [vmem:[%s4160_s14] sm:$0xff]  ;;  %589 = vmatpush.bf16.msra.mxu0 %v2412_v8  ;;  %v2593_v8 = vld [vmem:[#allocation12] ss:$0 sm:$0xff]  ;;  %s3449_s16 = smov 8   ;;  %s3450_s22 = smov 24  }
 0x1af   :  { %v562_v12 = vadd.f32 %v3828_v11, %v3825_v9  ;;  %v3832_v13 = vpack.c.bf16 %v597_v7, %v596_v6  ;;  %624 = vmatpush.bf16.msra.mxu1 %v2413_v5  ;;  %v2416_v27 = vld [vmem:[%s4161_s12 + $0x8] sm:$0xff]  ;;  %v2415_v28 = vld [vmem:[%s4161_s12] sm:$0xff]  ;;  %v2592_v7 = vld [vmem:[#allocation14] ss:$0 sm:$0xff]  ;;  %s4167_s30 = sld [smem:[#allocation77_spill]]  ;;  %s3453_s17 = smov 101  }
 0x1b0   :  { %656 = vmatpush.bf16.msra.mxu2 %v2416_v27  ;;  %v2420_v49 = vld [vmem:[%s4162_s26 + $0x18] sm:$0xff]  ;;  %v2419_v50 = vld [vmem:[%s4162_s26 + $0x10] sm:$0xff]  ;;  %v2418_v51 = vld [vmem:[%s4162_s26 + $0x8] sm:$0xff]  ;;  %s4168_s0 = sld [smem:[#allocation79_spill]]  ;;  %s3454_s14 = smov 100  }
 0x1b1   :  { %v563_v14 = vpack.c.bf16 %v562_v12, %v562_v12  ;;  %v2417_v54 = vld [vmem:[%s4162_s26] sm:$0xff]  ;;  %v2424_v55 = vld [vmem:[%s4163_s2 + $0x8] sm:$0xff]  ;;  %s4169_s4 = sld [smem:[#allocation81_spill]]  ;;  %s3455_s12 = smov [#allocation42]  }
 0x1b2   :  { %590 = vmatpush.bf16.msra.mxu0 %v2411_v10  ;;  %2163 = vmatmul.msk.bf16.vlgmr.msra.gmra.mxu1 %vm579_vm0, %v3832_v13  ;;  %v2422_v59 = vld [vmem:[%s4164_s3 + $0x8] sm:$0xff]  ;;  %v2423_v60 = vld [vmem:[%s4163_s2] sm:$0xff]  ;;  %s4170_s25 = sld [smem:[#allocation84_spill]]  ;;  %s2019_s26 = sshll.u32 %s3455_s12, 4  ;;  %s2020_s26 = int_to_ptr.vmem [resolvable:$true] %s2019_s26 }
 0x1b3   :  { %757 = vmatpush.bf16.msrb.mxu1 %v2420_v49  ;;  %v2421_v61 = vld [vmem:[%s4164_s3] sm:$0xff]  ;;  %s4173_s23 = sld [smem:[#allocation89_spill]] }
 0x1b4   :  { %657 = vmatpush.bf16.msra.mxu2 %v2415_v28  ;;  %s4174_s28 = sld [smem:[#allocation88_spill]] }
 0x1b5   :  { %2154 = vmatmul.msk.bf16.vlgmr.msra.gmra.mxu0 %vm579_vm0, %v563_v14  ;;  %s4175_s29 = sld [smem:[#allocation96_spill]] }
 0x1b6   :  { %s4177_s1 = sld [smem:[#allocation94_spill]] }
 0x1b7   :  { %2172 = vmatmul.msk.bf16.vlgmr.msra.gmra.mxu2 %vm579_vm0, %v631_v29  ;;  %758 = vmatpush.bf16.msrb.mxu1 %v2419_v50 }
 0x1b8   :  { %827 = vmatpush.bf16.msrb.mxu2 %v2422_v59 }
 0x1bb   :  { %759 = vmatpush.bf16.msrb.mxu1 %v2418_v51 }
 0x1bc   :  { %828 = vmatpush.bf16.msrb.mxu2 %v2421_v61  ;;  %s2021_s2 = sshll.u32 %s4177_s1, 4  ;;  %s2022_s2 = int_to_ptr.hbm [resolvable:$true] %s2021_s2 }
 0x1bd   :  { %s3246_s3 = sshra.s32 %s2022_s2, 4  ;;  %s3247_s3 = int_to_ptr.hbm [resolvable:$true] %s3246_s3 }
 0x1be   :  { %p3251_p9 = scmp.lt.s32.totalorder %s3247_s3, %s4177_s1 }
 0x1bf   :  { %760 = vmatpush.bf16.msrb.mxu1 %v2417_v54 }
 0x22f   :  { %v626_v15 = vpop.f32.mrf.mxu1 }
 0x230   :  { %v627_v19 = vadd.f32 %v2588_v17, %v626_v15 }
 0x232   :  { %v592_v16 = vpop.f32.mrf.mxu0 }
 0x233   :  { %v593_v24 = vadd.f32 %v2589_v20, %v592_v16 }
 0x235   :  { %v664_v26 = vpack.c.bf16 %v593_v24, %v593_v24 }
 0x237   :  { %v628_v18 = vpop.f32.mrf.mxu1 }
 0x238   :  { %v629_v21 = vadd.f32 %v2588_v17, %v628_v18 }
 0x23a   :  { %v594_v22 = vpop.f32.mrf.mxu0  ;;  %v665_v23 = vpack.c.bf16 %v629_v21, %v627_v19  ;;  %v659_v39 = vpop.f32.mrf.mxu2 }
 0x23b   :  { %v660_v42 = vadd.f32 %v2590_v40, %v659_v39 }
 0x23c   :  { %v670_v25 = vsel %vm579_vm0, %v665_v23, 0 }
 0x23d   :  { %679 = vmatpush.bf16.xpose.msra.mxu3 %v670_v25 }
 0x242   :  { %v661_v41 = vpop.f32.mrf.mxu2 }
 0x243   :  { %v662_v43 = vadd.f32 %v2590_v40, %v661_v41 }
 0x244   :  { %2173 = vmatmul.msk.bf16.vlgmr.msra.gmra.mxu3 %vm579_vm0, %v664_v26 }
 0x245   :  { %v699_v44 = vpack.c.bf16 %v662_v43, %v660_v42  ;;  %859 = vmatpush.bf16.msrb.mxu3 %v2424_v55 }
 0x247   :  { %710 = vmatpush.bf16.msrb.mxu0 %v699_v44 }
 0x249   :  { %860 = vmatpush.bf16.msrb.mxu3 %v2423_v60 }
 0x2c7   :  { %v681_v30 = vpop.f32.mrf.mxu3 }
 0x2c8   :  { %v685_v31 = vmul.f32 0.17677669, %v681_v30 }
 0x2ca   :  { %v687_v32 = vsel %vm686_vm1, %v685_v31, -inf  ;;  %767 = vst.msk [vmem:[#allocation45] sm:$0xff] %vm686_vm1, %v685_v31 }
 0x2cb   :  { %688 = vmax.xlane.f32.xlu0 %v687_v32 }
 0x2cf   :  { %v683_v33 = vpop.f32.mrf.mxu3 }
 0x33e   :  { %v689_v34 = vpop.xlane.xlu0 %688 }
 0x33f   :  { %v690_v35 = vsub.f32 %v685_v31, %v689_v34 }
 0x341   :  { %v691_v36 = vmul.f32 1.442695, %v690_v35 }
 0x343   :  { %2612 = vpow2.f32 %v691_v36 }
 0x349   :  { %v2613_v37 = vpop.eup %2612 }
 0x34a   :  { %v693_v38 = vsel %vm686_vm1, %v2613_v37, 0.0 }
 0x34b   :  { %694 = vadd.xlane.f32.xlu0 %v693_v38 }
 0x3be   :  { %v695_v45 = vpop.xlane.xlu0 %694 }
 0x3bf   :  { %2614 = vrcp.f32 %v695_v45 }
 0x3c5   :  { %v2615_v46 = vpop.eup %2614 }
 0x3c6   :  { %v697_v47 = vmul.f32 %v2615_v46, %v2613_v37 }
 0x3c8   :  { %766 = vst.msk [vmem:[#allocation44] sm:$0xff] %vm686_vm1, %v697_v47  ;;  %v698_v48 = vpack.c.bf16 %v697_v47, %v697_v47 }
 0x3ca   :  { %2174 = vmatmul.msk.bf16.vlgmr.msrb.gmra.mxu0 %vm686_vm1, %v698_v48 }
 0x447   :  { %v712_v52 = vpop.f32.mrf.mxu0 }
 0x448   :  { %717 = vrot.lane.b32.xlu1 %v712_v52, %s3441_s13 }
 0x44f   :  { %v714_v53 = vpop.f32.mrf.mxu0 }
 0x4ba   :  { %v718_v56 = vpop.permute.xlu1 %717 }
 0x4bb   :  { %v720_v57 = vsel %vm579_vm0, %v3825_v9, %v718_v56 }
 0x4bc   :  { %v721_v58 = vpack.c.bf16 %v720_v57, %v720_v57 }
 0x4be   :  { %2191 = vmatmul.msk.bf16.vlgmr.msrb.gmra.mxu1 %vm749_vm2, %v721_v58 }
 0x53b   :  { %v762_v63 = vpop.f32.mrf.mxu1 }
 0x53c   :  { %v3861_v0 = vadd.f32 %v2591_v62, %v762_v63 }
 0x53e   :  { %v801_v3 = vadd.f32 %v3861_v0, %v3828_v11  ;;  %v834_v4 = vpack.c.bf16 %v3861_v0, %v3861_v0 }
 0x540   :  { %v802_v5 = vpack.c.bf16 %v801_v3, %v801_v3  ;;  %2209 = vmatmul.msk.bf16.vlgmr.msrb.gmra.mxu3 %vm579_vm0, %v834_v4 }
 0x542   :  { %2200 = vmatmul.msk.bf16.vlgmr.msrb.gmra.mxu2 %vm579_vm0, %v802_v5 }
 0x543   :  { %v764_v6 = vpop.f32.mrf.mxu1 }
 0x5c3   :  { %v862_v9 = vpop.f32.mrf.mxu3 }
 0x5c4   :  { %v863_v10 = vadd.f32 %v2592_v7, %v862_v9 }
 0x5c5   :  { %v830_v12 = vpop.f32.mrf.mxu2 }
 0x5c6   :  { %v3869_v14 = vpack.c.bf16 %v863_v10, %v863_v10  ;;  %v831_v15 = vadd.f32 %v2593_v8, %v830_v12 }
 0x5c8   :  { %v866_v16 = vpack.c.bf16 %v831_v15, %v831_v15  ;;  %v909_v17 = vsel %vm907_vm3, %v3869_v14, 0 }
 0x5c9   :  { %918 = vmatpush.bf16.msra.mxu1 %v909_v17 }
 0x5ca   :  { %1041 = vrot.lane.b32.xlu0 %v866_v16, %s3442_s7  ;;  %924 = vrot.lane.b32.xlu2 %v866_v16, %s3443_s10  ;;  %s3250_s7 = scalar_lea.hbm %s4177_s1, 8 }
 0x5cb   :  { %926 = vrot.lane.b32.xlu1 %v866_v16, %s3444_s15  ;;  %v864_v18 = vpop.f32.mrf.mxu3 }
 0x5cd   :  { %v832_v19 = vpop.f32.mrf.mxu2 }
 0x5d2   :  { %868 = vrot.lane.b32.xlu2 %v866_v16, %s3445_s9 }
 0x5d3   :  { %1039 = vrot.lane.b32.xlu1 %v866_v16, %s3446_s6 }
 0x5da   :  { %984 = vrot.lane.b32.xlu2 %v866_v16, %s3447_s24 }
 0x5db   :  { %982 = vrot.lane.b32.xlu1 %v866_v16, %s3448_s27 }
 0x624   :  { %v925_v20 = vpop.permute.xlu2 %924 }
 0x62c   :  { %v869_v21 = vpop.permute.xlu2 %868 }
 0x62d   :  { %v875_v22 = vsel %vm870_vm4, %v869_v21, 0 }
 0x62e   :  { %884 = vmatpush.bf16.xpose.msra.mxu0 %v875_v22 }
 0x634   :  { %v985_v23 = vpop.permute.xlu2 %984 }
 0x635   :  { %v990_v24 = vsel %vm870_vm4, %v985_v23, 0  ;;  %2210 = vmatmul.msk.bf16.vlgmr.msra.gmra.mxu0 %vm870_vm4, %v866_v16 }
 0x636   :  { %999 = vmatpush.bf16.xpose.msrb.mxu0 %v990_v24 }
 0x63c   :  { %v1042_v25 = vpop.permute.xlu0 %1041 }
 0x63d   :  { %v1047_v26 = vsel %vm870_vm4, %v1042_v25, 0  ;;  %v927_v27 = vpop.permute.xlu1 %926 }
 0x63e   :  { %v932_v28 = vsel %vm870_vm4, %v927_v27, 0 }
 0x63f   :  { %941 = vmatpush.bf16.xpose.msra.mxu2 %v932_v28 }
 0x645   :  { %v1040_v29 = vpop.permute.xlu1 %1039 }
 0x646   :  { %2212 = vmatmul.msk.bf16.vlgmr.msra.gmra.mxu2 %vm870_vm4, %v925_v20 }
 0x647   :  { %1056 = vmatpush.bf16.xpose.msrb.mxu2 %v1047_v26 }
 0x64d   :  { %v983_v30 = vpop.permute.xlu1 %982 }
 0x64e   :  { %2214 = vmatmul.msk.bf16.vlgmr.msrb.gmra.mxu0 %vm870_vm4, %v983_v30 }
 0x656   :  { %2216 = vmatmul.msk.bf16.vlgmr.msrb.gmra.mxu2 %vm870_vm4, %v1040_v29 }
 0x6b2   :  { %v886_v31 = vpop.f32.mrf.mxu0 }
 0x6b3   :  { %v890_v32 = vmul.f32 0.35355338, %v886_v31 }
 0x6b5   :  { %v891_v33 = vsel %vm870_vm4, %v890_v32, -inf }
 0x6b6   :  { %892 = vmax.xlane.f32.xlu1 %v891_v33 }
 0x6ba   :  { %v888_v34 = vpop.f32.mrf.mxu0 }
 0x6c9   :  { %v943_v35 = vpop.f32.mrf.mxu2 }
 0x6ca   :  { %v947_v36 = vmul.f32 0.35355338, %v943_v35 }
 0x6cb   :  { %v1001_v37 = vpop.f32.mrf.mxu0 }
 0x6cc   :  { %v948_v38 = vsel %vm870_vm4, %v947_v36, -inf  ;;  %v1005_v39 = vmul.f32 0.35355338, %v1001_v37 }
 0x6cd   :  { %949 = vmax.xlane.f32.xlu2 %v948_v38  ;;  %v2426_v38 = vld [vmem:[%s4165_s11 + $0x8] sm:$0xff] }
 0x6ce   :  { %v1006_v42 = vsel %vm870_vm4, %v1005_v39, -inf  ;;  %1137 = vmatpush.bf16.msra.mxu0 %v2426_v38 }
 0x6d1   :  { %v945_v40 = vpop.f32.mrf.mxu2 }
 0x6d3   :  { %v1003_v41 = vpop.f32.mrf.mxu0 }
 0x6d5   :  { %1007 = vmax.xlane.f32.xlu2 %v1006_v42 }
 0x6d9   :  { %v1058_v43 = vpop.f32.mrf.mxu2 }
 0x6da   :  { %v1062_v44 = vmul.f32 0.35355338, %v1058_v43 }
 0x6dc   :  { %v1063_v45 = vsel %vm870_vm4, %v1062_v44, -inf }
 0x6dd   :  { %1064 = vmax.xlane.f32.xlu0 %v1063_v45 }
 0x6e1   :  { %v1060_v46 = vpop.f32.mrf.mxu2 }
 0x6f1   :  { %961 = vrot.lane.b32.xlu0 %v3869_v14, %s3443_s10 }
 0x729   :  { %v893_v47 = vpop.xlane.xlu1 %892 }
 0x72a   :  { %v894_v48 = vsub.f32 %v890_v32, %v893_v47  ;;  %v2594_v47 = vld [vmem:[#allocation15] ss:$0 sm:$0xff] }
 0x72c   :  { %v895_v49 = vmul.f32 1.442695, %v894_v48 }
 0x72e   :  { %2616 = vpow2.f32 %v895_v49 }
 0x734   :  { %v2617_v50 = vpop.eup %2616 }
 0x735   :  { %v897_v51 = vsel %vm870_vm4, %v2617_v50, 0.0 }
 0x736   :  { %898 = vadd.xlane.f32.xlu1 %v897_v51 }
 0x740   :  { %v950_v52 = vpop.xlane.xlu2 %949 }
 0x741   :  { %v951_v53 = vsub.f32 %v947_v36, %v950_v52 }
 0x743   :  { %v952_v54 = vmul.f32 1.442695, %v951_v53  ;;  %v3451_v53 = vmov 32.0  }
 0x745   :  { %2618 = vpow2.f32 %v952_v54 }
 0x748   :  { %v1008_v55 = vpop.xlane.xlu2 %1007 }
 0x749   :  { %v1009_v56 = vsub.f32 %v1005_v39, %v1008_v55  ;;  %v2425_v39 = vld [vmem:[%s4165_s11] sm:$0xff] }
 0x74a   :  { %1138 = vmatpush.bf16.msra.mxu0 %v2425_v39 }
 0x74b   :  { %v2619_v57 = vpop.eup %2618  ;;  %v1010_v58 = vmul.f32 1.442695, %v1009_v56 }
 0x74c   :  { %v954_v59 = vsel %vm870_vm4, %v2619_v57, 0.0 }
 0x74d   :  { %2620 = vpow2.f32 %v1010_v58  ;;  %955 = vadd.xlane.f32.xlu2 %v954_v59 }
 0x750   :  { %v1065_v60 = vpop.xlane.xlu0 %1064 }
 0x751   :  { %v1066_v61 = vsub.f32 %v1062_v44, %v1065_v60 }
 0x753   :  { %v2621_v62 = vpop.eup %2620  ;;  %v1067_v63 = vmul.f32 1.442695, %v1066_v61 }
 0x754   :  { %v1012_v3 = vsel %vm870_vm4, %v2621_v62, 0.0 }
 0x755   :  { %2622 = vpow2.f32 %v1067_v63  ;;  %1013 = vadd.xlane.f32.xlu1 %v1012_v3 }
 0x75b   :  { %v2623_v4 = vpop.eup %2622 }
 0x75c   :  { %v1069_v5 = vsel %vm870_vm4, %v2623_v4, 0.0 }
 0x75d   :  { %1070 = vadd.xlane.f32.xlu2 %v1069_v5  ;;  %v2432_v5 = vld [vmem:[%s4167_s30 + $0x18] sm:$0xff] }
 0x75e   :  { %1247 = vmatpush.bf16.msra.mxu2 %v2432_v5 }
 0x763   :  { %v962_v6 = vpop.permute.xlu0 %961 }
 0x764   :  { %v967_v7 = vsel %vm907_vm3, %v962_v6, 0 }
 0x765   :  { %976 = vmatpush.bf16.msra.mxu3 %v967_v7 }
 0x76e   :  { %1018 = vrot.lane.b32.xlu1 %v3869_v14, %s3448_s27 }
 0x775   :  { %1075 = vrot.lane.b32.xlu2 %v3869_v14, %s3446_s6 }
 0x7a9   :  { %v899_v8 = vpop.xlane.xlu1 %898 }
 0x7aa   :  { %2624 = vrcp.f32 %v899_v8  ;;  %v2431_v8 = vld [vmem:[%s4167_s30 + $0x10] sm:$0xff] }
 0x7ab   :  { %1248 = vmatpush.bf16.msra.mxu2 %v2431_v8 }
 0x7b0   :  { %v2625_v9 = vpop.eup %2624 }
 0x7b1   :  { %v901_v10 = vmul.f32 %v2625_v9, %v2617_v50 }
 0x7b3   :  { %v902_v12 = vpack.c.bf16 %v901_v10, %v901_v10 }
 0x7b5   :  { %2211 = vmatmul.msk.bf16.vlgmr.msra.gmra.mxu1 %vm870_vm4, %v902_v12 }
 0x7c0   :  { %v956_v15 = vpop.xlane.xlu2 %955 }
 0x7c1   :  { %2626 = vrcp.f32 %v956_v15 }
 0x7c7   :  { %v2627_v16 = vpop.eup %2626 }
 0x7c8   :  { %v958_v17 = vmul.f32 %v2627_v16, %v2619_v57  ;;  %v1014_v20 = vpop.xlane.xlu1 %1013 }
 0x7ca   :  { %v959_v18 = vpack.c.bf16 %v958_v17, %v958_v17 }
 0x7cc   :  { %2213 = vmatmul.msk.bf16.vlgmr.msra.gmra.mxu3 %vm870_vm4, %v959_v18 }
 0x7d0   :  { %v1071_v19 = vpop.xlane.xlu2 %1070 }
 0x7d1   :  { %2628 = vrcp.f32 %v1071_v19  ;;  %v2595_v19 = vld [vmem:[#allocation17] ss:$0 sm:$0xff] }
 0x7d2   :  { %2630 = vrcp.f32 %v1014_v20 }
 0x7d3   :  { %2632 = vrcp.f32 %v3451_v53 }
 0x7d7   :  { %v2629_v21 = vpop.eup %2628 }
 0x7d8   :  { %v1073_v14 = vmul.f32 %v2629_v21, %v2623_v4  ;;  %v1076_v22 = vpop.permute.xlu2 %1075  ;;  %v2631_v25 = vpop.eup %2630  ;;  %v2596_v21 = vld [vmem:[#allocation18] ss:$0 sm:$0xff] }
 0x7d9   :  { %v1081_v23 = vsel %vm907_vm3, %v1076_v22, 0  ;;  %v1016_v26 = vmul.f32 %v2631_v25, %v2621_v62  ;;  %v2633_v54 = vpop.eup %2632  ;;  %v2430_v25 = vld [vmem:[%s4167_s30 + $0x8] sm:$0xff] }
 0x7da   :  { %v1074_v24 = vpack.c.bf16 %v1073_v14, %v1073_v14  ;;  %1090 = vmatpush.bf16.msrb.mxu3 %v1081_v23  ;;  %v1149_v55 = vmul.f32 32.0, %v2633_v54  ;;  %vm1153_vm6 = vweird.f32 %v2633_v54  ;;  %1249 = vmatpush.bf16.msra.mxu2 %v2430_v25 }
 0x7db   :  { %v1017_v29 = vpack.c.bf16 %v1016_v26, %v1016_v26  ;;  %v2429_v26 = vld [vmem:[%s4167_s30] sm:$0xff] }
 0x7dc   :  { %v1150_v56 = vsub.f32 1.0, %v1149_v55  ;;  %v2599_v55 = vld [vmem:[#allocation23] ss:$0 sm:$0xff] }
 0x7dd   :  { %2217 = vmatmul.msk.bf16.vlgmr.msrb.gmra.mxu3 %vm870_vm4, %v1074_v24 }
 0x7de   :  { %v1151_v57 = vmul.f32 %v2633_v54, %v1150_v56  ;;  %1250 = vmatpush.bf16.msra.mxu2 %v2429_v26 }
 0x7e0   :  { %v1019_v27 = vpop.permute.xlu1 %1018  ;;  %v1152_v58 = vadd.f32 %v2633_v54, %v1151_v57 }
 0x7e1   :  { %v1024_v28 = vsel %vm907_vm3, %v1019_v27, 0  ;;  %v2597_v27 = vld [vmem:[#allocation20] ss:$0 sm:$0xff] }
 0x7e2   :  { %1033 = vmatpush.bf16.msrb.mxu1 %v1024_v28  ;;  %v3914_v59 = vsel %vm1153_vm6, %v2633_v54, %v1152_v58  ;;  %v2600_v58 = vld [vmem:[#allocation24] ss:$0 sm:$0xff] }
 0x7e5   :  { %2215 = vmatmul.msk.bf16.vlgmr.msrb.gmra.mxu1 %vm870_vm4, %v1017_v29 }
 0x832   :  { %v920_v30 = vpop.f32.mrf.mxu1 }
 0x83a   :  { %v922_v31 = vpop.f32.mrf.mxu1 }
 0x84f   :  { %v978_v32 = vpop.f32.mrf.mxu3 }
 0x850   :  { %1097 = vrot.lane.b32.xlu0 %v978_v32, %s3449_s16 }
 0x857   :  { %v980_v33 = vpop.f32.mrf.mxu3 }
 0x858   :  { %v2598_v33 = vld [vmem:[#allocation21] ss:$0 sm:$0xff] }
 0x860   :  { %v1092_v34 = vpop.f32.mrf.mxu3 }
 0x861   :  { %1105 = vrot.lane.b32.xlu2 %v1092_v34, %s3450_s22 }
 0x862   :  { %v1035_v35 = vpop.f32.mrf.mxu1 }
 0x863   :  { %1101 = vrot.lane.b32.xlu0 %v1035_v35, %s3438_s18  ;;  %s4166_s18 = sld [smem:[#allocation75_spill]] }
 0x868   :  { %v1094_v36 = vpop.f32.mrf.mxu3 }
 0x869   :  { %v2428_v3 = vld [vmem:[%s4166_s18 + $0x8] sm:$0xff]  ;;  %v2427_v4 = vld [vmem:[%s4166_s18] sm:$0xff] }
 0x86a   :  { %v1037_v37 = vpop.f32.mrf.mxu1  ;;  %1207 = vmatpush.bf16.msra.mxu1 %v2428_v3 }
 0x86e   :  { %1208 = vmatpush.bf16.msra.mxu1 %v2427_v4 }
 0x8bb   :  { %v1106_v43 = vpop.permute.xlu2 %1105 }
 0x8c2   :  { %v1098_v40 = vpop.permute.xlu0 %1097 }
 0x8c3   :  { %v1108_v41 = vsel %vm870_vm4, %v920_v30, %v1098_v40 }
 0x8d5   :  { %v1102_v42 = vpop.permute.xlu0 %1101 }
 0x8d6   :  { %v1109_v44 = vsel %vm686_vm1, %v1108_v41, %v1102_v42 }
 0x8d7   :  { %v1111_v45 = vsel %vm1110_vm5, %v1109_v44, %v1106_v43  ;;  %v2434_v44 = vld [vmem:[%s4168_s0 + $0x8] sm:$0xff] }
 0x8d8   :  { %v1112_v46 = vpack.c.bf16 %v1111_v45, %v1111_v45  ;;  %1321 = vmatpush.bf16.msra.mxu3 %v2434_v44  ;;  %v2433_v45 = vld [vmem:[%s4168_s0] sm:$0xff] }
 0x8da   :  { %2226 = vmatmul.msk.bf16.vlgmr.msra.gmra.mxu0 %vm579_vm0, %v1112_v46 }
 0x8dc   :  { %1322 = vmatpush.bf16.msra.mxu3 %v2433_v45 }
 0x957   :  { %v1140_v48 = vpop.f32.mrf.mxu0 }
 0x958   :  { %v1141_v49 = vadd.f32 %v2594_v47, %v1140_v48 }
 0x95a   :  { %v1144_v50 = vadd.f32 %v1141_v49, %v3861_v0 }
 0x95c   :  { %v1145_v51 = vsel %vm579_vm0, %v1144_v50, 0.0 }
 0x95d   :  { %1146 = vadd.xlane.f32.xlu0 %v1145_v51 }
 0x95f   :  { %v1142_v52 = vpop.f32.mrf.mxu0 }
 0x9d0   :  { %v1147_v60 = vpop.xlane.xlu0 %1146 }
 0x9d1   :  { %v1155_v0 = vmul.f32 %v3914_v59, %v1147_v60 }
 0x9d3   :  { %v1156_v61 = vsub.f32 %v1144_v50, %v1155_v0 }
 0x9d5   :  { %v1157_v62 = vmul.f32 %v1156_v61, %v1156_v61 }
 0x9d7   :  { %v1158_v63 = vsel %vm579_vm0, %v1157_v62, 0.0 }
 0x9d8   :  { %1159 = vadd.xlane.f32.xlu1 %v1158_v63  ;;  %v2601_v63 = vld [vmem:[#allocation26] ss:$0 sm:$0xff] }
 0xa4b   :  { %v1160_v6 = vpop.xlane.xlu1 %1159 }
 0xa4c   :  { %v1161_v7 = vmul.f32 %v1160_v6, %v3914_v59 }
 0xa4e   :  { %v1162_v9 = vadd.f32 1e-05, %v1161_v7 }
 0xa50   :  { %2634 = vrsqrt.f32 %v1162_v9  ;;  %vm1169_vm8 = vweird.f32 %v1162_v9 }
 0xa56   :  { %v2635_v10 = vpop.eup %2634 }
 0xa57   :  { %v1164_v12 = vmul.f32 %v2635_v10, %v1162_v9  ;;  %vm1170_vm7 = vweird.f32 %v2635_v10 }
 0xa58   :  { %vm1171_vm9 = vmor %vm1169_vm8, %vm1170_vm7 }
 0xa59   :  { %v1165_v15 = vmul.f32 %v2635_v10, %v1164_v12 }
 0xa5b   :  { %v1166_v16 = vmul.f32 0.5, %v1165_v15 }
 0xa5d   :  { %v1167_v17 = vsub.f32 1.5, %v1166_v16  ;;  %v2436_v16 = vld [vmem:[%s4169_s4 + $0x8] sm:$0xff] }
 0xa5e   :  { %1396 = vmatpush.bf16.msrb.mxu0 %v2436_v16  ;;  %v2441_v16 = vld [vmem:[%s4170_s25] sm:$0xff] }
 0xa5f   :  { %v1168_v18 = vmul.f32 %v2635_v10, %v1167_v17  ;;  %v2435_v17 = vld [vmem:[%s4169_s4] sm:$0xff] }
 0xa61   :  { %v1172_v20 = vsel %vm1171_vm9, %v2635_v10, %v1168_v18  ;;  %v2440_v18 = vld [vmem:[#allocation32 + $0x8] sm:$0xff] }
 0xa62   :  { %v1173_v14 = vmul.f32 %v1172_v20, %v1156_v61  ;;  %1397 = vmatpush.bf16.msrb.mxu0 %v2435_v17  ;;  %1462 = vmatpush.bf16.msrb.mxu2 %v2440_v18  ;;  %v2439_v20 = vld [vmem:[#allocation32] sm:$0xff] }
 0xa64   :  { %v1177_v22 = vmul.f32 %v2595_v19, %v1173_v14  ;;  %v2438_v19 = vld [vmem:[#allocation29 + $0x8] sm:$0xff] }
 0xa65   :  { %2270 = vmatmul.msk.bf16.vlgmr.msrb.gmra.mxu0 %vm579_vm0, %v3832_v13  ;;  %1430 = vmatpush.bf16.msrb.mxu1 %v2438_v19 }
 0xa66   :  { %v1181_v23 = vadd.f32 %v2596_v21, %v1177_v22  ;;  %1463 = vmatpush.bf16.msrb.mxu2 %v2439_v20  ;;  %v2437_v21 = vld [vmem:[#allocation29] sm:$0xff] }
 0xa68   :  { %v1182_v24 = vpack.c.bf16 %v1181_v23, %v1181_v23 }
 0xa69   :  { %1431 = vmatpush.bf16.msrb.mxu1 %v2437_v21 }
 0xa6a   :  { %2235 = vmatmul.msk.bf16.vlgmr.msra.gmra.mxu1 %vm579_vm0, %v1182_v24 }
 0xae7   :  { %v1210_v28 = vpop.f32.mrf.mxu1 }
 0xae8   :  { %v1211_v29 = vadd.f32 %v2597_v27, %v1210_v28  ;;  %v1399_v27 = vpop.f32.mrf.mxu0  ;;  %v2603_v28 = vld [vmem:[#allocation30] ss:$0 sm:$0xff] }
 0xaea   :  { %v1214_v30 = vmax.f32 %v1211_v29, 0.0 }
 0xaec   :  { %v1215_v31 = vpack.c.bf16 %v1214_v30, %v1214_v30 }
 0xaee   :  { %2252 = vmatmul.msk.bf16.vlgmr.msra.gmra.mxu2 %vm749_vm2, %v1215_v31  ;;  %v2604_v31 = vld [vmem:[#allocation33] ss:$0 sm:$0xff] }
 0xaef   :  { %v1212_v32 = vpop.f32.mrf.mxu1 }
 0xaf0   :  { %v2602_v32 = vld [vmem:[#allocation27] ss:$0 sm:$0xff] }
 0xb71   :  { %v1252_v34 = vpop.f32.mrf.mxu2 }
 0xb72   :  { %v1256_v35 = vadd.f32 %v1252_v34, %v1181_v23 }
 0xb74   :  { %v1260_v36 = vadd.f32 %v2598_v33, %v1256_v35  ;;  %v1401_v35 = vpop.f32.mrf.mxu0 }
 0xb76   :  { %v1261_v37 = vsel %vm579_vm0, %v1260_v36, 0.0 }
 0xb77   :  { %1262 = vadd.xlane.f32.xlu2 %v1261_v37 }
 0xb79   :  { %v1254_v38 = vpop.f32.mrf.mxu2 }
 0xbea   :  { %v1263_v39 = vpop.xlane.xlu2 %1262 }
 0xbeb   :  { %v1264_v40 = vmul.f32 %v1263_v39, %v3914_v59  ;;  %v1402_v39 = vadd.f32 %v2602_v32, %v1401_v35 }
 0xbed   :  { %v1265_v41 = vsub.f32 %v1260_v36, %v1264_v40 }
 0xbef   :  { %v1266_v42 = vmul.f32 %v1265_v41, %v1265_v41 }
 0xbf1   :  { %v1267_v43 = vsel %vm579_vm0, %v1266_v42, 0.0 }
 0xbf2   :  { %1268 = vadd.xlane.f32.xlu0 %v1267_v43 }
 0xc65   :  { %v1269_v46 = vpop.xlane.xlu0 %1268 }
 0xc66   :  { %v1270_v47 = vmul.f32 %v1269_v46, %v3914_v59  ;;  %v1328_v59 = vlaneseq }
 0xc68   :  { %v1271_v48 = vadd.f32 1e-05, %v1270_v47  ;;  %v3934_v62 = vand.u32 127, %v1328_v59 }
 0xc6a   :  { %2636 = vrsqrt.f32 %v1271_v48  ;;  %vm1278_vm11 = vweird.f32 %v1271_v48  ;;  %vm1330_vm13 = vcmp.ge.s32.totalorder %v3934_v62, 27  ;;  %vm1961_vm1 = vcmp.ge.s32.totalorder %v3934_v62, 28 }
 0xc70   :  { %v2637_v49 = vpop.eup %2636 }
 0xc71   :  { %v1273_v50 = vmul.f32 %v2637_v49, %v1271_v48  ;;  %vm1279_vm10 = vweird.f32 %v2637_v49 }
 0xc72   :  { %vm1280_vm12 = vmor %vm1278_vm11, %vm1279_vm10 }
 0xc73   :  { %v1274_v51 = vmul.f32 %v2637_v49, %v1273_v50 }
 0xc75   :  { %v1275_v52 = vmul.f32 0.5, %v1274_v51 }
 0xc77   :  { %v1276_v53 = vsub.f32 1.5, %v1275_v52 }
 0xc79   :  { %v1277_v54 = vmul.f32 %v2637_v49, %v1276_v53 }
 0xc7b   :  { %v1281_v56 = vsel %vm1280_vm12, %v2637_v49, %v1277_v54 }
 0xc7c   :  { %v1282_v57 = vmul.f32 %v1281_v56, %v1265_v41 }
 0xc7e   :  { %v1286_v60 = vmul.f32 %v2599_v55, %v1282_v57 }
 0xc80   :  { %v1290_v0 = vadd.f32 %v2600_v58, %v1286_v60 }
 0xc82   :  { %v1295_v61 = vpack.c.bf16 %v1290_v0, %v1290_v0 }
 0xc84   :  { %2261 = vmatmul.msk.bf16.vlgmr.msra.gmra.mxu3 %vm579_vm0, %v1295_v61 }
 0xd07   :  { %v1324_v3 = vpop.f32.mrf.mxu3 }
 0xd08   :  { %v3937_v4 = vadd.f32 %v2601_v63, %v1324_v3 }
 0xd0a   :  { %v1331_v5 = vsel %vm1330_vm13, %v3937_v4, -1e+30 }
 0xd0b   :  { %v1332_v6 = vsel %vm579_vm0, %v1331_v5, -inf }
 0xd0c   :  { %1333 = vmax.xlane.f32.xlu1 %v1332_v6 }
 0xd0f   :  { %v1326_v7 = vpop.f32.mrf.mxu3 }
 0xd10   :  { %v2444_v7 = vld [vmem:[%s4170_s25 + $0x18] sm:$0xff] }
 0xd11   :  { %1582 = vmatpush.bf16.msra.mxu1 %v2444_v7 }
 0xd7f   :  { %v1334_v8 = vpop.xlane.xlu1 %1333 }
 0xd80   :  { %v1335_v9 = vsub.f32 %v1331_v5, %v1334_v8  ;;  %v2443_v8 = vld [vmem:[%s4170_s25 + $0x10] sm:$0xff] }
 0xd81   :  { %1583 = vmatpush.bf16.msra.mxu1 %v2443_v8 }
 0xd82   :  { %v1336_v10 = vmul.f32 1.442695, %v1335_v9  ;;  %v2442_v9 = vld [vmem:[%s4170_s25 + $0x8] sm:$0xff] }
 0xd84   :  { %2638 = vpow2.f32 %v1336_v10 }
 0xd85   :  { %1584 = vmatpush.bf16.msra.mxu1 %v2442_v9 }
 0xd89   :  { %1585 = vmatpush.bf16.msra.mxu1 %v2441_v16 }
 0xd8a   :  { %v2639_v12 = vpop.eup %2638 }
 0xd8b   :  { %v1338_v15 = vsel %vm579_vm0, %v2639_v12, 0.0 }
 0xd8c   :  { %1339 = vadd.xlane.f32.xlu2 %v1338_v15 }
 0xdff   :  { %v1340_v14 = vpop.xlane.xlu2 %1339 }
 0xe00   :  { %2640 = vrcp.f32 %v1340_v14 }
 0xe06   :  { %v2641_v22 = vpop.eup %2640 }
 0xe07   :  { %v1342_v23 = vmul.f32 %v2641_v22, %v2639_v12 }
 0xe09   :  { %v1343_v24 = vsel %vm1330_vm13, %v1342_v23, %v3937_v4 }
 0xe0a   :  { %1344 = vst.msk [vmem:[#allocation42] sm:$0xff] %vm579_vm0, %v1343_v24  ;;  %v1437_v25 = vpack.c.bf16 %v1343_v24, %v1343_v24  ;;  %v1404_v26 = vadd.f32 %v1343_v24, %v3828_v11  ;;  %v1400_v11 = vadd.f32 %v2602_v32, %v1399_v27 }
 0xe0c   :  { %2288 = vmatmul.msk.bf16.vlgmr.msrb.gmra.mxu2 %vm579_vm0, %v1437_v25  ;;  %v1405_v13 = vpack.c.bf16 %v1404_v26, %v1404_v26  ;;  %v1469_v42 = vpack.c.bf16 %v1402_v39, %v1400_v11  ;;  %v2605_v25 = vld [vmem:[#allocation35] ss:$0 sm:$0xff] }
 0xe0e   :  { %2279 = vmatmul.msk.bf16.vlgmr.msrb.gmra.mxu1 %vm579_vm0, %v1405_v13 }
 0xe8b   :  { %v1433_v29 = vpop.f32.mrf.mxu1 }
 0xe8c   :  { %v1434_v30 = vadd.f32 %v2603_v28, %v1433_v29  ;;  %v3452_v29 = vmov 0.0  }
 0xe8d   :  { %1634 = vst.msk [vmem:[#allocation2] sm:$0xff] %vm579_vm0, %v3452_v29 }
 0xe8e   :  { %v1470_v33 = vpack.c.bf16 %v1434_v30, %v1434_v30  ;;  %1635 = vst.msk [vmem:[#allocation2 + $0x8] sm:$0xff] %vm579_vm0, %v3452_v29 }
 0xe8f   :  { %v1465_v34 = vpop.f32.mrf.mxu2  ;;  %1637 = vst.msk [vmem:[#allocation2 + $0x18] sm:$0xff] %vm579_vm0, %v3452_v29 }
 0xe90   :  { %v1475_v36 = vsel %vm579_vm0, %v1470_v33, 0  ;;  %v1466_v37 = vadd.f32 %v2604_v31, %v1465_v34  ;;  %1636 = vst.msk [vmem:[#allocation2 + $0x10] sm:$0xff] %vm579_vm0, %v3452_v29 }
 0xe91   :  { %1484 = vmatpush.bf16.xpose.msrb.mxu3 %v1475_v36 }
 0xe92   :  { %v1516_v38 = vpack.c.bf16 %v1466_v37, %v1466_v37 }
 0xe93   :  { %v1435_v40 = vpop.f32.mrf.mxu1 }
 0xe94   :  { %v1521_v41 = vsel %vm907_vm3, %v1516_v38, 0 }
 0xe95   :  { %1530 = vmatpush.bf16.msra.mxu0 %v1521_v41 }
 0xe97   :  { %v1467_v43 = vpop.f32.mrf.mxu2 }
 0xe98   :  { %2289 = vmatmul.msk.bf16.vlgmr.msrb.gmra.mxu3 %vm579_vm0, %v1469_v42 }
 0xf1b   :  { %v1486_v44 = vpop.f32.mrf.mxu3 }
 0xf1c   :  { %v1491_v45 = vmul.f32 0.17677669, %v1486_v44 }
 0xf1e   :  { %1594 = vst.msk [vmem:[%s3723_s19] sm:$0xff] %vm870_vm4, %v1491_v45  ;;  %v1493_v46 = vsel %vm870_vm4, %v1491_v45, -inf }
 0xf1f   :  { %1494 = vmax.xlane.f32.xlu0 %v1493_v46 }
 0xf23   :  { %v1488_v47 = vpop.f32.mrf.mxu3 }
 0xf24   :  { %v1492_v48 = vmul.f32 0.17677669, %v1488_v47 }
 0xf26   :  { %1595 = vst.msk [vmem:[%s3723_s19 + $0x8] sm:$0xff] %vm870_vm4, %v1492_v48  ;;  %v1496_v49 = vsel %vm870_vm4, %v1492_v48, -inf  ;;  %s4171_s19 = sld [smem:[#allocation86_spill]] }
 0xf27   :  { %1497 = vmax.xlane.f32.xlu1 %v1496_v49 }
 0xf2c   :  { %v2446_v22 = vld [vmem:[%s4171_s19 + $0x8] sm:$0xff]  ;;  %v2445_v23 = vld [vmem:[%s4171_s19] sm:$0xff] }
 0xf2d   :  { %1626 = vmatpush.bf16.msra.mxu2 %v2446_v22 }
 0xf31   :  { %1627 = vmatpush.bf16.msra.mxu2 %v2445_v23 }
 0xf92   :  { %v1495_v50 = vpop.xlane.xlu0 %1494 }
 0xf93   :  { %v1499_v51 = vsub.f32 %v1491_v45, %v1495_v50 }
 0xf95   :  { %v1501_v52 = vmul.f32 1.442695, %v1499_v51 }
 0xf97   :  { %2642 = vpow2.f32 %v1501_v52 }
 0xf9a   :  { %v1498_v53 = vpop.xlane.xlu1 %1497 }
 0xf9b   :  { %v1500_v54 = vsub.f32 %v1492_v48, %v1498_v53 }
 0xf9d   :  { %v2643_v55 = vpop.eup %2642  ;;  %v1503_v56 = vmul.f32 1.442695, %v1500_v54 }
 0xf9e   :  { %v1505_v57 = vsel %vm870_vm4, %v2643_v55, 0.0 }
 0xf9f   :  { %2644 = vpow2.f32 %v1503_v56  ;;  %1506 = vadd.xlane.f32.xlu2 %v1505_v57  ;;  %v2453_v56 = vld [vmem:[%s4173_s23] sm:$0xff] }
 0xfa5   :  { %v2645_v58 = vpop.eup %2644 }
 0xfa6   :  { %v1508_v60 = vsel %vm870_vm4, %v2645_v58, 0.0 }
 0xfa7   :  { %1509 = vadd.xlane.f32.xlu0 %v1508_v60 }
0x1012   :  { %v1507_v0 = vpop.xlane.xlu2 %1506 }
0x1013   :  { %2646 = vrcp.f32 %v1507_v0 }
0x1019   :  { %v2647_v61 = vpop.eup %2646 }
0x101a   :  { %v1513_v59 = vmul.f32 %v2647_v61, %v2643_v55  ;;  %v1510_v63 = vpop.xlane.xlu0 %1509  ;;  %v2454_v55 = vld [vmem:[%s4173_s23 + $0x8] sm:$0xff] }
0x101b   :  { %2648 = vrcp.f32 %v1510_v63  ;;  %1763 = vmatpush.bf16.msrb.mxu0 %v2454_v55 }
0x101c   :  { %1592 = vst.msk [vmem:[%s3718_s8] sm:$0xff] %vm870_vm4, %v1513_v59 }
0x101f   :  { %1764 = vmatpush.bf16.msrb.mxu0 %v2453_v56 }
0x1021   :  { %v2649_v3 = vpop.eup %2648 }
0x1022   :  { %v1514_v5 = vmul.f32 %v2649_v3, %v2645_v58  ;;  %v2607_v58 = vld [vmem:[%s4174_s28] ss:$0 sm:$0xff] }
0x1024   :  { %v1515_v6 = vpack.c.bf16 %v1514_v5, %v1513_v59  ;;  %1593 = vst.msk [vmem:[%s3718_s8 + $0x8] sm:$0xff] %vm870_vm4, %v1514_v5  ;;  %s4172_s8 = sld [smem:[#allocation87_spill]]  ;;  %v2608_v5 = vld [vmem:[#allocation38] ss:$0 sm:$0xff] }
0x1026   :  { %2290 = vmatmul.msk.bf16.vlgmr.msra.gmra.mxu0 %vm870_vm4, %v1515_v6 }
0x102a   :  { %v2452_v37 = vld [vmem:[%s4172_s8 + $0x28] sm:$0xff]  ;;  %v2451_v11 = vld [vmem:[%s4172_s8 + $0x20] sm:$0xff]  ;;  %v2450_v38 = vld [vmem:[%s4172_s8 + $0x18] sm:$0xff] }
0x102b   :  { %1723 = vmatpush.bf16.msra.mxu3 %v2452_v37  ;;  %v2449_v39 = vld [vmem:[%s4172_s8 + $0x10] sm:$0xff]  ;;  %v2448_v40 = vld [vmem:[%s4172_s8 + $0x8] sm:$0xff]  ;;  %v2447_v41 = vld [vmem:[%s4172_s8] sm:$0xff] }
0x102c   :  { %v2460_v6 = vld [vmem:[%s4172_s8 + $0x58] sm:$0xff]  ;;  %v2459_v9 = vld [vmem:[%s4172_s8 + $0x50] sm:$0xff]  ;;  %v2609_v37 = vld [vmem:[%s4174_s28 + $0x1] ss:$0 sm:$0xff] }
0x102d   :  { %1865 = vmatpush.bf16.msrb.mxu1 %v2460_v6  ;;  %v2456_v22 = vld [vmem:[%s4172_s8 + $0x38] sm:$0xff]  ;;  %v2455_v23 = vld [vmem:[%s4172_s8 + $0x30] sm:$0xff] }
0x102f   :  { %1724 = vmatpush.bf16.msra.mxu3 %v2451_v11 }
0x1031   :  { %1866 = vmatpush.bf16.msrb.mxu1 %v2459_v9 }
0x1033   :  { %1725 = vmatpush.bf16.msra.mxu3 %v2450_v38 }
0x1037   :  { %1726 = vmatpush.bf16.msra.mxu3 %v2449_v39 }
0x103b   :  { %1727 = vmatpush.bf16.msra.mxu3 %v2448_v40 }
0x103f   :  { %1728 = vmatpush.bf16.msra.mxu3 %v2447_v41 }
0x10a3   :  { %v1532_v10 = vpop.f32.mrf.mxu0 }
0x10ab   :  { %v1534_v12 = vpop.f32.mrf.mxu0 }
0x10ac   :  { %v2563_v15 = vpack.i.bf16 %v1534_v12, %v1532_v10  ;;  %v2458_v12 = vld [vmem:[%s4172_s8 + $0x48] sm:$0xff] }
0x10ad   :  { %1867 = vmatpush.bf16.msrb.mxu1 %v2458_v12 }
0x10ae   :  { %2564 = vrot.lane.b32.xlu1 %v2563_v15, %s3441_s13 }
0x1120   :  { %v2565_v17 = vpop.permute.xlu1 %2564 }
0x1121   :  { %v2567_v18 = vunpack.i.h.bf16 %v2565_v17  ;;  %v2566_v19 = vunpack.i.l.bf16 %v2565_v17 }
0x1123   :  { %v1546_v20 = vsel %vm579_vm0, %v3816_v2, %v2567_v18  ;;  %v1545_v21 = vsel %vm579_vm0, %v3813_v1, %v2566_v19  ;;  %v2606_v1 = vld [vmem:[#allocation36] ss:$0 sm:$0xff] }
0x1124   :  { %v1547_v14 = vpack.c.bf16 %v1546_v20, %v1545_v21 }
0x1126   :  { %2307 = vmatmul.msk.bf16.vlgmr.msra.gmra.mxu1 %vm749_vm2, %v1547_v14  ;;  %v2457_v14 = vld [vmem:[%s4172_s8 + $0x40] sm:$0xff] }
0x1127   :  { %1868 = vmatpush.bf16.msrb.mxu1 %v2457_v14 }
0x112b   :  { %1869 = vmatpush.bf16.msrb.mxu1 %v2456_v22 }
0x112f   :  { %1870 = vmatpush.bf16.msrb.mxu1 %v2455_v23 }
0x11a3   :  { %v1587_v24 = vpop.f32.mrf.mxu1 }
0x11a4   :  { %v1588_v13 = vadd.f32 %v2605_v25, %v1587_v24 }
0x11ab   :  { %v1589_v26 = vpop.f32.mrf.mxu1 }
0x11ac   :  { %v1590_v27 = vadd.f32 %v2605_v25, %v1589_v26 }
0x11ae   :  { %v1600_v28 = vpack.c.bf16 %v1590_v27, %v1588_v13 }
0x11b0   :  { %2316 = vmatmul.msk.bf16.vlgmr.msra.gmra.mxu2 %vm579_vm0, %v1600_v28 }
0x1233   :  { %v1629_v2 = vpop.f32.mrf.mxu2 }
0x1234   :  { %v1630_v30 = vadd.f32 %v2606_v1, %v1629_v2 }
0x1236   :  { %1638 = vst.msk [vmem:[#allocation2 + $0x8] sm:$0xff] %vm579_vm0, %v1630_v30 }
0x123b   :  { %v1631_v31 = vpop.f32.mrf.mxu2 }
0x123c   :  { %v1632_v32 = vadd.f32 %v2606_v1, %v1631_v31 }
0x123d   :  { %v1640_v46 = vld [vmem:[#allocation2 + $0x7] sm:$0xff] }
0x123e   :  { %1639 = vst.msk [vmem:[#allocation2 + $0x10] sm:$0xff] %vm579_vm0, %v1632_v32  ;;  %v2568_v33 = vpack.i.bf16 %v1632_v32, %v1630_v30 }
0x1240   :  { %2569 = vrot.lane.b32.xlu2 %v2568_v33, %s3441_s13 }
0x1245   :  { %v1642_v34 = vld [vmem:[#allocation2 + $0x9] sm:$0xff]  ;;  %v1643_v35 = vld [vmem:[#allocation2 + $0x11] sm:$0xff] }
0x1246   :  { %v2573_v36 = vpack.i.bf16 %v1643_v35, %v1642_v34  ;;  %v1641_v47 = vld [vmem:[#allocation2 + $0xf] sm:$0xff]  ;;  %v2462_v34 = vld [vmem:[%s4173_s23 + $0x18] sm:$0xff] }
0x1247   :  { %1906 = vmatpush.bf16.msrb.mxu2 %v2462_v34  ;;  %v2461_v35 = vld [vmem:[%s4173_s23 + $0x10] sm:$0xff] }
0x1248   :  { %2574 = vrot.lane.b32.xlu0 %v2573_v36, %s3433_s21 }
0x124b   :  { %1907 = vmatpush.bf16.msrb.mxu2 %v2461_v35 }
0x129a   :  { %v2570_v42 = vpop.permute.xlu2 %2569 }
0x129b   :  { %v2572_v43 = vunpack.i.h.bf16 %v2570_v42  ;;  %v2571_v44 = vunpack.i.l.bf16 %v2570_v42 }
0x129d   :  { %v1660_v50 = vsel %vm579_vm0, %v1640_v46, %v2571_v44  ;;  %v1661_v51 = vsel %vm579_vm0, %v1641_v47, %v2572_v43  ;;  %v2610_v47 = vld [vmem:[#allocation38 + $0x1] ss:$0 sm:$0xff] }
0x12ba   :  { %v2575_v45 = vpop.permute.xlu0 %2574 }
0x12bb   :  { %v2577_v48 = vunpack.i.h.bf16 %v2575_v45  ;;  %v2576_v49 = vunpack.i.l.bf16 %v2575_v45 }
0x12bd   :  { %v1662_v52 = vsel %vm749_vm2, %v1660_v50, %v2576_v49  ;;  %v1663_v53 = vsel %vm749_vm2, %v1661_v51, %v2577_v48 }
0x12be   :  { %v1676_v54 = vpack.c.bf16 %v1663_v53, %v1662_v52  ;;  %v2611_v53 = vld [vmem:[#allocation39] ss:$0 sm:$0xff] }
0x12c0   :  { %2341 = vmatmul.msk.bf16.vlgmr.msra.gmra.mxu3 %vm1717_vm14, %v1676_v54 }
0x1343   :  { %v1730_v57 = vpop.f32.mrf.mxu3 }
0x1344   :  { %v1731_v60 = vadd.f32 %v2607_v58, %v1730_v57 }
0x1346   :  { %v1735_v59 = vmax.f32 %v1731_v60, 0.0 }
0x134b   :  { %v1732_v0 = vpop.f32.mrf.mxu3 }
0x134c   :  { %v1733_v61 = vadd.f32 %v2607_v58, %v1732_v0 }
0x134e   :  { %v1736_v63 = vmax.f32 %v1733_v61, 0.0 }
0x1350   :  { %v1741_v3 = vpack.c.bf16 %v1736_v63, %v1735_v59 }
0x1352   :  { %2350 = vmatmul.msk.bf16.vlgmr.msrb.gmra.mxu0 %vm579_vm0, %v1741_v3 }
0x13cf   :  { %v1766_v7 = vpop.f32.mrf.mxu0 }
0x13d0   :  { %v1771_v8 = vadd.f32 %v1766_v7, %v1630_v30 }
0x13d2   :  { %v1777_v10 = vadd.f32 %v2608_v5, %v1771_v8 }
0x13d4   :  { %1779 = vst.msk [vmem:[#allocation2 + $0x8] sm:$0xff] %vm579_vm0, %v1777_v10 }
0x13d7   :  { %v1768_v15 = vpop.f32.mrf.mxu0 }
0x13d8   :  { %v1772_v16 = vadd.f32 %v1768_v15, %v1632_v32 }
0x13da   :  { %v1778_v17 = vadd.f32 %v2608_v5, %v1772_v16 }
0x13db   :  { %v1781_v27 = vld [vmem:[#allocation2 + $0x6] sm:$0xff] }
0x13dc   :  { %1780 = vst.msk [vmem:[#allocation2 + $0x10] sm:$0xff] %vm579_vm0, %v1778_v17  ;;  %v2578_v18 = vpack.i.bf16 %v1778_v17, %v1777_v10 }
0x13de   :  { %2579 = vrot.lane.b32.xlu1 %v2578_v18, %s3441_s13  ;;  %s3248_s13 = scalar_lea.hbm %s3247_s3, 8 }
0x13df   :  { %p3249_p8 = scmp.ne.s32.totalorder %s3247_s3, %s3248_s13  ;;  %p3252_p10 = scmp.lt.s32.totalorder %s3250_s7, %s3248_s13 }
0x13e1   :  { %p3253_p11 = por %p3252_p10, %p3251_p9 }
0x13e3   :  { %v1783_v19 = vld [vmem:[#allocation2 + $0xa] sm:$0xff]  ;;  %v1784_v20 = vld [vmem:[#allocation2 + $0x12] sm:$0xff]  ;;  %p3254_p12 = pnand %p3253_p11, %p3249_p8 }
0x13e4   :  { %v2583_v21 = vpack.i.bf16 %v1784_v20, %v1783_v19  ;;  %v1782_v28 = vld [vmem:[#allocation2 + $0xe] sm:$0xff] }
0x13e6   :  { %2584 = vrot.lane.b32.xlu0 %v2583_v21, %s3433_s21  ;;  %s4176_s21 = sld [smem:[#allocation91_spill]] }
0x13ec   :  { %v2464_v43 = vld [vmem:[%s4176_s21 + $0x8] sm:$0xff]  ;;  %v2463_v44 = vld [vmem:[%s4176_s21] sm:$0xff] }
0x13ed   :  { %1953 = vmatpush.bf16.msrb.mxu3 %v2464_v43 }
0x13ee   :  { %1346 = vrot.lane.b32.xlu0 %v3937_v4, %s3453_s17 }
0x13f1   :  { %1954 = vmatpush.bf16.msrb.mxu3 %v2463_v44 }
0x1450   :  { %v2580_v24 = vpop.permute.xlu1 %2579 }
0x1451   :  { %v2582_v25 = vunpack.i.h.bf16 %v2580_v24  ;;  %v2581_v26 = vunpack.i.l.bf16 %v2580_v24 }
0x1453   :  { %v1801_v4 = vsel %vm579_vm0, %v1781_v27, %v2581_v26  ;;  %v1802_v2 = vsel %vm579_vm0, %v1782_v28, %v2582_v25 }
0x1458   :  { %v2585_v13 = vpop.permute.xlu0 %2584 }
0x1459   :  { %v2587_v29 = vunpack.i.h.bf16 %v2585_v13  ;;  %v2586_v1 = vunpack.i.l.bf16 %v2585_v13 }
0x145b   :  { %v1803_v30 = vsel %vm749_vm2, %v1801_v4, %v2586_v1  ;;  %v1804_v31 = vsel %vm749_vm2, %v1802_v2, %v2587_v29 }
0x145c   :  { %v1818_v32 = vpack.c.bf16 %v1804_v31, %v1803_v30 }
0x145e   :  { %2388 = vmatmul.msk.bf16.vlgmr.msrb.gmra.mxu1 %vm1717_vm14, %v1818_v32 }
0x1460   :  { %v1347_v33 = vpop.permute.xlu0 %1346 }
0x1461   :  { %1350 = vst.msk [vmem:[%s4175_s29] sm:$0xff] %vm1349_vm15, %v1347_v33 }
0x14db   :  { %v1872_v36 = vpop.f32.mrf.mxu1 }
0x14dc   :  { %v1873_v11 = vadd.f32 %v2609_v37, %v1872_v36 }
0x14de   :  { %v1877_v40 = vmax.f32 %v1873_v11, 0.0 }
0x14e3   :  { %v1874_v38 = vpop.f32.mrf.mxu1 }
0x14e4   :  { %v1875_v39 = vadd.f32 %v2609_v37, %v1874_v38 }
0x14e6   :  { %v1878_v41 = vmax.f32 %v1875_v39, 0.0 }
0x14e8   :  { %v1884_v42 = vpack.c.bf16 %v1878_v41, %v1877_v40 }
0x14ea   :  { %2401 = vmatmul.msk.bf16.vlgmr.msrb.gmra.mxu2 %vm579_vm0, %v1884_v42 }
0x156d   :  { %v1909_v45 = vpop.f32.mrf.mxu2 }
0x156e   :  { %v1914_v46 = vadd.f32 %v1909_v45, %v1777_v10 }
0x1570   :  { %v1921_v50 = vadd.f32 %v2610_v47, %v1914_v46 }
0x1575   :  { %v1911_v48 = vpop.f32.mrf.mxu2 }
0x1576   :  { %v1915_v49 = vadd.f32 %v1911_v48, %v1778_v17 }
0x1578   :  { %v1922_v51 = vadd.f32 %v2610_v47, %v1915_v49 }
0x157a   :  { %v1927_v52 = vpack.c.bf16 %v1922_v51, %v1921_v50 }
0x157c   :  { %2410 = vmatmul.msk.bf16.vlgmr.msrb.gmra.mxu3 %vm579_vm0, %v1927_v52 }
0x15ff   :  { %v1956_v54 = vpop.f32.mrf.mxu3 }
0x1600   :  { %v4032_v55 = vadd.f32 %v2611_v53, %v1956_v54 }
0x1602   :  { %v1962_v56 = vsel %vm1961_vm1, %v4032_v55, -1e+30 }
0x1603   :  { %v1964_v57 = vsel %vm579_vm0, %v1962_v56, -inf }
0x1604   :  { %1965 = vmax.xlane.f32.xlu2 %v1964_v57 }
0x1607   :  { %v1958_v58 = vpop.f32.mrf.mxu3 }
0x1608   :  { %v4038_v60 = vadd.f32 %v2611_v53, %v1958_v58 }
0x160a   :  { %v1963_v0 = vsel %vm1961_vm1, %v4038_v60, -1e+30 }
0x160b   :  { %v1967_v61 = vsel %vm579_vm0, %v1963_v0, -inf }
0x160c   :  { %1968 = vmax.xlane.f32.xlu1 %v1967_v61 }
0x1625   :  { %1992 = vrot.lane.b32.xlu1 %v4032_v55, %s3454_s14 }
0x1677   :  { %v1966_v59 = vpop.xlane.xlu2 %1965 }
0x1678   :  { %v1970_v63 = vsub.f32 %v1962_v56, %v1966_v59 }
0x167a   :  { %v1972_v3 = vmul.f32 1.442695, %v1970_v63 }
0x167c   :  { %2650 = vpow2.f32 %v1972_v3 }
0x167f   :  { %v1969_v5 = vpop.xlane.xlu1 %1968 }
0x1680   :  { %v1971_v6 = vsub.f32 %v1963_v0, %v1969_v5 }
0x1682   :  { %v4046_v7 = vpop.eup %2650  ;;  %v1974_v8 = vmul.f32 1.442695, %v1971_v6 }
0x1683   :  { %v1976_v9 = vsel %vm579_vm0, %v4046_v7, 0.0 }
0x1684   :  { %2652 = vpow2.f32 %v1974_v8  ;;  %1977 = vadd.xlane.f32.xlu0 %v1976_v9 }
0x168a   :  { %v2653_v10 = vpop.eup %2652 }
0x168b   :  { %3257 = shalt.err (!%p3254_p12)
}
0x168c   :  { %2024 = dma.vmem_to_hbm [thread:$0]  %s2020_s26, 128, %s2022_s2, [#allocation43]   ;;  %v1979_v12 = vsel %vm579_vm0, %v2653_v10, 0.0 }
0x168d   :  { %1980 = vadd.xlane.f32.xlu2 %v1979_v12  ;;  %s2036_s10 = sshll.u32 %s3708_s5, 4  ;;  %s3456_s15 = smov [#allocation44]   ;;  %s2037_s10 = int_to_ptr.hbm [resolvable:$true] %s2036_s10 }
0x168e   :  { %s2034_s9 = sshll.u32 %s3456_s15, 4  ;;  %s3270_s6 = sshra.s32 %s2037_s10, 4  ;;  %s2035_s9 = int_to_ptr.vmem [resolvable:$true] %s2034_s9  ;;  %s3271_s6 = int_to_ptr.hbm [resolvable:$true] %s3270_s6 }
0x168f   :  { %s3272_s24 = scalar_lea.hbm %s3271_s6, 8  ;;  %s3274_s27 = scalar_lea.hbm %s3708_s5, 8 }
0x1690   :  { %p3273_p13 = scmp.ne.s32.totalorder %s3271_s6, %s3272_s24  ;;  %p3275_p0 = scmp.lt.s32.totalorder %s3271_s6, %s3708_s5 }
0x1691   :  { %p3276_p1 = scmp.lt.s32.totalorder %s3274_s27, %s3272_s24 }
0x1693   :  { %p3277_p2 = por %p3276_p1, %p3275_p0 }
0x1695   :  { %p3278_p3 = pnand %p3277_p2, %p3273_p13 }
0x1697   :  { %3281 = shalt.err (!%p3278_p3)
}
0x1698   :  { %2039 = dma.vmem_to_hbm [thread:$0]  %s2035_s9, 128, %s2037_s10, [#allocation43]  }
0x1699   :  { %s3457_s11 = smov [#allocation45]   ;;  %s2047_s18 = sshll.u32 %s3713_s20, 4  ;;  %s2048_s18 = int_to_ptr.hbm [resolvable:$true] %s2047_s18 }
0x169a   :  { %s2045_s22 = sshll.u32 %s3457_s11, 4  ;;  %s3294_s30 = sshra.s32 %s2048_s18, 4  ;;  %s2046_s22 = int_to_ptr.vmem [resolvable:$true] %s2045_s22  ;;  %s3295_s30 = int_to_ptr.hbm [resolvable:$true] %s3294_s30 }
0x169b   :  { %s3296_s0 = scalar_lea.hbm %s3295_s30, 8  ;;  %s3298_s4 = scalar_lea.hbm %s3713_s20, 8 }
0x169c   :  { %p3297_p4 = scmp.ne.s32.totalorder %s3295_s30, %s3296_s0  ;;  %p3299_p5 = scmp.lt.s32.totalorder %s3295_s30, %s3713_s20 }
0x169d   :  { %p3300_p6 = scmp.lt.s32.totalorder %s3298_s4, %s3296_s0 }
0x169f   :  { %p3301_p7 = por %p3300_p6, %p3299_p5 }
0x16a1   :  { %p3302_p8 = pnand %p3301_p7, %p3297_p4 }
0x16a3   :  { %3305 = shalt.err (!%p3302_p8)
}
0x16a4   :  { %2050 = dma.vmem_to_hbm [thread:$0]  %s2046_s22, 128, %s2048_s18, [#allocation46]   ;;  %vm1998_vm2 = vcmask 31744   ;;  %v1993_v15 = vpop.permute.xlu1 %1992 }
0x16a5   :  { %s4178_s5 = sld [smem:[#allocation95_spill]]  ;;  %1994 = vrot.lane.b32.xlu2 %v4038_v60, %s3454_s14  ;;  %s3458_s19 = smov [#allocation41]  }
0x16a6   :  { %s4179_s25 = sld [smem:[#allocation93_spill]]  ;;  %s2005_s8 = sshll.u32 %s3458_s19, 4  ;;  %s2006_s8 = int_to_ptr.vmem [resolvable:$true] %s2005_s8 }
0x16ab   :  { %1999 = vst.msk [vmem:[%s4178_s5] sm:$0xff] %vm1998_vm2, %v1993_v15 }
0x16ac   :  { %s2007_s20 = sshll.u32 %s4179_s25, 4  ;;  %s3322_s17 = scalar_lea.hbm %s4179_s25, 16  ;;  %s2008_s20 = int_to_ptr.hbm [resolvable:$true] %s2007_s20 }
0x16ad   :  { %s3318_s23 = sshra.s32 %s2008_s20, 4  ;;  %s3319_s23 = int_to_ptr.hbm [resolvable:$true] %s3318_s23 }
0x16ae   :  { %s3320_s28 = scalar_lea.hbm %s3319_s23, 16  ;;  %p3323_p10 = scmp.lt.s32.totalorder %s3319_s23, %s4179_s25 }
0x16af   :  { %p3321_p9 = scmp.ne.s32.totalorder %s3319_s23, %s3320_s28  ;;  %p3324_p11 = scmp.lt.s32.totalorder %s3322_s17, %s3320_s28 }
0x16b1   :  { %p3325_p12 = por %p3324_p11, %p3323_p10 }
0x16b3   :  { %p3326_p13 = pnand %p3325_p12, %p3321_p9 }
0x16f7   :  { %v1978_v16 = vpop.xlane.xlu0 %1977 }
0x16f8   :  { %2654 = vrcp.f32 %v1978_v16 }
0x16fe   :  { %v2655_v17 = vpop.eup %2654 }
0x16ff   :  { %v1984_v18 = vmul.f32 %v2655_v17, %v4046_v7 }
0x1700   :  { %v1981_v19 = vpop.xlane.xlu2 %1980 }
0x1701   :  { %2656 = vrcp.f32 %v1981_v19  ;;  %v1986_v20 = vsel %vm1961_vm1, %v1984_v18, %v4032_v55 }
0x1702   :  { %1988 = vst.msk [vmem:[#allocation41] sm:$0xff] %vm579_vm0, %v1986_v20 }
0x1707   :  { %v2657_v21 = vpop.eup %2656 }
0x1708   :  { %v1985_v14 = vmul.f32 %v2657_v21, %v2653_v10  ;;  %v1995_v22 = vpop.permute.xlu2 %1994 }
0x1709   :  { %2000 = vst.msk [vmem:[%s4178_s5 + $0x8] sm:$0xff] %vm1998_vm2, %v1995_v22 }
0x170a   :  { %v1987_v23 = vsel %vm1961_vm1, %v1985_v14, %v4038_v60 }
0x170b   :  { %1989 = vst.msk [vmem:[#allocation41 + $0x8] sm:$0xff] %vm579_vm0, %v1987_v23 }
0x170c   :  { %3329 = shalt.err (!%p3326_p13)
}
0x170d   :  { %s3459_s29 = smov 128  }
0x170e   :  { %2013 = dma.vmem_to_hbm [thread:$0]  %s2006_s8, 256, %s2008_s20, [#allocation5], %s3459_s29, %s3459_s29, %s3449_s16  }
0x170f   :  { %3356 = dma.done.wait [#allocation5], 256  }
0x1710   :  { %3357 = vsyncadd [#allocation5], 4294967040 }
0x1711   :  { %3358 = dma.done.wait [#allocation43], 256  }
0x1712   :  { %3359 = vsyncadd [#allocation43], 4294967040 }
0x1713   :  { %3360 = dma.done.wait [#allocation46], 128  }
0x1714   :  { %3361 = vsyncadd [#allocation46], 4294967168 }
0x1715   :  { %2079 = vsyncpa [#allocation4], 1 }
0x1716   :  { %2080 = vsyncpa [#allocation7], 1 }
0x1717   :  { %2081 = vsyncpa [#allocation10], 1 }
0x1718   :  { %2082 = vsyncpa [#allocation13], 1 }
0x1719   :  { %2083 = vsyncpa [#allocation16], 1 }
0x171a   :  { %2084 = vsyncpa [#allocation19], 1 }
0x171b   :  { %2085 = vsyncpa [#allocation22], 1 }
0x171c   :  { %2086 = vsyncpa [#allocation25], 1 }
0x171d   :  { %2087 = vsyncpa [#allocation28], 1 }
0x171e   :  { %2088 = vsyncpa [#allocation31], 1 }
0x171f   :  { %2089 = vsyncpa [#allocation34], 1 }
0x1720   :  { %2090 = vsyncpa [#allocation37], 1 }
0x1721   :  { %2091 = vsyncpa [#allocation40], 1 }
0x1722   :  { %2092 = vsyncpa [#allocation5], 1 }
0x1723   :  { %2093 = vsyncpa [#allocation43], 1 }
0x1724   :  { %2094 = vsyncpa [#allocation46], 1 }

</bundles_post_ra>
